<compile_context>
chip_gen: v6e
topology: v6e:2x2x1
jax: 0.10.0
libtpu: 0.0.40
codegen_flags: <defaults>
</compile_context>

<pallas_src>
import functools
import math

import jax
import jax.numpy as jnp
import numpy as np
from jax import lax
from jax.experimental import pallas as pl
from jax.experimental.pallas import tpu as pltpu

# Large finite negative for masked scores (dtype-aware; avoids -inf -> NaN in
# exp(s - m) when an entire row of a kv tile is masked).
_MASK_VALUE = -0.7 * float(np.finfo(np.float32).max)


def _rope(t, cos_t, sin_signed_t, half):
    """apply_rope on a (T, head_size) f32 block.

    rotate_half(t) == roll(t, head_size//2) with the first half negated; the
    sign is pre-folded into `sin_signed_t`, so RoPE is one XLU lane-rotate plus
    VPU mul/adds (no MXU matmul, no lane concatenates).  The shift equals half
    the rolled dimension, so the rotation direction is irrelevant."""
    return t * cos_t + pltpu.roll(t, half, axis=1) * sin_signed_t


# -----------------------------------------------------------------------------
# Fused kernel: grid = (batch, q_tile, kv_tile), online softmax over kv tiles
# -----------------------------------------------------------------------------
def _fused_csa_kernel(xq_ref, xkv_ref, wqkv_ref, wo_ref,
                      cosq_ref, sinq_ref, cosk_ref, sink_ref,
                      o_ref,
                      q_sc, m_sc, l_sc, acc_sc,
                      *, n_heads, n_kv, head_size, tq, tk):
    hs = head_size
    half = hs // 2
    rep = n_heads // n_kv
    nq = n_heads * hs
    nkv = n_kv * hs
    scale = 1.0 / math.sqrt(hs)

    qi = pl.program_id(1)
    ki = pl.program_id(2)
    q_start = qi * tq
    kv_start = ki * tk

    # ---- once per (batch, q-tile): project + RoPE the q tile, reset softmax state
    @pl.when(ki == 0)
    def _init():
        m_sc[...] = jnp.full_like(m_sc, _MASK_VALUE)
        l_sc[...] = jnp.zeros_like(l_sc)
        acc_sc[...] = jnp.zeros_like(acc_sc)
        # q projection: (tq, D) x (nq, D)^T, bf16 operands, f32 accumulation.
        q = lax.dot_general(xq_ref[...], wqkv_ref[:nq, :],
                            dimension_numbers=(((1,), (1,)), ((), ())),
                            preferred_element_type=jnp.float32)      # (tq, nq)
        cos_q = cosq_ref[...]
        sin_q = sinq_ref[...]
        for h in range(n_heads):
            sl = slice(h * hs, (h + 1) * hs)
            roped = _rope(q[:, sl], cos_q, sin_q, half)
            # Fold the 1/sqrt(head_size) attention scale into q once per tile.
            q_sc[:, sl] = (roped * scale).astype(q_sc.dtype)

    # ---- per kv tile (fully-masked upper-triangle tiles are skipped entirely)
    @pl.when(kv_start <= q_start + tq - 1)
    def _attend():
        kv = lax.dot_general(xkv_ref[...], wqkv_ref[nq:, :],
                             dimension_numbers=(((1,), (1,)), ((), ())),
                             preferred_element_type=jnp.float32)     # (tk, 2*nkv)
        cos_k = cosk_ref[...]
        sin_k = sink_ref[...]
        k_heads = []
        v_heads = []
        for g in range(n_kv):
            sl = slice(g * hs, (g + 1) * hs)
            k_heads.append(_rope(kv[:, sl], cos_k, sin_k, half).astype(jnp.bfloat16))
            v_heads.append(kv[:, nkv + g * hs:nkv + (g + 1) * hs].astype(jnp.bfloat16))

        # In-kernel causal mask (no precomputed (L, L) bias input).
        row = q_start + lax.broadcasted_iota(jnp.int32, (tq, tk), 0)
        col = kv_start + lax.broadcasted_iota(jnp.int32, (tq, tk), 1)
        causal = row >= col

        for h in range(n_heads):
            g = h // rep                                   # GQA group for head h
            sl = slice(h * hs, (h + 1) * hs)
            qh = q_sc[:, sl]                               # (tq, hs) bf16, pre-scaled
            s = lax.dot_general(qh, k_heads[g],
                                dimension_numbers=(((1,), (1,)), ((), ())),
                                preferred_element_type=jnp.float32)  # (tq, tk)
            s = jnp.where(causal, s, _MASK_VALUE)

            m_prev = m_sc[:, h:h + 1]
            l_prev = l_sc[:, h:h + 1]
            m_new = jnp.maximum(m_prev, jnp.max(s, axis=-1, keepdims=True))
            alpha = jnp.exp(m_prev - m_new)
            p = jnp.exp(s - m_new)
            l_sc[:, h:h + 1] = alpha * l_prev + jnp.sum(p, axis=-1, keepdims=True)
            acc_sc[:, sl] = alpha * acc_sc[:, sl] + jnp.dot(
                p.astype(jnp.bfloat16), v_heads[g],
                preferred_element_type=jnp.float32)
            m_sc[:, h:h + 1] = m_new

    # ---- once per (batch, q-tile): normalize per head and apply output projection
    @pl.when(ki == pl.num_programs(2) - 1)
    def _finalize():
        inv_l = pl.reciprocal(l_sc[...], approx=True)      # (tq, n_heads), EUP slot
        for h in range(n_heads):
            sl = slice(h * hs, (h + 1) * hs)
            acc_sc[:, sl] = acc_sc[:, sl] * inv_l[:, h:h + 1]
        att = acc_sc[...].astype(jnp.bfloat16)             # (tq, nq)
        y = lax.dot_general(att, wo_ref[...],
                            dimension_numbers=(((1,), (1,)), ((), ())),
                            preferred_element_type=jnp.float32)      # (tq, D)
        o_ref[...] = y.astype(o_ref.dtype)


# -----------------------------------------------------------------------------
# Wrapper
# -----------------------------------------------------------------------------
def causal_self_attention_forward(x, w_qkv, w_o, cos, sin,
                                  n_heads, n_query_groups, head_size,
                                  *, q_tile=256, kv_tile=256):
    """Fused CausalSelfAttention forward (no kv-cache / biases / q,k norms).

    x:      (B, L, D) activations.
    w_qkv:  (n_heads*hs + 2*n_query_groups*hs, D) torch nn.Linear layout,
            rows = [q_proj; k_proj; v_proj]  (ideally already bf16).
    w_o:    (D, n_heads*hs) torch layout     (ideally already bf16).
    cos/sin:(L, head_size) standard RoPE tables.
    """
    orig_dtype = x.dtype
    B, L, D = x.shape
    hs = head_size
    n_kv = n_query_groups
    nq = n_heads * hs
    nkv = n_kv * hs
    ntot = nq + 2 * nkv
    half = hs // 2

    assert hs % 2 == 0
    assert w_qkv.shape == (ntot, D) and w_o.shape == (D, nq)
    # Lane-friendly layout: packed head blocks must be 128-aligned for the
    # roll-based RoPE and aligned per-head scratch writes.
    assert nq % 128 == 0 and nkv % 128 == 0

    tq = min(q_tile, L)
    tk = min(kv_tile, L)
    assert L % tq == 0 and L % tk == 0
    # bf16 x blocks need a 16-row sublane granularity unless the block spans L.
    assert (tq == L or tq % 16 == 0) and (tk == L or tk % 16 == 0)

    # bf16 at MXU boundaries (weights should already be bf16 — cast at init);
    # elementwise RoPE / softmax math stays f32 inside the kernel.
    x_bf = x.astype(jnp.bfloat16)
    w_qkv = w_qkv.astype(jnp.bfloat16)
    w_o = w_o.astype(jnp.bfloat16)

    # rotate_half sign folded into the sin table once (host side, free):
    #   rotate_half(t) * sin == roll(t, hs//2) * sin_signed
    cos = cos.astype(jnp.float32)
    sin = sin.astype(jnp.float32)
    sin_signed = jnp.concatenate([-sin[:, :half], sin[:, half:]], axis=-1)

    grid = (B, L // tq, L // tk)

    kernel = functools.partial(_fused_csa_kernel, n_heads=n_heads, n_kv=n_kv,
                               head_size=hs, tq=tq, tk=tk)

    flops = B * (2 * L * D * ntot * (1 + L // tk)      # q proj + per-kv-tile kv proj
                 + n_heads * 2 * L * L * hs            # causal qk^T + pv (~half skipped)
                 + 2 * L * nq * D)                     # output projection
    bytes_accessed = (2 * B * L * D * (1 + L // tk)    # bf16 x (q path + kv re-reads)
                      + 2 * (ntot * D + D * nq)        # bf16 weights
                      + 4 * B * L * D                  # f32 output
                      + 8 * L * hs)                    # rope tables

    return pl.pallas_call(
        kernel,
        out_shape=jax.ShapeDtypeStruct((B, L, D), orig_dtype),
        grid=grid,
        in_specs=[
            pl.BlockSpec((None, tq, D), lambda b, qi, ki: (b, qi, 0)),  # x (q rows)
            pl.BlockSpec((None, tk, D), lambda b, qi, ki: (b, ki, 0)),  # x (kv rows)
            pl.BlockSpec((ntot, D),     lambda b, qi, ki: (0, 0)),      # fused qkv W (bf16)
            pl.BlockSpec((D, nq),       lambda b, qi, ki: (0, 0)),      # o_proj W (bf16)
            pl.BlockSpec((tq, hs),      lambda b, qi, ki: (qi, 0)),     # cos  (q rows)
            pl.BlockSpec((tq, hs),      lambda b, qi, ki: (qi, 0)),     # sin' (q rows)
            pl.BlockSpec((tk, hs),      lambda b, qi, ki: (ki, 0)),     # cos  (kv rows)
            pl.BlockSpec((tk, hs),      lambda b, qi, ki: (ki, 0)),     # sin' (kv rows)
        ],
        out_specs=pl.BlockSpec((None, tq, D), lambda b, qi, ki: (b, qi, 0)),
        scratch_shapes=[
            pltpu.VMEM((tq, nq), jnp.bfloat16),        # RoPE'd, pre-scaled q tile
            pltpu.VMEM((tq, n_heads), jnp.float32),    # online-softmax running max
            pltpu.VMEM((tq, n_heads), jnp.float32),    # online-softmax running sum
            pltpu.VMEM((tq, nq), jnp.float32),         # per-head output accumulator
        ],
        compiler_params=pltpu.CompilerParams(
            dimension_semantics=("parallel", "parallel", "arbitrary"),
            vmem_limit_bytes=64 * 1024 * 1024,         # fits the v7x 64 MiB/TC budget
        ),
        cost_estimate=pl.CostEstimate(flops=int(flops),
                                      transcendentals=int(B * n_heads * L * L),
                                      bytes_accessed=int(bytes_accessed)),
    )(x_bf, x_bf, w_qkv, w_o, cos, sin_signed, cos, sin_signed)


# -----------------------------------------------------------------------------
# Pure-JAX reference (f32)
# -----------------------------------------------------------------------------
def reference_forward(x, Wq, Wk, Wv, Wo, cos, sin, n_heads, n_kv, hs):
    B, L, D = x.shape
    q = (x @ Wq.T).reshape(B, L, n_heads, hs).transpose(0, 2, 1, 3)
    k = (x @ Wk.T).reshape(B, L, n_kv, hs).transpose(0, 2, 1, 3)
    v = (x @ Wv.T).reshape(B, L, n_kv, hs).transpose(0, 2, 1, 3)

    def rope(t):
        t1 = t[..., : hs // 2]
        t2 = t[..., hs // 2:]
        rotated = jnp.concatenate([-t2, t1], axis=-1)
        return t * cos + rotated * sin

    q = rope(q)
    k = rope(k)

    rep = n_heads // n_kv
    k = jnp.repeat(k, rep, axis=1)
    v = jnp.repeat(v, rep, axis=1)

    scale = 1.0 / math.sqrt(hs)
    s = jnp.einsum("bhqd,bhkd->bhqk", q, k) * scale
    mask = jnp.tril(jnp.ones((L, L), dtype=bool))
    s = jnp.where(mask, s, -jnp.inf)
    p = jax.nn.softmax(s, axis=-1)
    o = jnp.einsum("bhqk,bhkd->bhqd", p, v)
    o = o.transpose(0, 2, 1, 3).reshape(B, L, n_heads * hs)
    return o @ Wo.T


# -----------------------------------------------------------------------------
# Main
# -----------------------------------------------------------------------------
if __name__ == "__main__":
    B, L = 2, 32
    n_heads, n_query_groups, head_size = 4, 2, 128
    D = n_heads * head_size                      # 512

    key = jax.random.PRNGKey(0)
    kx, kq, kk, kv, ko = jax.random.split(key, 5)

    x = jax.random.normal(kx, (B, L, D), dtype=jnp.float32)

    # deterministic "nn.Linear"-shaped weights (out_features, in_features)
    w_scale = 1.0 / math.sqrt(D)
    Wq = jax.random.uniform(kq, (n_heads * head_size, D), jnp.float32, -w_scale, w_scale)
    Wk = jax.random.uniform(kk, (n_query_groups * head_size, D), jnp.float32, -w_scale, w_scale)
    Wv = jax.random.uniform(kv, (n_query_groups * head_size, D), jnp.float32, -w_scale, w_scale)
    Wo = jax.random.uniform(ko, (D, n_heads * head_size), jnp.float32, -w_scale, w_scale)

    # Fused QKV weight built once at init (torch split order [q, k, v]); cast to
    # bf16 once here — not per kernel invocation.
    Wqkv_bf16 = jnp.concatenate([Wq, Wk, Wv], axis=0).astype(jnp.bfloat16)
    Wo_bf16 = Wo.astype(jnp.bfloat16)

    # standard RoPE tables, shape (L, head_size)
    half = head_size // 2
    inv_freq = 1.0 / (10000.0 ** (jnp.arange(0, half, dtype=jnp.float32) / half))
    pos = jnp.arange(L, dtype=jnp.float32)
    theta = pos[:, None] * inv_freq[None, :]               # (L, half)
    cos = jnp.concatenate([jnp.cos(theta)] * 2, axis=-1)   # (L, head_size)
    sin = jnp.concatenate([jnp.sin(theta)] * 2, axis=-1)

    out = causal_self_attention_forward(
        x, Wqkv_bf16, Wo_bf16, cos, sin,
        n_heads, n_query_groups, head_size,
        q_tile=16, kv_tile=16,    # small tiles to exercise the flash-style grid
    )
    out = jax.block_until_ready(out)

    ref = reference_forward(
        x, Wq, Wk, Wv, Wo, cos, sin, n_heads, n_query_groups, head_size
    )
    # bf16 matmul operands (f32 accumulation) + approx reciprocal -> loose tol
    np.testing.assert_allclose(np.asarray(out), np.asarray(ref), rtol=3e-2, atol=3e-2)

    print("KERNEL_OK")
</pallas_src>

<mosaic_0001>
module attributes {stable_mosaic.version = 11 : i64} {
  func.func @_fused_csa_kernel(%arg0: i32, %arg1: i32, %arg2: i32, %arg3: memref<1x16x512xbf16, #tpu.memory_space<vmem>>, %arg4: memref<1x16x512xbf16, #tpu.memory_space<vmem>>, %arg5: memref<1024x512xbf16, #tpu.memory_space<vmem>>, %arg6: memref<512x512xbf16, #tpu.memory_space<vmem>>, %arg7: memref<16x128xf32, #tpu.memory_space<vmem>>, %arg8: memref<16x128xf32, #tpu.memory_space<vmem>>, %arg9: memref<16x128xf32, #tpu.memory_space<vmem>>, %arg10: memref<16x128xf32, #tpu.memory_space<vmem>>, %arg11: memref<1x16x512xf32, #tpu.memory_space<vmem>>, %arg12: memref<16x512xbf16, #tpu.memory_space<vmem>>, %arg13: memref<16x4xf32, #tpu.memory_space<vmem>>, %arg14: memref<16x4xf32, #tpu.memory_space<vmem>>, %arg15: memref<16x512xf32, #tpu.memory_space<vmem>>) attributes {dimension_semantics = [#tpu.dimension_semantics<parallel>, #tpu.dimension_semantics<parallel>, #tpu.dimension_semantics<arbitrary>], iteration_bounds = array<i64: 2, 2, 2>, scalar_prefetch = 0 : i64, scratch_operands = 4 : i64, tpu.core_type = #tpu.core_type<tc>, window_params = [{transform_indices = @transform_0, window_bounds = array<i64: 1, 16, 512>}, {transform_indices = @transform_1, window_bounds = array<i64: 1, 16, 512>}, {pipeline_mode = #tpu.pipeline_mode<synchronous>, transform_indices = @transform_2, window_bounds = array<i64: 1024, 512>}, {pipeline_mode = #tpu.pipeline_mode<synchronous>, transform_indices = @transform_3, window_bounds = array<i64: 512, 512>}, {transform_indices = @transform_4, window_bounds = array<i64: 16, 128>}, {transform_indices = @transform_5, window_bounds = array<i64: 16, 128>}, {transform_indices = @transform_6, window_bounds = array<i64: 16, 128>}, {transform_indices = @transform_7, window_bounds = array<i64: 16, 128>}, {transform_indices = @transform_8, window_bounds = array<i64: 1, 16, 512>}]} {
    %c16_i32 = arith.constant 16 : i32
    %0 = arith.muli %arg1, %c16_i32 : i32
    %c16_i32_0 = arith.constant 16 : i32
    %1 = arith.muli %arg2, %c16_i32_0 : i32
    %c0_i32 = arith.constant 0 : i32
    %2 = arith.cmpi eq, %arg2, %c0_i32 : i32
    %3 = arith.extui %2 : i1 to i32
    %c0_i32_1 = arith.constant 0 : i32
    %4 = arith.cmpi ne, %3, %c0_i32_1 : i32
    scf.if %4 {
      %cst = arith.constant -2.38197633E+38 : f32
      %13 = vector.broadcast %cst : f32 to vector<16x4xf32>
      %c0 = arith.constant 0 : index
      %c0_6 = arith.constant 0 : index
      %14 = vector.load %arg13[%c0, %c0_6] : memref<16x4xf32, #tpu.memory_space<vmem>>, vector<16x4xf32>
      tpu.vector_store %arg13[%c0, %c0_6], %13 {strides = array<i32>} : memref<16x4xf32, #tpu.memory_space<vmem>>, vector<16x4xf32>,
      %cst_7 = arith.constant 0.000000e+00 : f32
      %15 = vector.broadcast %cst_7 : f32 to vector<16x4xf32>
      %c0_8 = arith.constant 0 : index
      %c0_9 = arith.constant 0 : index
      %16 = vector.load %arg14[%c0_8, %c0_9] : memref<16x4xf32, #tpu.memory_space<vmem>>, vector<16x4xf32>
      tpu.vector_store %arg14[%c0_8, %c0_9], %15 {strides = array<i32>} : memref<16x4xf32, #tpu.memory_space<vmem>>, vector<16x4xf32>,
      %cst_10 = arith.constant 0.000000e+00 : f32
      %17 = vector.broadcast %cst_10 : f32 to vector<16x512xf32>
      %c0_11 = arith.constant 0 : index
      %c0_12 = arith.constant 0 : index
      %18 = vector.load %arg15[%c0_11, %c0_12] : memref<16x512xf32, #tpu.memory_space<vmem>>, vector<16x512xf32>
      tpu.vector_store %arg15[%c0_11, %c0_12], %17 {strides = array<i32>} : memref<16x512xf32, #tpu.memory_space<vmem>>, vector<16x512xf32>,
      %c0_13 = arith.constant 0 : index
      %c0_14 = arith.constant 0 : index
      %c0_15 = arith.constant 0 : index
      %19 = vector.load %arg3[%c0_13, %c0_14, %c0_15] : memref<1x16x512xbf16, #tpu.memory_space<vmem>>, vector<1x16x512xbf16>
      %20 = vector.shape_cast %19 : vector<1x16x512xbf16> to vector<16x512xbf16>
      %c0_16 = arith.constant 0 : index
      %c0_17 = arith.constant 0 : index
      %21 = vector.load %arg5[%c0_16, %c0_17] : memref<1024x512xbf16, #tpu.memory_space<vmem>>, vector<512x512xbf16>
      %cst_18 = arith.constant dense<0.000000e+00> : vector<16x512xf32>
      %22 = tpu.matmul %20, %21, %cst_18 {dimension_numbers = #tpu.dot_dimension_numbers<[1], [1], [0], [0], [0, 0, 1, 0], [], []>} : vector<16x512xbf16>, vector<512x512xbf16>, vector<16x512xf32> -> vector<16x512xf32>
      %c0_19 = arith.constant 0 : index
      %c0_20 = arith.constant 0 : index
      %23 = vector.load %arg7[%c0_19, %c0_20] : memref<16x128xf32, #tpu.memory_space<vmem>>, vector<16x128xf32>
      %c0_21 = arith.constant 0 : index
      %c0_22 = arith.constant 0 : index
      %24 = vector.load %arg8[%c0_21, %c0_22] : memref<16x128xf32, #tpu.memory_space<vmem>>, vector<16x128xf32>
      %25 = vector.extract_strided_slice %22 {offsets = [0, 0], sizes = [16, 128], strides = [1, 1]} : vector<16x512xf32> to vector<16x128xf32>
      %26 = arith.mulf %25, %23 : vector<16x128xf32>
      %c64_i32 = arith.constant 64 : i32
      %27 = tpu.dynamic_rotate %25 by %c64_i32 dim 1 : vector<16x128xf32>, i32 -> vector<16x128xf32>
      %28 = arith.mulf %27, %24 : vector<16x128xf32>
      %29 = arith.addf %26, %28 : vector<16x128xf32>
      %cst_23 = arith.constant 0.0883883461 : f32
      %30 = vector.broadcast %cst_23 : f32 to vector<16x128xf32>
      %31 = arith.mulf %29, %30 : vector<16x128xf32>
      %32 = arith.truncf %31 : vector<16x128xf32> to vector<16x128xbf16>
      %c0_24 = arith.constant 0 : index
      %c0_25 = arith.constant 0 : index
      %33 = vector.load %arg12[%c0_24, %c0_25] : memref<16x512xbf16, #tpu.memory_space<vmem>>, vector<16x128xbf16>
      tpu.vector_store %arg12[%c0_24, %c0_25], %32 {strides = array<i32>} : memref<16x512xbf16, #tpu.memory_space<vmem>>, vector<16x128xbf16>,
      %34 = vector.extract_strided_slice %22 {offsets = [0, 128], sizes = [16, 128], strides = [1, 1]} : vector<16x512xf32> to vector<16x128xf32>
      %35 = arith.mulf %34, %23 : vector<16x128xf32>
      %c64_i32_26 = arith.constant 64 : i32
      %36 = tpu.dynamic_rotate %34 by %c64_i32_26 dim 1 : vector<16x128xf32>, i32 -> vector<16x128xf32>
      %37 = arith.mulf %36, %24 : vector<16x128xf32>
      %38 = arith.addf %35, %37 : vector<16x128xf32>
      %cst_27 = arith.constant 0.0883883461 : f32
      %39 = vector.broadcast %cst_27 : f32 to vector<16x128xf32>
      %40 = arith.mulf %38, %39 : vector<16x128xf32>
      %41 = arith.truncf %40 : vector<16x128xf32> to vector<16x128xbf16>
      %c0_28 = arith.constant 0 : index
      %c128 = arith.constant 128 : index
      %42 = vector.load %arg12[%c0_28, %c128] : memref<16x512xbf16, #tpu.memory_space<vmem>>, vector<16x128xbf16>
      tpu.vector_store %arg12[%c0_28, %c128], %41 {strides = array<i32>} : memref<16x512xbf16, #tpu.memory_space<vmem>>, vector<16x128xbf16>,
      %43 = vector.extract_strided_slice %22 {offsets = [0, 256], sizes = [16, 128], strides = [1, 1]} : vector<16x512xf32> to vector<16x128xf32>
      %44 = arith.mulf %43, %23 : vector<16x128xf32>
      %c64_i32_29 = arith.constant 64 : i32
      %45 = tpu.dynamic_rotate %43 by %c64_i32_29 dim 1 : vector<16x128xf32>, i32 -> vector<16x128xf32>
      %46 = arith.mulf %45, %24 : vector<16x128xf32>
      %47 = arith.addf %44, %46 : vector<16x128xf32>
      %cst_30 = arith.constant 0.0883883461 : f32
      %48 = vector.broadcast %cst_30 : f32 to vector<16x128xf32>
      %49 = arith.mulf %47, %48 : vector<16x128xf32>
      %50 = arith.truncf %49 : vector<16x128xf32> to vector<16x128xbf16>
      %c0_31 = arith.constant 0 : index
      %c256 = arith.constant 256 : index
      %51 = vector.load %arg12[%c0_31, %c256] : memref<16x512xbf16, #tpu.memory_space<vmem>>, vector<16x128xbf16>
      tpu.vector_store %arg12[%c0_31, %c256], %50 {strides = array<i32>} : memref<16x512xbf16, #tpu.memory_space<vmem>>, vector<16x128xbf16>,
      %52 = vector.extract_strided_slice %22 {offsets = [0, 384], sizes = [16, 128], strides = [1, 1]} : vector<16x512xf32> to vector<16x128xf32>
      %53 = arith.mulf %52, %23 : vector<16x128xf32>
      %c64_i32_32 = arith.constant 64 : i32
      %54 = tpu.dynamic_rotate %52 by %c64_i32_32 dim 1 : vector<16x128xf32>, i32 -> vector<16x128xf32>
      %55 = arith.mulf %54, %24 : vector<16x128xf32>
      %56 = arith.addf %53, %55 : vector<16x128xf32>
      %cst_33 = arith.constant 0.0883883461 : f32
      %57 = vector.broadcast %cst_33 : f32 to vector<16x128xf32>
      %58 = arith.mulf %56, %57 : vector<16x128xf32>
      %59 = arith.truncf %58 : vector<16x128xf32> to vector<16x128xbf16>
      %c0_34 = arith.constant 0 : index
      %c384 = arith.constant 384 : index
      %60 = vector.load %arg12[%c0_34, %c384] : memref<16x512xbf16, #tpu.memory_space<vmem>>, vector<16x128xbf16>
      tpu.vector_store %arg12[%c0_34, %c384], %59 {strides = array<i32>} : memref<16x512xbf16, #tpu.memory_space<vmem>>, vector<16x128xbf16>,
    } else {
    }
    %c16_i32_2 = arith.constant 16 : i32
    %5 = arith.addi %0, %c16_i32_2 : i32
    %c1_i32 = arith.constant 1 : i32
    %6 = arith.subi %5, %c1_i32 : i32
    %7 = arith.cmpi sle, %1, %6 : i32
    %8 = arith.extui %7 : i1 to i32
    %c0_i32_3 = arith.constant 0 : i32
    %9 = arith.cmpi ne, %8, %c0_i32_3 : i32
    scf.if %9 {
      %c0 = arith.constant 0 : index
      %c0_6 = arith.constant 0 : index
      %c0_7 = arith.constant 0 : index
      %13 = vector.load %arg4[%c0, %c0_6, %c0_7] : memref<1x16x512xbf16, #tpu.memory_space<vmem>>, vector<1x16x512xbf16>
      %14 = vector.shape_cast %13 : vector<1x16x512xbf16> to vector<16x512xbf16>
      %c512 = arith.constant 512 : index
      %c0_8 = arith.constant 0 : index
      %15 = vector.load %arg5[%c512, %c0_8] : memref<1024x512xbf16, #tpu.memory_space<vmem>>, vector<512x512xbf16>
      %cst = arith.constant dense<0.000000e+00> : vector<16x512xf32>
      %16 = tpu.matmul %14, %15, %cst {dimension_numbers = #tpu.dot_dimension_numbers<[1], [1], [0], [0], [0, 0, 1, 0], [], []>} : vector<16x512xbf16>, vector<512x512xbf16>, vector<16x512xf32> -> vector<16x512xf32>
      %c0_9 = arith.constant 0 : index
      %c0_10 = arith.constant 0 : index
      %17 = vector.load %arg9[%c0_9, %c0_10] : memref<16x128xf32, #tpu.memory_space<vmem>>, vector<16x128xf32>
      %c0_11 = arith.constant 0 : index
      %c0_12 = arith.constant 0 : index
      %18 = vector.load %arg10[%c0_11, %c0_12] : memref<16x128xf32, #tpu.memory_space<vmem>>, vector<16x128xf32>
      %19 = vector.extract_strided_slice %16 {offsets = [0, 0], sizes = [16, 128], strides = [1, 1]} : vector<16x512xf32> to vector<16x128xf32>
      %20 = arith.mulf %19, %17 : vector<16x128xf32>
      %c64_i32 = arith.constant 64 : i32
      %21 = tpu.dynamic_rotate %19 by %c64_i32 dim 1 : vector<16x128xf32>, i32 -> vector<16x128xf32>
      %22 = arith.mulf %21, %18 : vector<16x128xf32>
      %23 = arith.addf %20, %22 : vector<16x128xf32>
      %24 = arith.truncf %23 : vector<16x128xf32> to vector<16x128xbf16>
      %25 = vector.extract_strided_slice %16 {offsets = [0, 256], sizes = [16, 128], strides = [1, 1]} : vector<16x512xf32> to vector<16x128xf32>
      %26 = arith.truncf %25 : vector<16x128xf32> to vector<16x128xbf16>
      %27 = vector.extract_strided_slice %16 {offsets = [0, 128], sizes = [16, 128], strides = [1, 1]} : vector<16x512xf32> to vector<16x128xf32>
      %28 = arith.mulf %27, %17 : vector<16x128xf32>
      %c64_i32_13 = arith.constant 64 : i32
      %29 = tpu.dynamic_rotate %27 by %c64_i32_13 dim 1 : vector<16x128xf32>, i32 -> vector<16x128xf32>
      %30 = arith.mulf %29, %18 : vector<16x128xf32>
      %31 = arith.addf %28, %30 : vector<16x128xf32>
      %32 = arith.truncf %31 : vector<16x128xf32> to vector<16x128xbf16>
      %33 = vector.extract_strided_slice %16 {offsets = [0, 384], sizes = [16, 128], strides = [1, 1]} : vector<16x512xf32> to vector<16x128xf32>
      %34 = arith.truncf %33 : vector<16x128xf32> to vector<16x128xbf16>
      %35 = tpu.iota {dimensions = array<i32: 0>} : vector<16x16xi32>
      %36 = vector.broadcast %0 : i32 to vector<16x16xi32>
      %37 = arith.addi %36, %35 : vector<16x16xi32>
      %38 = tpu.iota {dimensions = array<i32: 1>} : vector<16x16xi32>
      %39 = vector.broadcast %1 : i32 to vector<16x16xi32>
      %40 = arith.addi %39, %38 : vector<16x16xi32>
      %41 = arith.cmpi sge, %37, %40 : vector<16x16xi32>
      %c0_14 = arith.constant 0 : index
      %c0_15 = arith.constant 0 : index
      %42 = vector.load %arg12[%c0_14, %c0_15] : memref<16x512xbf16, #tpu.memory_space<vmem>>, vector<16x128xbf16>
      %cst_16 = arith.constant dense<0.000000e+00> : vector<16x16xf32>
      %43 = tpu.matmul %42, %24, %cst_16 {dimension_numbers = #tpu.dot_dimension_numbers<[1], [1], [0], [0], [0, 0, 1, 0], [], []>} : vector<16x128xbf16>, vector<16x128xbf16>, vector<16x16xf32> -> vector<16x16xf32>
      %cst_17 = arith.constant -2.38197633E+38 : f32
      %44 = vector.broadcast %cst_17 : f32 to vector<16x16xf32>
      %45 = arith.select %41, %43, %44 : vector<16x16xi1>, vector<16x16xf32>
      %c0_18 = arith.constant 0 : index
      %c0_19 = arith.constant 0 : index
      %46 = vector.load %arg13[%c0_18, %c0_19] : memref<16x4xf32, #tpu.memory_space<vmem>>, vector<16x1xf32>
      %c0_20 = arith.constant 0 : index
      %c0_21 = arith.constant 0 : index
      %47 = vector.load %arg14[%c0_20, %c0_21] : memref<16x4xf32, #tpu.memory_space<vmem>>, vector<16x1xf32>
      %cst_22 = arith.constant dense<0xFF800000> : vector<16xf32>
      %48 = vector.multi_reduction <maximumf>, %45, %cst_22 [1] : vector<16x16xf32> to vector<16xf32>
      %49 = vector.shape_cast %48 : vector<16xf32> to vector<16x1xf32>
      %50 = arith.maximumf %46, %49 : vector<16x1xf32>
      %51 = arith.subf %46, %50 : vector<16x1xf32>
      %52 = math.exp %51 : vector<16x1xf32>
      %53 = vector.broadcast %50 : vector<16x1xf32> to vector<16x16xf32>
      %54 = arith.subf %45, %53 : vector<16x16xf32>
      %55 = math.exp %54 : vector<16x16xf32>
      %56 = arith.mulf %52, %47 : vector<16x1xf32>
      %cst_23 = arith.constant dense<0.000000e+00> : vector<16xf32>
      %57 = vector.multi_reduction <add>, %55, %cst_23 [1] : vector<16x16xf32> to vector<16xf32>
      %58 = vector.shape_cast %57 : vector<16xf32> to vector<16x1xf32>
      %59 = arith.addf %56, %58 : vector<16x1xf32>
      %c0_24 = arith.constant 0 : index
      %c0_25 = arith.constant 0 : index
      %60 = vector.load %arg14[%c0_24, %c0_25] : memref<16x4xf32, #tpu.memory_space<vmem>>, vector<16x1xf32>
      tpu.vector_store %arg14[%c0_24, %c0_25], %59 {strides = array<i32>} : memref<16x4xf32, #tpu.memory_space<vmem>>, vector<16x1xf32>,
      %c0_26 = arith.constant 0 : index
      %c0_27 = arith.constant 0 : index
      %61 = vector.load %arg15[%c0_26, %c0_27] : memref<16x512xf32, #tpu.memory_space<vmem>>, vector<16x128xf32>
      %62 = vector.broadcast %52 : vector<16x1xf32> to vector<16x128xf32>
      %63 = arith.mulf %62, %61 : vector<16x128xf32>
      %64 = arith.truncf %55 : vector<16x16xf32> to vector<16x16xbf16>
      %cst_28 = arith.constant dense<0.000000e+00> : vector<16x128xf32>
      %65 = tpu.matmul %64, %26, %cst_28 {dimension_numbers = #tpu.dot_dimension_numbers<[1], [0], [0], [1], [0, 0, 1, 1], [], []>} : vector<16x16xbf16>, vector<16x128xbf16>, vector<16x128xf32> -> vector<16x128xf32>
      %66 = arith.addf %63, %65 : vector<16x128xf32>
      %c0_29 = arith.constant 0 : index
      %c0_30 = arith.constant 0 : index
      %67 = vector.load %arg15[%c0_29, %c0_30] : memref<16x512xf32, #tpu.memory_space<vmem>>, vector<16x128xf32>
      tpu.vector_store %arg15[%c0_29, %c0_30], %66 {strides = array<i32>} : memref<16x512xf32, #tpu.memory_space<vmem>>, vector<16x128xf32>,
      %c0_31 = arith.constant 0 : index
      %c0_32 = arith.constant 0 : index
      %68 = vector.load %arg13[%c0_31, %c0_32] : memref<16x4xf32, #tpu.memory_space<vmem>>, vector<16x1xf32>
      tpu.vector_store %arg13[%c0_31, %c0_32], %50 {strides = array<i32>} : memref<16x4xf32, #tpu.memory_space<vmem>>, vector<16x1xf32>,
      %c0_33 = arith.constant 0 : index
      %c128 = arith.constant 128 : index
      %69 = vector.load %arg12[%c0_33, %c128] : memref<16x512xbf16, #tpu.memory_space<vmem>>, vector<16x128xbf16>
      %cst_34 = arith.constant dense<0.000000e+00> : vector<16x16xf32>
      %70 = tpu.matmul %69, %24, %cst_34 {dimension_numbers = #tpu.dot_dimension_numbers<[1], [1], [0], [0], [0, 0, 1, 0], [], []>} : vector<16x128xbf16>, vector<16x128xbf16>, vector<16x16xf32> -> vector<16x16xf32>
      %cst_35 = arith.constant -2.38197633E+38 : f32
      %71 = vector.broadcast %cst_35 : f32 to vector<16x16xf32>
      %72 = arith.select %41, %70, %71 : vector<16x16xi1>, vector<16x16xf32>
      %c0_36 = arith.constant 0 : index
      %c1 = arith.constant 1 : index
      %73 = vector.load %arg13[%c0_36, %c1] : memref<16x4xf32, #tpu.memory_space<vmem>>, vector<16x1xf32>
      %c0_37 = arith.constant 0 : index
      %c1_38 = arith.constant 1 : index
      %74 = vector.load %arg14[%c0_37, %c1_38] : memref<16x4xf32, #tpu.memory_space<vmem>>, vector<16x1xf32>
      %cst_39 = arith.constant dense<0xFF800000> : vector<16xf32>
      %75 = vector.multi_reduction <maximumf>, %72, %cst_39 [1] : vector<16x16xf32> to vector<16xf32>
      %76 = vector.shape_cast %75 : vector<16xf32> to vector<16x1xf32>
      %77 = arith.maximumf %73, %76 : vector<16x1xf32>
      %78 = arith.subf %73, %77 : vector<16x1xf32>
      %79 = math.exp %78 : vector<16x1xf32>
      %80 = vector.broadcast %77 : vector<16x1xf32> to vector<16x16xf32>
      %81 = arith.subf %72, %80 : vector<16x16xf32>
      %82 = math.exp %81 : vector<16x16xf32>
      %83 = arith.mulf %79, %74 : vector<16x1xf32>
      %cst_40 = arith.constant dense<0.000000e+00> : vector<16xf32>
      %84 = vector.multi_reduction <add>, %82, %cst_40 [1] : vector<16x16xf32> to vector<16xf32>
      %85 = vector.shape_cast %84 : vector<16xf32> to vector<16x1xf32>
      %86 = arith.addf %83, %85 : vector<16x1xf32>
      %c0_41 = arith.constant 0 : index
      %c1_42 = arith.constant 1 : index
      %87 = vector.load %arg14[%c0_41, %c1_42] : memref<16x4xf32, #tpu.memory_space<vmem>>, vector<16x1xf32>
      tpu.vector_store %arg14[%c0_41, %c1_42], %86 {strides = array<i32>} : memref<16x4xf32, #tpu.memory_space<vmem>>, vector<16x1xf32>,
      %c0_43 = arith.constant 0 : index
      %c128_44 = arith.constant 128 : index
      %88 = vector.load %arg15[%c0_43, %c128_44] : memref<16x512xf32, #tpu.memory_space<vmem>>, vector<16x128xf32>
      %89 = vector.broadcast %79 : vector<16x1xf32> to vector<16x128xf32>
      %90 = arith.mulf %89, %88 : vector<16x128xf32>
      %91 = arith.truncf %82 : vector<16x16xf32> to vector<16x16xbf16>
      %cst_45 = arith.constant dense<0.000000e+00> : vector<16x128xf32>
      %92 = tpu.matmul %91, %26, %cst_45 {dimension_numbers = #tpu.dot_dimension_numbers<[1], [0], [0], [1], [0, 0, 1, 1], [], []>} : vector<16x16xbf16>, vector<16x128xbf16>, vector<16x128xf32> -> vector<16x128xf32>
      %93 = arith.addf %90, %92 : vector<16x128xf32>
      %c0_46 = arith.constant 0 : index
      %c128_47 = arith.constant 128 : index
      %94 = vector.load %arg15[%c0_46, %c128_47] : memref<16x512xf32, #tpu.memory_space<vmem>>, vector<16x128xf32>
      tpu.vector_store %arg15[%c0_46, %c128_47], %93 {strides = array<i32>} : memref<16x512xf32, #tpu.memory_space<vmem>>, vector<16x128xf32>,
      %c0_48 = arith.constant 0 : index
      %c1_49 = arith.constant 1 : index
      %95 = vector.load %arg13[%c0_48, %c1_49] : memref<16x4xf32, #tpu.memory_space<vmem>>, vector<16x1xf32>
      tpu.vector_store %arg13[%c0_48, %c1_49], %77 {strides = array<i32>} : memref<16x4xf32, #tpu.memory_space<vmem>>, vector<16x1xf32>,
      %c0_50 = arith.constant 0 : index
      %c256 = arith.constant 256 : index
      %96 = vector.load %arg12[%c0_50, %c256] : memref<16x512xbf16, #tpu.memory_space<vmem>>, vector<16x128xbf16>
      %cst_51 = arith.constant dense<0.000000e+00> : vector<16x16xf32>
      %97 = tpu.matmul %96, %32, %cst_51 {dimension_numbers = #tpu.dot_dimension_numbers<[1], [1], [0], [0], [0, 0, 1, 0], [], []>} : vector<16x128xbf16>, vector<16x128xbf16>, vector<16x16xf32> -> vector<16x16xf32>
      %cst_52 = arith.constant -2.38197633E+38 : f32
      %98 = vector.broadcast %cst_52 : f32 to vector<16x16xf32>
      %99 = arith.select %41, %97, %98 : vector<16x16xi1>, vector<16x16xf32>
      %c0_53 = arith.constant 0 : index
      %c2 = arith.constant 2 : index
      %100 = vector.load %arg13[%c0_53, %c2] : memref<16x4xf32, #tpu.memory_space<vmem>>, vector<16x1xf32>
      %c0_54 = arith.constant 0 : index
      %c2_55 = arith.constant 2 : index
      %101 = vector.load %arg14[%c0_54, %c2_55] : memref<16x4xf32, #tpu.memory_space<vmem>>, vector<16x1xf32>
      %cst_56 = arith.constant dense<0xFF800000> : vector<16xf32>
      %102 = vector.multi_reduction <maximumf>, %99, %cst_56 [1] : vector<16x16xf32> to vector<16xf32>
      %103 = vector.shape_cast %102 : vector<16xf32> to vector<16x1xf32>
      %104 = arith.maximumf %100, %103 : vector<16x1xf32>
      %105 = arith.subf %100, %104 : vector<16x1xf32>
      %106 = math.exp %105 : vector<16x1xf32>
      %107 = vector.broadcast %104 : vector<16x1xf32> to vector<16x16xf32>
      %108 = arith.subf %99, %107 : vector<16x16xf32>
      %109 = math.exp %108 : vector<16x16xf32>
      %110 = arith.mulf %106, %101 : vector<16x1xf32>
      %cst_57 = arith.constant dense<0.000000e+00> : vector<16xf32>
      %111 = vector.multi_reduction <add>, %109, %cst_57 [1] : vector<16x16xf32> to vector<16xf32>
      %112 = vector.shape_cast %111 : vector<16xf32> to vector<16x1xf32>
      %113 = arith.addf %110, %112 : vector<16x1xf32>
      %c0_58 = arith.constant 0 : index
      %c2_59 = arith.constant 2 : index
      %114 = vector.load %arg14[%c0_58, %c2_59] : memref<16x4xf32, #tpu.memory_space<vmem>>, vector<16x1xf32>
      tpu.vector_store %arg14[%c0_58, %c2_59], %113 {strides = array<i32>} : memref<16x4xf32, #tpu.memory_space<vmem>>, vector<16x1xf32>,
      %c0_60 = arith.constant 0 : index
      %c256_61 = arith.constant 256 : index
      %115 = vector.load %arg15[%c0_60, %c256_61] : memref<16x512xf32, #tpu.memory_space<vmem>>, vector<16x128xf32>
      %116 = vector.broadcast %106 : vector<16x1xf32> to vector<16x128xf32>
      %117 = arith.mulf %116, %115 : vector<16x128xf32>
      %118 = arith.truncf %109 : vector<16x16xf32> to vector<16x16xbf16>
      %cst_62 = arith.constant dense<0.000000e+00> : vector<16x128xf32>
      %119 = tpu.matmul %118, %34, %cst_62 {dimension_numbers = #tpu.dot_dimension_numbers<[1], [0], [0], [1], [0, 0, 1, 1], [], []>} : vector<16x16xbf16>, vector<16x128xbf16>, vector<16x128xf32> -> vector<16x128xf32>
      %120 = arith.addf %117, %119 : vector<16x128xf32>
      %c0_63 = arith.constant 0 : index
      %c256_64 = arith.constant 256 : index
      %121 = vector.load %arg15[%c0_63, %c256_64] : memref<16x512xf32, #tpu.memory_space<vmem>>, vector<16x128xf32>
      tpu.vector_store %arg15[%c0_63, %c256_64], %120 {strides = array<i32>} : memref<16x512xf32, #tpu.memory_space<vmem>>, vector<16x128xf32>,
      %c0_65 = arith.constant 0 : index
      %c2_66 = arith.constant 2 : index
      %122 = vector.load %arg13[%c0_65, %c2_66] : memref<16x4xf32, #tpu.memory_space<vmem>>, vector<16x1xf32>
      tpu.vector_store %arg13[%c0_65, %c2_66], %104 {strides = array<i32>} : memref<16x4xf32, #tpu.memory_space<vmem>>, vector<16x1xf32>,
      %c0_67 = arith.constant 0 : index
      %c384 = arith.constant 384 : index
      %123 = vector.load %arg12[%c0_67, %c384] : memref<16x512xbf16, #tpu.memory_space<vmem>>, vector<16x128xbf16>
      %cst_68 = arith.constant dense<0.000000e+00> : vector<16x16xf32>
      %124 = tpu.matmul %123, %32, %cst_68 {dimension_numbers = #tpu.dot_dimension_numbers<[1], [1], [0], [0], [0, 0, 1, 0], [], []>} : vector<16x128xbf16>, vector<16x128xbf16>, vector<16x16xf32> -> vector<16x16xf32>
      %cst_69 = arith.constant -2.38197633E+38 : f32
      %125 = vector.broadcast %cst_69 : f32 to vector<16x16xf32>
      %126 = arith.select %41, %124, %125 : vector<16x16xi1>, vector<16x16xf32>
      %c0_70 = arith.constant 0 : index
      %c3 = arith.constant 3 : index
      %127 = vector.load %arg13[%c0_70, %c3] : memref<16x4xf32, #tpu.memory_space<vmem>>, vector<16x1xf32>
      %c0_71 = arith.constant 0 : index
      %c3_72 = arith.constant 3 : index
      %128 = vector.load %arg14[%c0_71, %c3_72] : memref<16x4xf32, #tpu.memory_space<vmem>>, vector<16x1xf32>
      %cst_73 = arith.constant dense<0xFF800000> : vector<16xf32>
      %129 = vector.multi_reduction <maximumf>, %126, %cst_73 [1] : vector<16x16xf32> to vector<16xf32>
      %130 = vector.shape_cast %129 : vector<16xf32> to vector<16x1xf32>
      %131 = arith.maximumf %127, %130 : vector<16x1xf32>
      %132 = arith.subf %127, %131 : vector<16x1xf32>
      %133 = math.exp %132 : vector<16x1xf32>
      %134 = vector.broadcast %131 : vector<16x1xf32> to vector<16x16xf32>
      %135 = arith.subf %126, %134 : vector<16x16xf32>
      %136 = math.exp %135 : vector<16x16xf32>
      %137 = arith.mulf %133, %128 : vector<16x1xf32>
      %cst_74 = arith.constant dense<0.000000e+00> : vector<16xf32>
      %138 = vector.multi_reduction <add>, %136, %cst_74 [1] : vector<16x16xf32> to vector<16xf32>
      %139 = vector.shape_cast %138 : vector<16xf32> to vector<16x1xf32>
      %140 = arith.addf %137, %139 : vector<16x1xf32>
      %c0_75 = arith.constant 0 : index
      %c3_76 = arith.constant 3 : index
      %141 = vector.load %arg14[%c0_75, %c3_76] : memref<16x4xf32, #tpu.memory_space<vmem>>, vector<16x1xf32>
      tpu.vector_store %arg14[%c0_75, %c3_76], %140 {strides = array<i32>} : memref<16x4xf32, #tpu.memory_space<vmem>>, vector<16x1xf32>,
      %c0_77 = arith.constant 0 : index
      %c384_78 = arith.constant 384 : index
      %142 = vector.load %arg15[%c0_77, %c384_78] : memref<16x512xf32, #tpu.memory_space<vmem>>, vector<16x128xf32>
      %143 = vector.broadcast %133 : vector<16x1xf32> to vector<16x128xf32>
      %144 = arith.mulf %143, %142 : vector<16x128xf32>
      %145 = arith.truncf %136 : vector<16x16xf32> to vector<16x16xbf16>
      %cst_79 = arith.constant dense<0.000000e+00> : vector<16x128xf32>
      %146 = tpu.matmul %145, %34, %cst_79 {dimension_numbers = #tpu.dot_dimension_numbers<[1], [0], [0], [1], [0, 0, 1, 1], [], []>} : vector<16x16xbf16>, vector<16x128xbf16>, vector<16x128xf32> -> vector<16x128xf32>
      %147 = arith.addf %144, %146 : vector<16x128xf32>
      %c0_80 = arith.constant 0 : index
      %c384_81 = arith.constant 384 : index
      %148 = vector.load %arg15[%c0_80, %c384_81] : memref<16x512xf32, #tpu.memory_space<vmem>>, vector<16x128xf32>
      tpu.vector_store %arg15[%c0_80, %c384_81], %147 {strides = array<i32>} : memref<16x512xf32, #tpu.memory_space<vmem>>, vector<16x128xf32>,
      %c0_82 = arith.constant 0 : index
      %c3_83 = arith.constant 3 : index
      %149 = vector.load %arg13[%c0_82, %c3_83] : memref<16x4xf32, #tpu.memory_space<vmem>>, vector<16x1xf32>
      tpu.vector_store %arg13[%c0_82, %c3_83], %131 {strides = array<i32>} : memref<16x4xf32, #tpu.memory_space<vmem>>, vector<16x1xf32>,
    } else {
    }
    %c1_i32_4 = arith.constant 1 : i32
    %10 = arith.cmpi eq, %arg2, %c1_i32_4 : i32
    %11 = arith.extui %10 : i1 to i32
    %c0_i32_5 = arith.constant 0 : i32
    %12 = arith.cmpi ne, %11, %c0_i32_5 : i32
    scf.if %12 {
      %c0 = arith.constant 0 : index
      %c0_6 = arith.constant 0 : index
      %13 = vector.load %arg14[%c0, %c0_6] : memref<16x4xf32, #tpu.memory_space<vmem>>, vector<16x4xf32>
      %14 = tpu.reciprocal %13 {approx = true} : vector<16x4xf32> -> vector<16x4xf32>
      %c0_7 = arith.constant 0 : index
      %c0_8 = arith.constant 0 : index
      %15 = vector.load %arg15[%c0_7, %c0_8] : memref<16x512xf32, #tpu.memory_space<vmem>>, vector<16x128xf32>
      %16 = vector.extract_strided_slice %14 {offsets = [0, 0], sizes = [16, 1], strides = [1, 1]} : vector<16x4xf32> to vector<16x1xf32>
      %17 = vector.broadcast %16 : vector<16x1xf32> to vector<16x128xf32>
      %18 = arith.mulf %15, %17 : vector<16x128xf32>
      %c0_9 = arith.constant 0 : index
      %c0_10 = arith.constant 0 : index
      %19 = vector.load %arg15[%c0_9, %c0_10] : memref<16x512xf32, #tpu.memory_space<vmem>>, vector<16x128xf32>
      tpu.vector_store %arg15[%c0_9, %c0_10], %18 {strides = array<i32>} : memref<16x512xf32, #tpu.memory_space<vmem>>, vector<16x128xf32>,
      %c0_11 = arith.constant 0 : index
      %c128 = arith.constant 128 : index
      %20 = vector.load %arg15[%c0_11, %c128] : memref<16x512xf32, #tpu.memory_space<vmem>>, vector<16x128xf32>
      %21 = vector.extract_strided_slice %14 {offsets = [0, 1], sizes = [16, 1], strides = [1, 1]} : vector<16x4xf32> to vector<16x1xf32>
      %22 = vector.broadcast %21 : vector<16x1xf32> to vector<16x128xf32>
      %23 = arith.mulf %20, %22 : vector<16x128xf32>
      %c0_12 = arith.constant 0 : index
      %c128_13 = arith.constant 128 : index
      %24 = vector.load %arg15[%c0_12, %c128_13] : memref<16x512xf32, #tpu.memory_space<vmem>>, vector<16x128xf32>
      tpu.vector_store %arg15[%c0_12, %c128_13], %23 {strides = array<i32>} : memref<16x512xf32, #tpu.memory_space<vmem>>, vector<16x128xf32>,
      %c0_14 = arith.constant 0 : index
      %c256 = arith.constant 256 : index
      %25 = vector.load %arg15[%c0_14, %c256] : memref<16x512xf32, #tpu.memory_space<vmem>>, vector<16x128xf32>
      %26 = vector.extract_strided_slice %14 {offsets = [0, 2], sizes = [16, 1], strides = [1, 1]} : vector<16x4xf32> to vector<16x1xf32>
      %27 = vector.broadcast %26 : vector<16x1xf32> to vector<16x128xf32>
      %28 = arith.mulf %25, %27 : vector<16x128xf32>
      %c0_15 = arith.constant 0 : index
      %c256_16 = arith.constant 256 : index
      %29 = vector.load %arg15[%c0_15, %c256_16] : memref<16x512xf32, #tpu.memory_space<vmem>>, vector<16x128xf32>
      tpu.vector_store %arg15[%c0_15, %c256_16], %28 {strides = array<i32>} : memref<16x512xf32, #tpu.memory_space<vmem>>, vector<16x128xf32>,
      %c0_17 = arith.constant 0 : index
      %c384 = arith.constant 384 : index
      %30 = vector.load %arg15[%c0_17, %c384] : memref<16x512xf32, #tpu.memory_space<vmem>>, vector<16x128xf32>
      %31 = vector.extract_strided_slice %14 {offsets = [0, 3], sizes = [16, 1], strides = [1, 1]} : vector<16x4xf32> to vector<16x1xf32>
      %32 = vector.broadcast %31 : vector<16x1xf32> to vector<16x128xf32>
      %33 = arith.mulf %30, %32 : vector<16x128xf32>
      %c0_18 = arith.constant 0 : index
      %c384_19 = arith.constant 384 : index
      %34 = vector.load %arg15[%c0_18, %c384_19] : memref<16x512xf32, #tpu.memory_space<vmem>>, vector<16x128xf32>
      tpu.vector_store %arg15[%c0_18, %c384_19], %33 {strides = array<i32>} : memref<16x512xf32, #tpu.memory_space<vmem>>, vector<16x128xf32>,
      %c0_20 = arith.constant 0 : index
      %c0_21 = arith.constant 0 : index
      %35 = vector.load %arg15[%c0_20, %c0_21] : memref<16x512xf32, #tpu.memory_space<vmem>>, vector<16x512xf32>
      %36 = arith.truncf %35 : vector<16x512xf32> to vector<16x512xbf16>
      %c0_22 = arith.constant 0 : index
      %c0_23 = arith.constant 0 : index
      %37 = vector.load %arg6[%c0_22, %c0_23] : memref<512x512xbf16, #tpu.memory_space<vmem>>, vector<512x512xbf16>
      %cst = arith.constant dense<0.000000e+00> : vector<16x512xf32>
      %38 = tpu.matmul %36, %37, %cst {dimension_numbers = #tpu.dot_dimension_numbers<[1], [1], [0], [0], [0, 0, 1, 0], [], []>} : vector<16x512xbf16>, vector<512x512xbf16>, vector<16x512xf32> -> vector<16x512xf32>
      %c0_24 = arith.constant 0 : index
      %c0_25 = arith.constant 0 : index
      %c0_26 = arith.constant 0 : index
      %39 = vector.load %arg11[%c0_24, %c0_25, %c0_26] : memref<1x16x512xf32, #tpu.memory_space<vmem>>, vector<1x16x512xf32>
      %40 = vector.shape_cast %39 : vector<1x16x512xf32> to vector<16x512xf32>
      %41 = vector.shape_cast %38 : vector<16x512xf32> to vector<1x16x512xf32>
      tpu.vector_store %arg11[%c0_24, %c0_25, %c0_26], %41 {strides = array<i32>} : memref<1x16x512xf32, #tpu.memory_space<vmem>>, vector<1x16x512xf32>,
    } else {
    }
    return
  }
  func.func @transform_0(%arg0: i32, %arg1: i32, %arg2: i32) -> (i32, i32, i32) {
    %c0_i32 = arith.constant 0 : i32
    %c0_i32_0 = arith.constant 0 : i32
    return %arg0, %arg1, %c0_i32 : i32, i32, i32
  }
  func.func @transform_1(%arg0: i32, %arg1: i32, %arg2: i32) -> (i32, i32, i32) {
    %c0_i32 = arith.constant 0 : i32
    %c0_i32_0 = arith.constant 0 : i32
    return %arg0, %arg2, %c0_i32 : i32, i32, i32
  }
  func.func @transform_2(%arg0: i32, %arg1: i32, %arg2: i32) -> (i32, i32) {
    %c0_i32 = arith.constant 0 : i32
    %c0_i32_0 = arith.constant 0 : i32
    %c0_i32_1 = arith.constant 0 : i32
    return %c0_i32, %c0_i32_0 : i32, i32
  }
  func.func @transform_3(%arg0: i32, %arg1: i32, %arg2: i32) -> (i32, i32) {
    %c0_i32 = arith.constant 0 : i32
    %c0_i32_0 = arith.constant 0 : i32
    %c0_i32_1 = arith.constant 0 : i32
    return %c0_i32, %c0_i32_0 : i32, i32
  }
  func.func @transform_4(%arg0: i32, %arg1: i32, %arg2: i32) -> (i32, i32) {
    %c0_i32 = arith.constant 0 : i32
    %c0_i32_0 = arith.constant 0 : i32
    return %arg1, %c0_i32 : i32, i32
  }
  func.func @transform_5(%arg0: i32, %arg1: i32, %arg2: i32) -> (i32, i32) {
    %c0_i32 = arith.constant 0 : i32
    %c0_i32_0 = arith.constant 0 : i32
    return %arg1, %c0_i32 : i32, i32
  }
  func.func @transform_6(%arg0: i32, %arg1: i32, %arg2: i32) -> (i32, i32) {
    %c0_i32 = arith.constant 0 : i32
    %c0_i32_0 = arith.constant 0 : i32
    return %arg2, %c0_i32 : i32, i32
  }
  func.func @transform_7(%arg0: i32, %arg1: i32, %arg2: i32) -> (i32, i32) {
    %c0_i32 = arith.constant 0 : i32
    %c0_i32_0 = arith.constant 0 : i32
    return %arg2, %c0_i32 : i32, i32
  }
  func.func @transform_8(%arg0: i32, %arg1: i32, %arg2: i32) -> (i32, i32, i32) {
    %c0_i32 = arith.constant 0 : i32
    %c0_i32_0 = arith.constant 0 : i32
    return %arg0, %arg1, %c0_i32 : i32, i32, i32
  }
}

</mosaic_0001>

<bundles_post_ra>
// kernel: tpu_custom_call.1
= control target key start
LH: loop header
LB: loop body
LE: loop exit
PB: predicated region body
PF: predicated region fallthrough
CT: control target
= control target key end

     0   :  { %s7321_s0 = inlined_call_operand.hbm [shape: bf16[2,32,512], index: 0, kind: input, shape index: {}]   ;;  %s7322_s1 = inlined_call_operand.hbm [shape: bf16[2,32,512], index: 1, kind: input, shape index: {}]   ;;  %s7323_s2 = inlined_call_operand.hbm [shape: bf16[1024,512], index: 2, kind: input, shape index: {}]   ;;  %s7324_s3 = inlined_call_operand.hbm [shape: bf16[512,512], index: 3, kind: input, shape index: {}]   ;;  %s7325_s4 = inlined_call_operand.hbm [shape: f32[32,128], index: 4, kind: input, shape index: {}]   ;;  %s7326_s5 = inlined_call_operand.hbm [shape: f32[32,128], index: 5, kind: input, shape index: {}]   ;;  %s7327_s6 = inlined_call_operand.hbm [shape: f32[32,128], index: 6, kind: input, shape index: {}]   ;;  %s7328_s7 = inlined_call_operand.hbm [shape: f32[32,128], index: 7, kind: input, shape index: {}]   ;;  %s7329_s8 = inlined_call_operand.hbm [shape: f32[2,32,512], index: 8, kind: output, shape index: {}]  }
   0x1   :  { %7360 = sst [smem:[#allocation50_spill]] %s7321_s0 }
   0x2   :  { %7361 = sst [smem:[#allocation51_spill]] %s7322_s1 }
   0x3   :  { %7362 = sst [smem:[#allocation52_spill]] %s7323_s2 }
   0x4   :  { %7363 = sst [smem:[#allocation53_spill]] %s7324_s3 }
   0x5   :  { %7364 = sst [smem:[#allocation54_spill]] %s7325_s4 }
   0x6   :  { %7365 = sst [smem:[#allocation55_spill]] %s7326_s5 }
   0x7   :  { %7366 = sst [smem:[#allocation56_spill]] %s7327_s6 }
   0x8   :  { %7367 = sst [smem:[#allocation57_spill]] %s7328_s7 }
   0x9   :  { %7368 = sst [smem:[#allocation58_spill]] %s7329_s8 }
   0xa   :  { %13 = vsyncpa [#allocation7], 0 }
   0xb   :  { %15 = vsyncpa [#allocation7 + $0x1], 0 }
   0xc   :  { %16 = vsyncpa [#allocation10], 0 }
   0xd   :  { %18 = vsyncpa [#allocation10 + $0x1], 0 }
   0xe   :  { %19 = vsyncpa [#allocation13], 0 }
   0xf   :  { %20 = vsyncpa [#allocation8], 0 }
  0x10   :  { %22 = vsyncpa [#allocation8 + $0x1], 0  ;;  %s6504_s27 = smov 0   ;;  %s6506_s28 = smov 0  }
  0x11   :  { %s6508_s29 = smov 0   ;;  %s6510_s30 = smov 0  }
  0x12   :  { %s6512_s9 = smov 0   ;;  %s6514_s10 = smov 0  }
  0x13   :  { %s6516_s11 = smov 0   ;;  %s6518_s12 = smov 0  }
  0x14   :  { %s6520_s13 = smov 0   ;;  %s6522_s14 = smov 0  }
  0x15   :  { %s6524_s15 = smov 0   ;;  %s6526_s16 = smov 0  }
  0x16   :  { %s6528_s17 = smov 0   ;;  %s6530_s18 = smov 0  }
  0x17   :  { %s6532_s19 = smov 0   ;;  %s6534_s20 = smov 0  }
  0x18   :  { %s6536_s21 = smov 0   ;;  %s6538_s22 = smov 0  }
  0x19   :  { %s6540_s23 = smov 0  }
  0x1a LB: > { %7369 = sst [smem:[#allocation28_spill]] %s6356_s27  ;;  %s6600_s24 = sadd.s32 4294967295, %s6428_s23   ;;  %s6428_s23 = sphi %s6540_s23, %s28_s23   ;;  %s6424_s22 = sphi %s6538_s22, %s7484_s22   ;;  %s6420_s21 = sphi %s6536_s21, %s7483_s21   ;;  %s6416_s20 = sphi %s6534_s20, %s7482_s20   ;;  %s6412_s19 = sphi %s6532_s19, %s7469_s19   ;;  %s6408_s18 = sphi %s6530_s18, %s7481_s18   ;;  %s6404_s17 = sphi %s6528_s17, %s7480_s17   ;;  %s6400_s16 = sphi %s6526_s16, %s7468_s16   ;;  %s6396_s15 = sphi %s6524_s15, %s7467_s15   ;;  %s6392_s14 = sphi %s6522_s14, %s7466_s14   ;;  %s6388_s13 = sphi %s6520_s13, %s7465_s13   ;;  %s6384_s12 = sphi %s6518_s12, %s7479_s12   ;;  %s6380_s11 = sphi %s6516_s11, %s7478_s11   ;;  %s6376_s10 = sphi %s6514_s10, %s7477_s10   ;;  %s6372_s9 = sphi %s6512_s9, %s7476_s9   ;;  %s6368_s30 = sphi %s6510_s30, %s7474_s30   ;;  %s6364_s29 = sphi %s6508_s29, %s7473_s29   ;;  %s6360_s28 = sphi %s6506_s28, %s7462_s28   ;;  %s6356_s27 = sphi %s6504_s27, %s7461_s27  }
  0x1b   : > { %7370 = sst [smem:[#allocation29_spill]] %s6360_s28  ;;  %p4583_p0 = scmp.ge.s32.totalorder %s6428_s23, 1 }
  0x1c   : > { %7371 = sst [smem:[#allocation30_spill]] %s6364_s29  ;;  %p7340_p1 = scmp.eq.s32.totalorder %s6600_s24, 0 }
  0x1d   : > { %7372 = sst [smem:[#allocation31_spill]] %s6388_s13  ;;  %p282_p2 = scmp.lt.s32.totalorder %s6428_s23, 9 }
  0x1e   : > { %7373 = sst [smem:[#allocation32_spill]] %s6392_s14  ;;  %s6430_s26 = smov [#allocation11]  }
  0x1f   : > { %7374 = sst [smem:[#allocation33_spill]] %s6396_s15  ;;  %p6605_p3 = pnand %p4583_p0, %p282_p2 }
  0x20   : > { %7375 = sst [smem:[#allocation34_spill]] %s6400_s16  ;;  %s294_s8 = sshll.u32 %s6430_s26, 4  ;;  %s295_s8 = int_to_ptr.vmem [resolvable:$true] %s294_s8 }
  0x21   : > { %7376 = sst [smem:[#allocation35_spill]] %s6404_s17  ;;  %p5140_p4 = pneg %p6605_p3 }
  0x22   : > { %7377 = sst [smem:[#allocation36_spill]] %s6408_s18  ;;  %s6007_s17 = scalar_lea.vmem %s295_s8, 32768 }
  0x23   : > { %7378 = sst [smem:[#allocation37_spill]] %s6412_s19  ;;  %p6613_p5 = pnand %p5140_p4, %p7340_p1 }
  0x24   : > { %7379 = sst [smem:[#allocation38_spill]] %s6424_s22  ;;  %p6008_p7 = scmp.ne.s32.totalorder %s295_s8, %s6007_s17 }
  0x25   : > { %s7380_s25 = scalar_select %p6605_p3, 1, 0 }
  0x26   : > { %s7382_s19 = scalar_select %p6613_p5, 1, 0 }
  0x27   : > { %7381 = sst [smem:[#allocation39_spill]] %s7380_s25  ;;  %p7339_p6 = pneg %p6613_p5 }
  0x28   : > { %7383 = sst [smem:[#allocation40_spill]] %s7382_s19  ;;  %p6015_p10 = scmp.lt.s32.totalorder %s295_s8, %s295_s8 }
  0x29   : > { %p6010_p8 = pnand %p6008_p7, %p7339_p6  ;;  %p6016_p11 = scmp.lt.s32.totalorder %s6007_s17, %s6007_s17 }
  0x2b   : > { %p6011_p9 = pneg %p6010_p8  ;;  %p6017_p12 = por %p6016_p11, %p6015_p10 }
  0x2d   : > { %p6018_p13 = pnand %p6017_p12, %p6011_p9 }
  0x2f   : > { %6021 = shalt.err (!%p6018_p13)
}
  0x30   : > { %s7335_s26 = smov 256   ;;  %s7337_s17 = smov 16  }
  0x31   : > { %s7384_s2 = sld [smem:[#allocation52_spill]]  ;;  %s4582_s7 = sadd.s32 4294967294, %s6428_s23  }
  0x32   : > { %s40_s6 = sadd.s32 1, %s6416_s20  ;;  %s43_s27 = sadd.s32 1, %s6420_s21 }
  0x33   : > { %p41_p0 = scmp.ge.s32.totalorder %s40_s6, 2  ;;  %s47_s28 = sadd.s32 1, %s6424_s22 }
  0x34   : > { %p63_p2 = scmp.ne.s32.totalorder %s6400_s16, %s6396_s15  ;;  %p7355_p4 = scmp.eq.s32.totalorder %s6428_s23, 0 }
  0x35   : > { %s7486_s6 = smov (%p41_p0, %s40_s6), 0  ;;  %s7488_s27 = smov (!%p41_p0, %s43_s27), %s6420_s21 }
  0x36   : > { %7385 = sst [smem:[#allocation41_spill]] %s7486_s6  ;;  %p69_p7 = scmp.ne.s32.totalorder %s6396_s15, %s6392_s14 }
  0x37   : > { %5143 = dma.hbm_to_vmem [thread:$0]  (!%p6613_p5), %s7384_s2, 32768, %s295_s8, [#allocation10], %s7335_s26, %s7335_s26, %s7337_s17  }
  0x38   : > { %p45_p8 = scmp.ge.s32.totalorder %s7488_s27, 2  ;;  %s6645_s8 = ssub.s32 %s6416_s20, %s7486_s6 }
  0x39   : > { %p6652_p9 = por %p7355_p4, %p63_p2  ;;  %p6661_p10 = por %p7340_p1, %p69_p7 }
  0x3a   : > { %s7490_s27 = smov (%p45_p8, %s7488_s27), 0  ;;  %s7492_s28 = smov (!%p45_p8, %s47_s28), %s6424_s22 }
  0x3b   : > { %s7387_s25 = scalar_select %p6661_p10, 1, 0 }
  0x3c   : > { %7389 = sst [smem:[#allocation43_spill]] %s7490_s27  ;;  %s7390_s26 = smov %s7490_s27 }
  0x3d   : > { %7388 = sst [smem:[#allocation42_spill]] %s7387_s25  ;;  %s6670_s17 = ssub.s32 %s6420_s21, %s7390_s26 }
  0x3e   : > { %p49_p12 = scmp.ge.s32.totalorder %s7492_s28, 2  ;;  %p269_p0 = scmp.eq.s32.totalorder %s6600_s24, 7 }
  0x3f   : > { %p275_p6 = scmp.eq.s32.totalorder %s4582_s7, 7  ;;  %p7354_p11 = scmp.lt.s32.totalorder %s6428_s23, 8 }
  0x40   : > { %s7494_s28 = smov (%p49_p12, %s7492_s28), 0  ;;  %p6680_p8 = por %p269_p0, %p63_p2 }
  0x41   : > { %7391 = sst [smem:[#allocation44_spill]] %s7494_s28  ;;  %s7392_s29 = smov %s7494_s28 }
  0x42   : > { %s7393_s27 = scalar_select %p6680_p8, 1, 0 }
  0x43   : > { %p6687_p1 = por %p275_p6, %p69_p7  ;;  %s51_s26 = ssub.s32 %s6424_s22, %s7392_s29 }
  0x44   : > { %7394 = sst [smem:[#allocation45_spill]] %s7393_s27  ;;  %s53_s6 = sor.u32 %s6670_s17, %s51_s26 }
  0x45   : > { %s7395_s2 = scalar_select %p6687_p1, 1, 0 }
  0x46   : > { %s81_s7 = sor.u32 %s6645_s8, %s51_s26  ;;  %p54_p12 = scmp.eq.s32.totalorder %s53_s6, 0 }
  0x47   : > { %7396 = sst [smem:[#allocation46_spill]] %s7395_s2  ;;  %p6696_p13 = scmp.eq.s32.totalorder %s81_s7, 0 }
  0x48   : > { %s323_s14 = sand.u32 1, %s6400_s16   ;;  %s7398_s25 = sadd.s32 1, %s6400_s16 }
  0x49   : > { %s6705_s15 = scalar_select %p54_p12, %s6400_s16, %s7398_s25  }
  0x4a   : > { %s4587_s3 = sshll.u32 %s323_s14, 5  ;;  %s5039_s2 = sshll.u32 %s6420_s21, 3 }
  0x4b   : > { %7399 = sst [smem:[#allocation47_spill]] %s6705_s15  ;;  %s4590_s29 = sshll.u32 %s6424_s22, 4 }
  0x4c   : > { %s325_s19 = scalar_lea.vmem [#allocation6], %s4587_s3  ;;  %s332_s4 = sadd.s32 %s5039_s2, %s4590_s29 }
  0x4d   : > { %s335_s5 = sshll.u32 %s325_s19, 4  ;;  %s4591_s26 = sshll.u32 %s332_s4, 6  ;;  %s336_s5 = int_to_ptr.vmem [resolvable:$true] %s335_s5 }
  0x4e   : > { %p6715_p6 = pnand %p7354_p11, %p6652_p9  ;;  %s7401_s0 = sld [smem:[#allocation50_spill]] }
  0x4f   : > { %s5040_s14 = sshll.u32 %s6416_s20, 3  ;;  %s7402_s15 = sand.u32 1, %s6428_s23  }
  0x50   : > { %s6725_s16 = scalar_lea.sflag [#allocation7], %s7402_s15  ;;  %p6024_p2 = pneg %p6715_p6 }
  0x51   : > { %s6035_s2 = scalar_lea.vmem %s336_s5, 512  ;;  %s6433_s3 = smov [#allocation6]  }
  0x52   : > { %p6036_p7 = scmp.ne.s32.totalorder %s336_s5, %s6035_s2  ;;  %s6040_s4 = sshll.u32 %s6433_s3, 4  ;;  %s6041_s4 = int_to_ptr.vmem [resolvable:$false] %s6040_s4 }
  0x53   : > { %s6042_s19 = scalar_lea.vmem %s6041_s4, 1024  ;;  %p6043_p9 = scmp.lt.s32.totalorder %s336_s5, %s6041_s4 }
  0x54   : > { %s334_s25 = scalar_lea.hbm %s7401_s0, %s4591_s26  ;;  %p6038_p0 = pnand %p6036_p7, %p6024_p2 }
  0x55   : > { %p6044_p11 = scmp.lt.s32.totalorder %s6042_s19, %s6035_s2 }
  0x56   : > { %p6039_p12 = pneg %p6038_p0 }
  0x57   : > { %p6045_p4 = por %p6044_p11, %p6043_p9 }
  0x59   : > { %p6046_p1 = pnand %p6045_p4, %p6039_p12 }
  0x5b   : > { %6049 = shalt.err (!%p6046_p1)
}
  0x5c   : > { %s7403_s18 = smov 16   ;;  %s7404_s15 = smov 256  }
  0x5d   : > { %5150 = dma.hbm_to_vmem [thread:$0]  (!%p6715_p6), %s334_s25, 512, %s336_s5, %s6725_s16, %s7404_s15, %s7404_s15, %s7403_s18  }
  0x5e   : > { %s356_s27 = sadd.s32 %s5040_s14, %s4590_s29  ;;  %s7405_s1 = sld [smem:[#allocation51_spill]] }
  0x5f   : > { %s4596_s26 = sshll.u32 %s356_s27, 6  ;;  %s84_s3 = sadd.s32 1, %s6388_s13 }
  0x60   : > { %s6746_s4 = scalar_select %p6696_p13, %s6388_s13, %s84_s3  }
  0x61   : > { %p91_p1 = scmp.ne.s32.totalorder %s6388_s13, %s6384_s12  ;;  %p97_p4 = scmp.ne.s32.totalorder %s6384_s12, %s6380_s11 }
  0x62   : > { %7406 = sst [smem:[#allocation48_spill]] %s6746_s4  ;;  %s347_s19 = sand.u32 1, %s6388_s13  }
  0x63   : > { %p7407_p11 = scmp.eq.s32.totalorder %s6428_s23, 0  ;;  %p7408_p7 = scmp.eq.s32.totalorder %s6600_s24, 0 }
  0x64   : > { %s6740_s2 = scalar_lea.hbm %s7405_s1, %s4596_s26  ;;  %s4592_s29 = sshll.u32 %s347_s19, 5 }
  0x65   : > { %p93_p2 = por %p91_p1, %p7407_p11  ;;  %p6757_p6 = por %p97_p4, %p7408_p7 }
  0x66   : > { %p7410_p0 = scmp.lt.s32.totalorder %s6428_s23, 8  ;;  %s349_s28 = scalar_lea.vmem [#allocation9], %s4592_s29 }
  0x67   : > { %s359_s14 = sshll.u32 %s349_s28, 4  ;;  %s7412_s27 = sand.u32 1, %s6428_s23   ;;  %s360_s14 = int_to_ptr.vmem [resolvable:$true] %s359_s14 }
  0x68   : > { %p6763_p12 = pnand %p7410_p0, %p93_p2  ;;  %s6769_s11 = scalar_lea.sflag [#allocation10], %s7412_s27 }
  0x69   : > { %s6063_s26 = scalar_lea.vmem %s360_s14, 512  ;;  %s6434_s6 = smov [#allocation9]  }
  0x6a   : > { %p6052_p13 = pneg %p6763_p12  ;;  %p6064_p9 = scmp.ne.s32.totalorder %s360_s14, %s6063_s26 }
  0x6b   : > { %s6068_s7 = sshll.u32 %s6434_s6, 4  ;;  %s6069_s7 = int_to_ptr.vmem [resolvable:$false] %s6068_s7 }
  0x6c   : > { %p6066_p1 = pnand %p6064_p9, %p6052_p13  ;;  %s6070_s3 = scalar_lea.vmem %s6069_s7, 1024 }
  0x6d   : > { %p6071_p11 = scmp.lt.s32.totalorder %s360_s14, %s6069_s7  ;;  %p6072_p2 = scmp.lt.s32.totalorder %s6070_s3, %s6063_s26 }
  0x6e   : > { %p6067_p4 = pneg %p6066_p1 }
  0x6f   : > { %p6073_p7 = por %p6072_p2, %p6071_p11 }
  0x71   : > { %p6074_p0 = pnand %p6073_p7, %p6067_p4 }
  0x73   : > { %6077 = shalt.err (!%p6074_p0)
}
  0x74   : > { %5153 = dma.hbm_to_vmem [thread:$0]  (!%p6763_p12), %s6740_s2, 512, %s360_s14, %s6769_s11, %s7404_s15, %s7404_s15, %s7403_s18  }
  0x75   : > { %s152_s19 = sadd.s32 1, %s6376_s10  ;;  %p7413_p13 = scmp.eq.s32.totalorder %s6670_s17, 0 }
  0x76   : > { %p159_p9 = scmp.ne.s32.totalorder %s6376_s10, %s6372_s9  ;;  %p165_p1 = scmp.ne.s32.totalorder %s6372_s9, %s6368_s30 }
  0x77   : > { %s6784_s29 = scalar_select %p7413_p13, %s6376_s10, %s152_s19  }
  0x78   : > { %s371_s25 = sand.u32 1, %s6376_s10   ;;  %s5041_s28 = sshll.u32 %s6420_s21, 8 }
  0x79   : > { %7414 = sst [smem:[#allocation49_spill]] %s6784_s29  ;;  %p7415_p4 = scmp.eq.s32.totalorder %s6428_s23, 0 }
  0x7a   : > { %p7416_p2 = scmp.eq.s32.totalorder %s6600_s24, 0  ;;  %s4597_s26 = sshll.u32 %s371_s25, 4 }
  0x7b   : > { %p161_p11 = por %p159_p9, %p7415_p4  ;;  %s7418_s2 = sld [smem:[#allocation54_spill]] }
  0x7c   : > { %p6796_p7 = por %p165_p1, %p7416_p2  ;;  %p7419_p12 = scmp.lt.s32.totalorder %s6428_s23, 8 }
  0x7d   : > { %s373_s30 = scalar_lea.vmem [#allocation14], %s4597_s26  ;;  %s6435_s25 = smov [#allocation14]  }
  0x7e   : > { %s7417_s27 = scalar_select %p6796_p7, 1, 0 }
  0x7f   : > { %p6807_p0 = pnand %p7419_p12, %p161_p11  ;;  %s380_s3 = sshll.u32 %s373_s30, 4  ;;  %s381_s3 = int_to_ptr.vmem [resolvable:$true] %s380_s3 }
  0x80   : > { %s6091_s19 = scalar_lea.vmem %s381_s3, 256  ;;  %s6096_s6 = sshll.u32 %s6435_s25, 4  ;;  %s6097_s6 = int_to_ptr.vmem [resolvable:$false] %s6096_s6 }
  0x81   : > { %s379_s14 = scalar_lea.hbm %s7418_s2, %s5041_s28  ;;  %p6080_p13 = pneg %p6807_p0 }
  0x82   : > { %p6092_p9 = scmp.ne.s32.totalorder %s381_s3, %s6091_s19  ;;  %s6098_s7 = scalar_lea.vmem %s6097_s6, 512 }
  0x83   : > { %p6099_p11 = scmp.lt.s32.totalorder %s381_s3, %s6097_s6  ;;  %p6100_p2 = scmp.lt.s32.totalorder %s6098_s7, %s6091_s19 }
  0x84   : > { %p6094_p1 = pnand %p6092_p9, %p6080_p13 }
  0x85   : > { %p6101_p12 = por %p6100_p2, %p6099_p11 }
  0x86   : > { %p6095_p4 = pneg %p6094_p1 }
  0x88   : > { %p6102_p8 = pnand %p6101_p12, %p6095_p4 }
  0x8a   : > { %6105 = shalt.err (!%p6102_p8)
}
  0x8b   : > { %s6436_s2 = smov 128   ;;  %s6437_s30 = smov 8  }
  0x8c   : > { %5156 = dma.hbm_to_vmem [thread:$0]  (!%p6807_p0), %s379_s14, 256, %s381_s3, %s6725_s16, %s6436_s2, %s6436_s2, %s6437_s30  }
  0x8d   : > { %s7421_s1 = sld [smem:[#allocation55_spill]]  ;;  %s394_s19 = scalar_lea.vmem [#allocation15], %s4597_s26 }
  0x8e   : > { %s401_s7 = sshll.u32 %s394_s19, 4  ;;  %s6438_s4 = smov [#allocation15]   ;;  %s402_s7 = int_to_ptr.vmem [resolvable:$true] %s401_s7 }
  0x8f   : > { %s6119_s22 = scalar_lea.vmem %s402_s7, 256  ;;  %s6124_s13 = sshll.u32 %s6438_s4, 4  ;;  %s6125_s13 = int_to_ptr.vmem [resolvable:$false] %s6124_s13 }
  0x90   : > { %p6120_p8 = scmp.ne.s32.totalorder %s402_s7, %s6119_s22  ;;  %s6126_s29 = scalar_lea.vmem %s6125_s13, 512 }
  0x91   : > { %p6127_p4 = scmp.lt.s32.totalorder %s402_s7, %s6125_s13  ;;  %p6128_p11 = scmp.lt.s32.totalorder %s6126_s29, %s6119_s22 }
  0x92   : > { %p6122_p9 = pnand %p6120_p8, %p6080_p13 }
  0x93   : > { %s400_s6 = scalar_lea.hbm %s7421_s1, %s5041_s28  ;;  %p6129_p2 = por %p6128_p11, %p6127_p4 }
  0x94   : > { %p6123_p1 = pneg %p6122_p9 }
  0x96   : > { %p6130_p12 = pnand %p6129_p2, %p6123_p1 }
  0x98   : > { %6133 = shalt.err (!%p6130_p12)
}
  0x99   : > { %5159 = dma.hbm_to_vmem [thread:$0]  (!%p6807_p0), %s400_s6, 256, %s402_s7, %s6769_s11, %s6436_s2, %s6436_s2, %s6437_s30  }
  0x9a   : > { %s6439_s1 = smov [#allocation12]   ;;  %p7423_p8 = pneg %p6613_p5 }
  0x9b   : > { %s307_s28 = sshll.u32 %s6439_s1, 4  ;;  %s308_s28 = int_to_ptr.vmem [resolvable:$true] %s307_s28 }
  0x9c   : > { %s6145_s26 = scalar_lea.vmem %s308_s28, 16384  ;;  %p6153_p4 = scmp.lt.s32.totalorder %s308_s28, %s308_s28 }
  0x9d   : > { %p6146_p13 = scmp.ne.s32.totalorder %s308_s28, %s6145_s26  ;;  %p6154_p1 = scmp.lt.s32.totalorder %s6145_s26, %s6145_s26 }
  0x9f   : > { %p6148_p9 = pnand %p6146_p13, %p7423_p8  ;;  %p6155_p11 = por %p6154_p1, %p6153_p4 }
  0xa1   : > { %p6149_p7 = pneg %p6148_p9 }
  0xa3   : > { %p6156_p2 = pnand %p6155_p11, %p6149_p7 }
  0xa5   : > { %6159 = shalt.err (!%p6156_p2)
}
  0xa6   : > { %s7424_s4 = sld [smem:[#allocation53_spill]]  ;;  %p7428_p0 = scmp.eq.s32.totalorder %s6645_s8, 0 }
  0xa7   : > { %s7425_s29 = sld [smem:[#allocation30_spill]]  ;;  %p7429_p12 = scmp.eq.s32.totalorder %s6428_s23, 0 }
  0xa8   : > { %s7426_s14 = sld [smem:[#allocation29_spill]]  ;;  %s5043_s19 = sshll.u32 %s6416_s20, 8 }
  0xa9   : > { %s7427_s17 = sld [smem:[#allocation28_spill]]  ;;  %p7430_p9 = scmp.eq.s32.totalorder %s6600_s24, 0 }
  0xaa   : > { %s7432_s13 = sld [smem:[#allocation56_spill]] }
  0xac   : > { %5146 = dma.hbm_to_vmem [thread:$0]  (!%p6613_p5), %s7424_s4, 16384, %s308_s28, [#allocation13], %s7404_s15, %s7404_s15, %s7403_s18  }
  0xad   : > { %s204_s3 = sadd.s32 1, %s7425_s29  ;;  %s413_s6 = sand.u32 1, %s7425_s29  }
  0xae   : > { %p211_p7 = scmp.ne.s32.totalorder %s7425_s29, %s7426_s14  ;;  %s4603_s0 = sshll.u32 %s413_s6, 4 }
  0xaf   : > { %s6853_s25 = scalar_select %p7428_p0, %s7425_s29, %s204_s3  }
  0xb0   : > { %p213_p13 = por %p211_p7, %p7429_p12  ;;  %p217_p8 = scmp.ne.s32.totalorder %s7426_s14, %s7427_s17 }
  0xb1   : > { %s421_s18 = scalar_lea.hbm %s7432_s13, %s5043_s19  ;;  %s415_s15 = scalar_lea.vmem [#allocation16], %s4603_s0 }
  0xb2   : > { %p6863_p4 = por %p217_p8, %p7430_p9  ;;  %s422_s28 = sshll.u32 %s415_s15, 4  ;;  %s423_s28 = int_to_ptr.vmem [resolvable:$true] %s422_s28 }
  0xb3   : > { %p7433_p5 = scmp.lt.s32.totalorder %s6428_s23, 8  ;;  %s7435_s29 = sld [smem:[#allocation57_spill]] }
  0xb4   : > { %s6173_s17 = scalar_lea.vmem %s423_s28, 256  ;;  %s6440_s3 = smov [#allocation16]  }
  0xb5   : > { %p6872_p1 = pnand %p7433_p5, %p213_p13  ;;  %p6174_p2 = scmp.ne.s32.totalorder %s423_s28, %s6173_s17 }
  0xb6   : > { %s6178_s6 = sshll.u32 %s6440_s3, 4  ;;  %s6179_s6 = int_to_ptr.vmem [resolvable:$false] %s6178_s6 }
  0xb7   : > { %p6162_p11 = pneg %p6872_p1  ;;  %s6180_s1 = scalar_lea.vmem %s6179_s6, 512 }
  0xb8   : > { %p6181_p12 = scmp.lt.s32.totalorder %s423_s28, %s6179_s6  ;;  %p6182_p13 = scmp.lt.s32.totalorder %s6180_s1, %s6173_s17 }
  0xb9   : > { %s6879_s14 = scalar_lea.hbm %s7435_s29, %s5043_s19  ;;  %p6176_p7 = pnand %p6174_p2, %p6162_p11 }
  0xba   : > { %p6183_p8 = por %p6182_p13, %p6181_p12 }
  0xbb   : > { %p6177_p0 = pneg %p6176_p7 }
  0xbd   : > { %p6184_p9 = pnand %p6183_p8, %p6177_p0 }
  0xbf   : > { %6187 = shalt.err (!%p6184_p9)
}
  0xc0   : > { %5162 = dma.hbm_to_vmem [thread:$0]  (!%p6872_p1), %s421_s18, 256, %s423_s28, %s6725_s16, %s6436_s2, %s6436_s2, %s6437_s30  }
  0xc1   : > { %s436_s19 = scalar_lea.vmem [#allocation17], %s4603_s0  ;;  %s6441_s15 = smov [#allocation17]  }
  0xc2   : > { %s443_s26 = sshll.u32 %s436_s19, 4  ;;  %s6206_s22 = sshll.u32 %s6441_s15, 4  ;;  %s444_s26 = int_to_ptr.vmem [resolvable:$true] %s443_s26  ;;  %s6207_s22 = int_to_ptr.vmem [resolvable:$false] %s6206_s22 }
  0xc3   : > { %s6201_s13 = scalar_lea.vmem %s444_s26, 256  ;;  %s6208_s4 = scalar_lea.vmem %s6207_s22, 512 }
  0xc4   : > { %p6202_p5 = scmp.ne.s32.totalorder %s444_s26, %s6201_s13  ;;  %p6209_p0 = scmp.lt.s32.totalorder %s444_s26, %s6207_s22 }
  0xc5   : > { %p6210_p12 = scmp.lt.s32.totalorder %s6208_s4, %s6201_s13 }
  0xc6   : > { %p6204_p2 = pnand %p6202_p5, %p6162_p11 }
  0xc7   : > { %p6211_p13 = por %p6210_p12, %p6209_p0 }
  0xc8   : > { %p6205_p7 = pneg %p6204_p2 }
  0xca   : > { %p6212_p8 = pnand %p6211_p13, %p6205_p7 }
  0xcc   : > { %6215 = shalt.err (!%p6212_p8)
}
  0xcd   : > { %5165 = dma.hbm_to_vmem [thread:$0]  (!%p6872_p1), %s6879_s14, 256, %s444_s26, %s6769_s11, %s6436_s2, %s6436_s2, %s6437_s30  }
  0xce   : > { %455 = sbr.rel (%p6605_p3) target bundleno = 2550 (0x9f6), region = 52  ;;  %s7437_s0 = sld [smem:[#allocation33_spill]] (!%p6605_p3) }
  0xcf   : > { %s457_s28 = sand.u32 (!%p6605_p3), 1, %s6600_s24  }
  0xd0   : > { %s458_s3 = scalar_lea.sflag (!%p6605_p3), [#allocation7], %s457_s28 }
  0xd4   : > { %s6906_s29 = sand.u32 1, %s7437_s0  }
  0xd5   : > { %s4610_s17 = sshll.u32 %s6906_s29, 5 }
  0xd6   : > { %s6909_s6 = scalar_lea.vmem [#allocation6], %s4610_s17 }
  0xd7   : > { %6319 = dma.done.wait (%p6661_p10), %s458_s3, 512  }
  0xd8   : > { %6321 = vsyncadd (%p6661_p10), %s458_s3, 4294966784  ;;  %s468_s11 = sand.u32 1, %s6384_s12   ;;  %s467_s30 = scalar_lea.sflag [#allocation10], %s457_s28 }
  0xd9   : > { %s4611_s2 = sshll.u32 %s468_s11, 5 }
  0xda   : > { %s6916_s8 = scalar_lea.vmem [#allocation9], %s4611_s2 }
  0xdb   : > { %6323 = dma.done.wait (%p6757_p6), %s467_s30, 512  }
  0xdc   : > { %6325 = vsyncadd (%p6757_p6), %s467_s30, 4294966784  ;;  %p7439_p3 = scmp.eq.s32.totalorder %s6600_s24, 0 }
  0xde   : > { %6327 = dma.done.wait (%p7439_p3), [#allocation10], 32768   ;;  %p7440_p1 = pmov %p7439_p3 }
  0xe0   : > { %6329 = vsyncadd (%p7440_p1), [#allocation10], 4294934528  ;;  %p7441_p10 = pmov %p7440_p1 }
  0xe1   : > { %p7442_p11 = pmov %p7440_p1 }
  0xe2   : > { %6331 = dma.done.wait (%p7441_p10), [#allocation13], 16384  }
  0xe3   : > { %6333 = vsyncadd (%p7442_p11), [#allocation13], 4294950912  ;;  %s485_s14 = sand.u32 1, %s6372_s9   ;;  %p7443_p6 = scmp.ne.s32.totalorder %s7417_s27, 0 }
  0xe4   : > { %s6931_s1 = sshll.u32 %s485_s14, 4 }
  0xe5   : > { %s487_s5 = scalar_lea.vmem [#allocation14], %s6931_s1 }
  0xe6   : > { %6335 = dma.done.wait (%p7443_p6), %s458_s3, 256  }
  0xe7   : > { %6337 = vsyncadd (%p7443_p6), %s458_s3, 4294967040  ;;  %s496_s19 = scalar_lea.vmem [#allocation15], %s6931_s1 }
  0xe8   : > { %6339 = dma.done.wait (%p7443_p6), %s467_s30, 256  }
  0xe9   : > { %6341 = vsyncadd (%p7443_p6), %s467_s30, 4294967040  ;;  %s7444_s24 = sld [smem:[#allocation29_spill]] }
  0xef   : > { %s503_s26 = sand.u32 1, %s7444_s24  }
  0xf0   : > { %s6944_s13 = sshll.u32 %s503_s26, 4 }
  0xf1   : > { %s505_s15 = scalar_lea.vmem [#allocation16], %s6944_s13 }
  0xf2   : > { %6343 = dma.done.wait (%p6863_p4), %s458_s3, 256  }
  0xf3   : > { %6345 = vsyncadd (%p6863_p4), %s458_s3, 4294967040  ;;  %s514_s22 = scalar_lea.vmem [#allocation17], %s6944_s13 }
  0xf4   : > { %6347 = dma.done.wait (%p6863_p4), %s467_s30, 256  }
  0xf5   : > { %6349 = vsyncadd (%p6863_p4), %s467_s30, 4294967040  ;;  %s7445_s27 = sld [smem:[#allocation36_spill]]  ;;  %s4618_s16 = sshll.u32 %s6906_s29, 6 }
  0xf6   : > { %s7446_s4 = sld [smem:[#allocation35_spill]]  ;;  %s6959_s28 = scalar_lea.vmem [#allocation18], %s4618_s16 }
  0xfb   : > { %s4619_s0 = sshll.u32 %s7445_s27, 4 }
  0xfc   : > { %s4620_s18 = sshll.u32 %s7446_s4, 4  ;;  %p4621_p9 = scmp.ne.s32.totalorder %s7446_s4, 0 }
  0xfd   : > { %s6444_s7 = smov (!%p4621_p9), 64  }
  0xfe   : > { %585 = sbr.rel (%p4621_p9) target bundleno = 844 (0x34c), region = 88 }
 0x103   : > { %vm586_vm0 = vcmask 31744   ;;  %v6442_v0 = vmov -2.3819763e+38   ;;  %v6443_v1 = vmov 0.0   ;;  %v5350_v2 = vld [vmem:[#allocation11 + $0xe4] ss:$16 sps:$4 sm:$0xff]  }
 0x104   : > { %587 = vst.msk [vmem:[#allocation3] sm:$0xff] %vm586_vm0, %v6442_v0  ;;  %588 = vst.msk [vmem:[#allocation3 + $0x8] sm:$0xff] %vm586_vm0, %v6442_v0  ;;  %v5352_v3 = vld [vmem:[#allocation11 + $0xec] ss:$16 sps:$4 sm:$0xff]   ;;  %v5354_v4 = vld [vmem:[#allocation11 + $0xe0] ss:$16 sps:$4 sm:$0xff]   ;;  %1391 = vmatprep.subr.bf16.mxu0 %v5350_v2 }
 0x105   : > { %589 = vst.msk [vmem:[#allocation4] sm:$0xff] %vm586_vm0, %v6443_v1  ;;  %590 = vst.msk [vmem:[#allocation4 + $0x8] sm:$0xff] %vm586_vm0, %v6443_v1  ;;  %v5355_v5 = vld [vmem:[#allocation11 + $0xe8] ss:$16 sps:$4 sm:$0xff]   ;;  %v5356_v6 = vld [vmem:[#allocation11 + $0xc4] ss:$16 sps:$4 sm:$0xff]   ;;  %1434 = vmatprep.subr.bf16.mxu1 %v5352_v3  ;;  %1392 = vmatpush1.bf16.xpose.msra.mxu0 %v5354_v4 }
 0x106   : > { %591 = vst [vmem:[#allocation5 + $0x30] sm:$0xff] %v6443_v1  ;;  %592 = vst [vmem:[#allocation5] sm:$0xff] %v6443_v1  ;;  %v5358_v7 = vld [vmem:[#allocation11 + $0xcc] ss:$16 sps:$4 sm:$0xff]   ;;  %1435 = vmatpush1.bf16.xpose.msra.mxu1 %v5355_v5  ;;  %1393 = vmatprep.subr.bf16.mxu0 %v5356_v6  ;;  %v5360_v8 = vld [vmem:[#allocation11 + $0xc0] ss:$16 sps:$4 sm:$0xff]  }
 0x107   : > { %593 = vst [vmem:[#allocation5 + $0x18] sm:$0xff] %v6443_v1  ;;  %594 = vst [vmem:[#allocation5 + $0x10] sm:$0xff] %v6443_v1  ;;  %1436 = vmatprep.subr.bf16.mxu1 %v5358_v7  ;;  %v5361_v9 = vld [vmem:[#allocation11 + $0xc8] ss:$16 sps:$4 sm:$0xff]   ;;  %v5362_v10 = vld [vmem:[#allocation11 + $0xa4] ss:$16 sps:$4 sm:$0xff]  }
 0x108   : > { %595 = vst [vmem:[#allocation5 + $0x8] sm:$0xff] %v6443_v1  ;;  %596 = vst [vmem:[#allocation5 + $0x20] sm:$0xff] %v6443_v1  ;;  %v5364_v11 = vld [vmem:[#allocation11 + $0xac] ss:$16 sps:$4 sm:$0xff]   ;;  %v5366_v12 = vld [vmem:[#allocation11 + $0xa0] ss:$16 sps:$4 sm:$0xff]  }
 0x109   : > { %597 = vst [vmem:[#allocation5 + $0x28] sm:$0xff] %v6443_v1  ;;  %598 = vst [vmem:[#allocation5 + $0x38] sm:$0xff] %v6443_v1  ;;  %v5367_v13 = vld [vmem:[#allocation11 + $0xa8] ss:$16 sps:$4 sm:$0xff]   ;;  %v5368_v14 = vld [vmem:[#allocation11 + $0x84] ss:$16 sps:$4 sm:$0xff]  }
 0x10a   : > { %v5370_v15 = vld [vmem:[#allocation11 + $0x8c] ss:$16 sps:$4 sm:$0xff]   ;;  %v5372_v16 = vld [vmem:[#allocation11 + $0x80] ss:$16 sps:$4 sm:$0xff]   ;;  %v5373_v17 = vld [vmem:[#allocation11 + $0x88] ss:$16 sps:$4 sm:$0xff]  }
 0x10b   : > { %v5374_v18 = vld [vmem:[#allocation11 + $0x64] ss:$16 sps:$4 sm:$0xff]   ;;  %v5376_v19 = vld [vmem:[#allocation11 + $0x6c] ss:$16 sps:$4 sm:$0xff]   ;;  %v5378_v20 = vld [vmem:[#allocation11 + $0x60] ss:$16 sps:$4 sm:$0xff]  }
 0x10c   : > { %v5379_v21 = vld [vmem:[#allocation11 + $0x68] ss:$16 sps:$4 sm:$0xff]   ;;  %v5380_v22 = vld [vmem:[#allocation11 + $0x44] ss:$16 sps:$4 sm:$0xff]   ;;  %v5382_v23 = vld [vmem:[#allocation11 + $0x4c] ss:$16 sps:$4 sm:$0xff]  }
 0x10d   : > { %1394 = vmatpush1.bf16.xpose.msra.mxu0 %v5360_v8  ;;  %v5384_v24 = vld [vmem:[#allocation11 + $0x40] ss:$16 sps:$4 sm:$0xff]   ;;  %v5385_v25 = vld [vmem:[#allocation11 + $0x48] ss:$16 sps:$4 sm:$0xff]   ;;  %v5386_v26 = vld [vmem:[#allocation11 + $0x24] ss:$16 sps:$4 sm:$0xff]  }
 0x10e   : > { %1437 = vmatpush1.bf16.xpose.msra.mxu1 %v5361_v9  ;;  %1395 = vmatprep.subr.bf16.mxu0 %v5362_v10  ;;  %v5388_v27 = vld [vmem:[#allocation11 + $0x2c] ss:$16 sps:$4 sm:$0xff]   ;;  %v6963_v28 = vld [vmem:[%s6909_s6 + $0x4] ss:$16 sps:$4 sm:$0xff]   ;;  %v5390_v30 = vld [vmem:[#allocation11 + $0x20] ss:$16 sps:$4 sm:$0xff]  }
 0x10f   : > { %1438 = vmatprep.subr.bf16.mxu1 %v5364_v11  ;;  %v6966_v29 = vld [vmem:[%s6909_s6 + $0xc] ss:$16 sps:$4 sm:$0xff]   ;;  %1423 = vmatprep.mubr.bf16.mxu0 %v6963_v28  ;;  %v5391_v31 = vld [vmem:[#allocation11 + $0x28] ss:$16 sps:$4 sm:$0xff]   ;;  %v5392_v32 = vld [vmem:[#allocation11 + $0x4] ss:$16 sps:$4 sm:$0xff]  }
 0x110   : > { %1466 = vmatprep.mubr.bf16.mxu1 %v6966_v29  ;;  %v5394_v33 = vld [vmem:[#allocation11 + $0xc] ss:$16 sps:$4 sm:$0xff]   ;;  %v5396_v34 = vld [vmem:[#allocation11] ss:$16 sps:$4 sm:$0xff]   ;;  %v5397_v35 = vld [vmem:[#allocation11 + $0x8] ss:$16 sps:$4 sm:$0xff]  }
 0x111   : > { %v5398_v36 = vld [vmem:[#allocation11 + $0x1e4] ss:$16 sps:$4 sm:$0xff]   ;;  %v5400_v37 = vld [vmem:[#allocation11 + $0x1ec] ss:$16 sps:$4 sm:$0xff]   ;;  %v5402_v38 = vld [vmem:[#allocation11 + $0x1e0] ss:$16 sps:$4 sm:$0xff]  }
 0x112   : > { %v5403_v39 = vld [vmem:[#allocation11 + $0x1e8] ss:$16 sps:$4 sm:$0xff]   ;;  %v5404_v40 = vld [vmem:[#allocation11 + $0x1c4] ss:$16 sps:$4 sm:$0xff]   ;;  %v5406_v41 = vld [vmem:[#allocation11 + $0x1cc] ss:$16 sps:$4 sm:$0xff]  }
 0x113   : > { %v5408_v42 = vld [vmem:[#allocation11 + $0x1c0] ss:$16 sps:$4 sm:$0xff]   ;;  %v5409_v43 = vld [vmem:[#allocation11 + $0x1c8] ss:$16 sps:$4 sm:$0xff]   ;;  %v5410_v44 = vld [vmem:[#allocation11 + $0x1a4] ss:$16 sps:$4 sm:$0xff]  }
 0x114   : > { %v5412_v45 = vld [vmem:[#allocation11 + $0x1ac] ss:$16 sps:$4 sm:$0xff]   ;;  %v5414_v46 = vld [vmem:[#allocation11 + $0x1a0] ss:$16 sps:$4 sm:$0xff]   ;;  %v5415_v47 = vld [vmem:[#allocation11 + $0x1a8] ss:$16 sps:$4 sm:$0xff]  }
 0x115   : > { %1396 = vmatpush1.bf16.xpose.msra.mxu0 %v5366_v12  ;;  %v5416_v48 = vld [vmem:[#allocation11 + $0x184] ss:$16 sps:$4 sm:$0xff]   ;;  %v5418_v49 = vld [vmem:[#allocation11 + $0x18c] ss:$16 sps:$4 sm:$0xff]   ;;  %v5420_v50 = vld [vmem:[#allocation11 + $0x180] ss:$16 sps:$4 sm:$0xff]  }
 0x116   : > { %1439 = vmatpush1.bf16.xpose.msra.mxu1 %v5367_v13  ;;  %1397 = vmatprep.subr.bf16.mxu0 %v5368_v14  ;;  %v5421_v51 = vld [vmem:[#allocation11 + $0x188] ss:$16 sps:$4 sm:$0xff]   ;;  %v5422_v52 = vld [vmem:[#allocation11 + $0x164] ss:$16 sps:$4 sm:$0xff]   ;;  %v5424_v53 = vld [vmem:[#allocation11 + $0x16c] ss:$16 sps:$4 sm:$0xff]  }
 0x117   : > { %1440 = vmatprep.subr.bf16.mxu1 %v5370_v15  ;;  %v5426_v54 = vld [vmem:[#allocation11 + $0x160] ss:$16 sps:$4 sm:$0xff]   ;;  %v5427_v55 = vld [vmem:[#allocation11 + $0x168] ss:$16 sps:$4 sm:$0xff]   ;;  %v5428_v56 = vld [vmem:[#allocation11 + $0x144] ss:$16 sps:$4 sm:$0xff]  }
 0x118   : > { %v5430_v57 = vld [vmem:[#allocation11 + $0x14c] ss:$16 sps:$4 sm:$0xff]   ;;  %v5432_v58 = vld [vmem:[#allocation11 + $0x140] ss:$16 sps:$4 sm:$0xff]   ;;  %v5433_v59 = vld [vmem:[#allocation11 + $0x148] ss:$16 sps:$4 sm:$0xff]  }
 0x119   : > { %v5434_v60 = vld [vmem:[#allocation11 + $0x124] ss:$16 sps:$4 sm:$0xff]   ;;  %v5436_v61 = vld [vmem:[#allocation11 + $0x12c] ss:$16 sps:$4 sm:$0xff]   ;;  %v5438_v62 = vld [vmem:[#allocation11 + $0x120] ss:$16 sps:$4 sm:$0xff]  }
 0x11a   : > { %v5439_v63 = vld [vmem:[#allocation11 + $0x128] ss:$16 sps:$4 sm:$0xff]   ;;  %v5440_v0 = vld [vmem:[#allocation11 + $0x104] ss:$16 sps:$4 sm:$0xff]   ;;  %v5442_v1 = vld [vmem:[#allocation11 + $0x10c] ss:$16 sps:$4 sm:$0xff]  }
 0x11b   : > { %v5444_v2 = vld [vmem:[#allocation11 + $0x100] ss:$16 sps:$4 sm:$0xff]   ;;  %v5445_v3 = vld [vmem:[#allocation11 + $0x108] ss:$16 sps:$4 sm:$0xff]   ;;  %v5454_v4 = vld [vmem:[#allocation11 + $0x2e4] ss:$16 sps:$4 sm:$0xff]  }
 0x11c   : > { %v5457_v5 = vld [vmem:[#allocation11 + $0x2ec] ss:$16 sps:$4 sm:$0xff]   ;;  %v6971_v6 = vld [vmem:[%s6909_s6] ss:$16 sps:$4 sm:$0xff]   ;;  %v6974_v7 = vld [vmem:[%s6909_s6 + $0x8] ss:$16 sps:$4 sm:$0xff]  }
 0x11d   : > { %1398 = vmatpush1.bf16.xpose.msra.mxu0 %v5372_v16  ;;  %v5452_v8 = vld [vmem:[#allocation11 + $0x2e0] ss:$16 sps:$4 sm:$0xff]   ;;  %v5455_v9 = vld [vmem:[#allocation11 + $0x2e8] ss:$16 sps:$4 sm:$0xff]   ;;  %v5460_v10 = vld [vmem:[#allocation11 + $0x2c4] ss:$16 sps:$4 sm:$0xff]  }
 0x11e   : > { %1441 = vmatpush1.bf16.xpose.msra.mxu1 %v5373_v17  ;;  %1399 = vmatprep.subr.bf16.mxu0 %v5374_v18  ;;  %v5463_v11 = vld [vmem:[#allocation11 + $0x2cc] ss:$16 sps:$4 sm:$0xff]   ;;  %v5458_v12 = vld [vmem:[#allocation11 + $0x2c0] ss:$16 sps:$4 sm:$0xff]   ;;  %v5461_v13 = vld [vmem:[#allocation11 + $0x2c8] ss:$16 sps:$4 sm:$0xff]  }
 0x11f   : > { %1442 = vmatprep.subr.bf16.mxu1 %v5376_v19  ;;  %v5466_v14 = vld [vmem:[#allocation11 + $0x2a4] ss:$16 sps:$4 sm:$0xff]   ;;  %v5469_v15 = vld [vmem:[#allocation11 + $0x2ac] ss:$16 sps:$4 sm:$0xff]   ;;  %v5464_v16 = vld [vmem:[#allocation11 + $0x2a0] ss:$16 sps:$4 sm:$0xff]  }
 0x120   : > { %v5467_v17 = vld [vmem:[#allocation11 + $0x2a8] ss:$16 sps:$4 sm:$0xff]   ;;  %v5472_v18 = vld [vmem:[#allocation11 + $0x284] ss:$16 sps:$4 sm:$0xff]   ;;  %v5475_v19 = vld [vmem:[#allocation11 + $0x28c] ss:$16 sps:$4 sm:$0xff]  }
 0x125   : > { %1400 = vmatpush1.bf16.xpose.msra.mxu0 %v5378_v20  ;;  %v5470_v20 = vld [vmem:[#allocation11 + $0x280] ss:$16 sps:$4 sm:$0xff]  }
 0x126   : > { %1443 = vmatpush1.bf16.xpose.msra.mxu1 %v5379_v21  ;;  %1401 = vmatprep.subr.bf16.mxu0 %v5380_v22  ;;  %v5473_v21 = vld [vmem:[#allocation11 + $0x288] ss:$16 sps:$4 sm:$0xff]   ;;  %v5478_v22 = vld [vmem:[#allocation11 + $0x264] ss:$16 sps:$4 sm:$0xff]  }
 0x127   : > { %1444 = vmatprep.subr.bf16.mxu1 %v5382_v23  ;;  %v5481_v23 = vld [vmem:[#allocation11 + $0x26c] ss:$16 sps:$4 sm:$0xff]  }
 0x12d   : > { %1402 = vmatpush1.bf16.xpose.msra.mxu0 %v5384_v24  ;;  %v5476_v24 = vld [vmem:[#allocation11 + $0x260] ss:$16 sps:$4 sm:$0xff]  }
 0x12e   : > { %1445 = vmatpush1.bf16.xpose.msra.mxu1 %v5385_v25  ;;  %1403 = vmatprep.subr.bf16.mxu0 %v5386_v26  ;;  %v5479_v25 = vld [vmem:[#allocation11 + $0x268] ss:$16 sps:$4 sm:$0xff]   ;;  %v5484_v26 = vld [vmem:[#allocation11 + $0x244] ss:$16 sps:$4 sm:$0xff]  }
 0x12f   : > { %1446 = vmatprep.subr.bf16.mxu1 %v5388_v27  ;;  %v5487_v27 = vld [vmem:[#allocation11 + $0x24c] ss:$16 sps:$4 sm:$0xff]  }
 0x135   : > { %1404 = vmatpush1.bf16.xpose.msra.mxu0 %v5390_v30  ;;  %v5490_v30 = vld [vmem:[#allocation11 + $0x224] ss:$16 sps:$4 sm:$0xff]  }
 0x136   : > { %1447 = vmatpush1.bf16.xpose.msra.mxu1 %v5391_v31  ;;  %1405 = vmatprep.subr.bf16.mxu0 %v5392_v32  ;;  %v5493_v31 = vld [vmem:[#allocation11 + $0x22c] ss:$16 sps:$4 sm:$0xff]   ;;  %v5488_v32 = vld [vmem:[#allocation11 + $0x220] ss:$16 sps:$4 sm:$0xff]  }
 0x137   : > { %1448 = vmatprep.subr.bf16.mxu1 %v5394_v33  ;;  %v5491_v33 = vld [vmem:[#allocation11 + $0x228] ss:$16 sps:$4 sm:$0xff]  }
 0x13d   : > { %1406 = vmatpush1.bf16.xpose.msra.mxu0 %v5396_v34  ;;  %v5496_v34 = vld [vmem:[#allocation11 + $0x204] ss:$16 sps:$4 sm:$0xff]  }
 0x13e   : > { %1449 = vmatpush1.bf16.xpose.msra.mxu1 %v5397_v35  ;;  %1407 = vmatprep.subr.bf16.mxu0 %v5398_v36  ;;  %v5499_v35 = vld [vmem:[#allocation11 + $0x20c] ss:$16 sps:$4 sm:$0xff]   ;;  %v5494_v36 = vld [vmem:[#allocation11 + $0x200] ss:$16 sps:$4 sm:$0xff]  }
 0x13f   : > { %1450 = vmatprep.subr.bf16.mxu1 %v5400_v37  ;;  %v5497_v37 = vld [vmem:[#allocation11 + $0x208] ss:$16 sps:$4 sm:$0xff]  }
 0x145   : > { %1408 = vmatpush2.bf16.xpose.msra.mxu0 %v5402_v38  ;;  %v5502_v38 = vld [vmem:[#allocation11 + $0x3e4] ss:$16 sps:$4 sm:$0xff]  }
 0x146   : > { %1451 = vmatpush2.bf16.xpose.msra.mxu1 %v5403_v39  ;;  %1409 = vmatprep.subr.bf16.mxu0 %v5404_v40  ;;  %v5505_v39 = vld [vmem:[#allocation11 + $0x3ec] ss:$16 sps:$4 sm:$0xff]   ;;  %v5500_v40 = vld [vmem:[#allocation11 + $0x3e0] ss:$16 sps:$4 sm:$0xff]  }
 0x147   : > { %1452 = vmatprep.subr.bf16.mxu1 %v5406_v41  ;;  %v5503_v41 = vld [vmem:[#allocation11 + $0x3e8] ss:$16 sps:$4 sm:$0xff]  }
 0x14d   : > { %1410 = vmatpush2.bf16.xpose.msra.mxu0 %v5408_v42  ;;  %v5508_v42 = vld [vmem:[#allocation11 + $0x3c4] ss:$16 sps:$4 sm:$0xff]  }
 0x14e   : > { %1453 = vmatpush2.bf16.xpose.msra.mxu1 %v5409_v43  ;;  %1411 = vmatprep.subr.bf16.mxu0 %v5410_v44  ;;  %v5511_v43 = vld [vmem:[#allocation11 + $0x3cc] ss:$16 sps:$4 sm:$0xff]   ;;  %v5506_v44 = vld [vmem:[#allocation11 + $0x3c0] ss:$16 sps:$4 sm:$0xff]  }
 0x14f   : > { %1454 = vmatprep.subr.bf16.mxu1 %v5412_v45  ;;  %v5509_v45 = vld [vmem:[#allocation11 + $0x3c8] ss:$16 sps:$4 sm:$0xff]  }
 0x155   : > { %1412 = vmatpush2.bf16.xpose.msra.mxu0 %v5414_v46  ;;  %v5514_v46 = vld [vmem:[#allocation11 + $0x3a4] ss:$16 sps:$4 sm:$0xff]  }
 0x156   : > { %1455 = vmatpush2.bf16.xpose.msra.mxu1 %v5415_v47  ;;  %1413 = vmatprep.subr.bf16.mxu0 %v5416_v48  ;;  %v5517_v47 = vld [vmem:[#allocation11 + $0x3ac] ss:$16 sps:$4 sm:$0xff]   ;;  %v5512_v48 = vld [vmem:[#allocation11 + $0x3a0] ss:$16 sps:$4 sm:$0xff]  }
 0x157   : > { %1456 = vmatprep.subr.bf16.mxu1 %v5418_v49  ;;  %v5515_v49 = vld [vmem:[#allocation11 + $0x3a8] ss:$16 sps:$4 sm:$0xff]  }
 0x15d   : > { %1414 = vmatpush2.bf16.xpose.msra.mxu0 %v5420_v50  ;;  %v5520_v50 = vld [vmem:[#allocation11 + $0x384] ss:$16 sps:$4 sm:$0xff]  }
 0x15e   : > { %1457 = vmatpush2.bf16.xpose.msra.mxu1 %v5421_v51  ;;  %1415 = vmatprep.subr.bf16.mxu0 %v5422_v52  ;;  %v5523_v51 = vld [vmem:[#allocation11 + $0x38c] ss:$16 sps:$4 sm:$0xff]   ;;  %v5518_v52 = vld [vmem:[#allocation11 + $0x380] ss:$16 sps:$4 sm:$0xff]  }
 0x15f   : > { %1458 = vmatprep.subr.bf16.mxu1 %v5424_v53  ;;  %v5521_v53 = vld [vmem:[#allocation11 + $0x388] ss:$16 sps:$4 sm:$0xff]  }
 0x165   : > { %1416 = vmatpush2.bf16.xpose.msra.mxu0 %v5426_v54  ;;  %v5526_v54 = vld [vmem:[#allocation11 + $0x364] ss:$16 sps:$4 sm:$0xff]  }
 0x166   : > { %1459 = vmatpush2.bf16.xpose.msra.mxu1 %v5427_v55  ;;  %1417 = vmatprep.subr.bf16.mxu0 %v5428_v56  ;;  %v5529_v55 = vld [vmem:[#allocation11 + $0x36c] ss:$16 sps:$4 sm:$0xff]   ;;  %v5524_v56 = vld [vmem:[#allocation11 + $0x360] ss:$16 sps:$4 sm:$0xff]  }
 0x167   : > { %1460 = vmatprep.subr.bf16.mxu1 %v5430_v57  ;;  %v5527_v57 = vld [vmem:[#allocation11 + $0x368] ss:$16 sps:$4 sm:$0xff]  }
 0x16d   : > { %1418 = vmatpush2.bf16.xpose.msra.mxu0 %v5432_v58  ;;  %v5532_v58 = vld [vmem:[#allocation11 + $0x344] ss:$16 sps:$4 sm:$0xff]  }
 0x16e   : > { %1461 = vmatpush2.bf16.xpose.msra.mxu1 %v5433_v59  ;;  %1419 = vmatprep.subr.bf16.mxu0 %v5434_v60  ;;  %v5535_v59 = vld [vmem:[#allocation11 + $0x34c] ss:$16 sps:$4 sm:$0xff]   ;;  %v5530_v60 = vld [vmem:[#allocation11 + $0x340] ss:$16 sps:$4 sm:$0xff]  }
 0x16f   : > { %1462 = vmatprep.subr.bf16.mxu1 %v5436_v61  ;;  %v5533_v61 = vld [vmem:[#allocation11 + $0x348] ss:$16 sps:$4 sm:$0xff]  }
 0x175   : > { %1420 = vmatpush2.bf16.xpose.msra.mxu0 %v5438_v62  ;;  %v5538_v62 = vld [vmem:[#allocation11 + $0x324] ss:$16 sps:$4 sm:$0xff]  }
 0x176   : > { %1463 = vmatpush2.bf16.xpose.msra.mxu1 %v5439_v63  ;;  %1421 = vmatprep.subr.bf16.mxu0 %v5440_v0  ;;  %v5541_v63 = vld [vmem:[#allocation11 + $0x32c] ss:$16 sps:$4 sm:$0xff]   ;;  %v5536_v0 = vld [vmem:[#allocation11 + $0x320] ss:$16 sps:$4 sm:$0xff]  }
 0x177   : > { %1464 = vmatprep.subr.bf16.mxu1 %v5442_v1  ;;  %v5539_v1 = vld [vmem:[#allocation11 + $0x328] ss:$16 sps:$4 sm:$0xff]  }
 0x17d   : > { %1422 = vmatpush2.bf16.xpose.msra.mxu0 %v5444_v2  ;;  %v5544_v2 = vld [vmem:[#allocation11 + $0x304] ss:$16 sps:$4 sm:$0xff]  }
 0x17e   : > { %1465 = vmatpush2.bf16.xpose.msra.mxu1 %v5445_v3  ;;  %1477 = vmatprep.subr.bf16.mxu0 %v5454_v4  ;;  %v5547_v3 = vld [vmem:[#allocation11 + $0x30c] ss:$16 sps:$4 sm:$0xff]   ;;  %v5542_v4 = vld [vmem:[#allocation11 + $0x300] ss:$16 sps:$4 sm:$0xff]  }
 0x17f   : > { %1520 = vmatprep.subr.bf16.mxu1 %v5457_v5  ;;  %v5545_v5 = vld [vmem:[#allocation11 + $0x308] ss:$16 sps:$4 sm:$0xff]  }
 0x184   : > { %1424 = vmatmul.mubr.bf16.vlgmr.msra.gmra.mxu0 %v6971_v6 }
 0x185   : > { %1467 = vmatmul.mubr.bf16.vlgmr.msra.gmra.mxu1 %v6974_v7  ;;  %1478 = vmatpush1.bf16.xpose.msra.mxu0 %v5452_v8 }
 0x186   : > { %1521 = vmatpush1.bf16.xpose.msra.mxu1 %v5455_v9  ;;  %1479 = vmatprep.subr.bf16.mxu0 %v5460_v10 }
 0x187   : > { %1522 = vmatprep.subr.bf16.mxu1 %v5463_v11  ;;  %1509 = vmatprep.mubr.bf16.mxu0 %v6963_v28  ;;  %v5482_v28 = vld [vmem:[#allocation11 + $0x240] ss:$16 sps:$4 sm:$0xff]  }
 0x188   : > { %1552 = vmatprep.mubr.bf16.mxu1 %v6966_v29  ;;  %v5485_v29 = vld [vmem:[#allocation11 + $0x248] ss:$16 sps:$4 sm:$0xff]  }
 0x18d   : > { %1480 = vmatpush1.bf16.xpose.msra.mxu0 %v5458_v12 }
 0x18e   : > { %1523 = vmatpush1.bf16.xpose.msra.mxu1 %v5461_v13  ;;  %1481 = vmatprep.subr.bf16.mxu0 %v5466_v14 }
 0x18f   : > { %1524 = vmatprep.subr.bf16.mxu1 %v5469_v15 }
 0x195   : > { %1482 = vmatpush1.bf16.xpose.msra.mxu0 %v5464_v16 }
 0x196   : > { %1525 = vmatpush1.bf16.xpose.msra.mxu1 %v5467_v17  ;;  %1483 = vmatprep.subr.bf16.mxu0 %v5472_v18  ;;  %v1563_v18 = vld [vmem:[%s487_s5] sm:$0xff] }
 0x197   : > { %1526 = vmatprep.subr.bf16.mxu1 %v5475_v19  ;;  %v1565_v19 = vld [vmem:[%s496_s19] sm:$0xff] }
 0x19d   : > { %1484 = vmatpush1.bf16.xpose.msra.mxu0 %v5470_v20 }
 0x19e   : > { %1527 = vmatpush1.bf16.xpose.msra.mxu1 %v5473_v21  ;;  %1485 = vmatprep.subr.bf16.mxu0 %v5478_v22 }
 0x19f   : > { %1528 = vmatprep.subr.bf16.mxu1 %v5481_v23  ;;  %v1564_v23 = vld [vmem:[%s487_s5 + $0x8] sm:$0xff] }
 0x1a5   : > { %1486 = vmatpush1.bf16.xpose.msra.mxu0 %v5476_v24 }
 0x1a6   : > { %1529 = vmatpush1.bf16.xpose.msra.mxu1 %v5479_v25  ;;  %1487 = vmatprep.subr.bf16.mxu0 %v5484_v26  ;;  %v1566_v25 = vld [vmem:[%s496_s19 + $0x8] sm:$0xff] }
 0x1a7   : > { %1530 = vmatprep.subr.bf16.mxu1 %v5487_v27 }
 0x1ad   : > { %1488 = vmatpush1.bf16.xpose.msra.mxu0 %v5482_v28 }
 0x1ae   : > { %1531 = vmatpush1.bf16.xpose.msra.mxu1 %v5485_v29  ;;  %1489 = vmatprep.subr.bf16.mxu0 %v5490_v30 }
 0x1af   : > { %1532 = vmatprep.subr.bf16.mxu1 %v5493_v31 }
 0x1b5   : > { %1490 = vmatpush1.bf16.xpose.msra.mxu0 %v5488_v32 }
 0x1b6   : > { %1533 = vmatpush1.bf16.xpose.msra.mxu1 %v5491_v33  ;;  %1491 = vmatprep.subr.bf16.mxu0 %v5496_v34 }
 0x1b7   : > { %1534 = vmatprep.subr.bf16.mxu1 %v5499_v35 }
 0x1bd   : > { %1492 = vmatpush1.bf16.xpose.msra.mxu0 %v5494_v36 }
 0x1be   : > { %1535 = vmatpush1.bf16.xpose.msra.mxu1 %v5497_v37  ;;  %1493 = vmatprep.subr.bf16.mxu0 %v5502_v38 }
 0x1bf   : > { %1536 = vmatprep.subr.bf16.mxu1 %v5505_v39 }
 0x1c5   : > { %1494 = vmatpush2.bf16.xpose.msra.mxu0 %v5500_v40 }
 0x1c6   : > { %1537 = vmatpush2.bf16.xpose.msra.mxu1 %v5503_v41  ;;  %1495 = vmatprep.subr.bf16.mxu0 %v5508_v42 }
 0x1c7   : > { %1538 = vmatprep.subr.bf16.mxu1 %v5511_v43 }
 0x1cd   : > { %1496 = vmatpush2.bf16.xpose.msra.mxu0 %v5506_v44 }
 0x1ce   : > { %1539 = vmatpush2.bf16.xpose.msra.mxu1 %v5509_v45  ;;  %1497 = vmatprep.subr.bf16.mxu0 %v5514_v46 }
 0x1cf   : > { %1540 = vmatprep.subr.bf16.mxu1 %v5517_v47 }
 0x1d5   : > { %1498 = vmatpush2.bf16.xpose.msra.mxu0 %v5512_v48 }
 0x1d6   : > { %1541 = vmatpush2.bf16.xpose.msra.mxu1 %v5515_v49  ;;  %1499 = vmatprep.subr.bf16.mxu0 %v5520_v50 }
 0x1d7   : > { %1542 = vmatprep.subr.bf16.mxu1 %v5523_v51 }
 0x1dd   : > { %1500 = vmatpush2.bf16.xpose.msra.mxu0 %v5518_v52 }
 0x1de   : > { %1543 = vmatpush2.bf16.xpose.msra.mxu1 %v5521_v53  ;;  %1501 = vmatprep.subr.bf16.mxu0 %v5526_v54 }
 0x1df   : > { %1544 = vmatprep.subr.bf16.mxu1 %v5529_v55 }
 0x1e5   : > { %1502 = vmatpush2.bf16.xpose.msra.mxu0 %v5524_v56 }
 0x1e6   : > { %1545 = vmatpush2.bf16.xpose.msra.mxu1 %v5527_v57  ;;  %1503 = vmatprep.subr.bf16.mxu0 %v5532_v58 }
 0x1e7   : > { %1546 = vmatprep.subr.bf16.mxu1 %v5535_v59 }
 0x1ed   : > { %1504 = vmatpush2.bf16.xpose.msra.mxu0 %v5530_v60 }
 0x1ee   : > { %1547 = vmatpush2.bf16.xpose.msra.mxu1 %v5533_v61  ;;  %1505 = vmatprep.subr.bf16.mxu0 %v5538_v62 }
 0x1ef   : > { %1548 = vmatprep.subr.bf16.mxu1 %v5541_v63 }
 0x1f5   : > { %1506 = vmatpush2.bf16.xpose.msra.mxu0 %v5536_v0 }
 0x1f6   : > { %1549 = vmatpush2.bf16.xpose.msra.mxu1 %v5539_v1  ;;  %1507 = vmatprep.subr.bf16.mxu0 %v5544_v2 }
 0x1f7   : > { %1550 = vmatprep.subr.bf16.mxu1 %v5547_v3 }
 0x1fd   : > { %1508 = vmatpush2.bf16.xpose.msra.mxu0 %v5542_v4 }
 0x1fe   : > { %1551 = vmatpush2.bf16.xpose.msra.mxu1 %v5545_v5 }
 0x204   : > { %1510 = vmatmul.mubr.bf16.vlgmr.msra.gmra.mxu0 %v6971_v6 }
 0x205   : > { %1553 = vmatmul.mubr.bf16.vlgmr.msra.gmra.mxu1 %v6974_v7 }
 0x244   : > { %v1425_v8 = vpop.f32.mrf.mxu0 }
 0x245   : > { %v1468_v9 = vpop.f32.mrf.mxu1 }
 0x246   : > { %v1469_v10 = vadd.f32 %v1468_v9, %v1425_v8  ;;  %v1427_v11 = vpop.f32.mrf.mxu0 }
 0x247   : > { %v1470_v12 = vpop.f32.mrf.mxu1 }
 0x248   : > { %v1471_v13 = vadd.f32 %v1470_v12, %v1427_v11  ;;  %1569 = vrot.lane.b32.xlu0 %v1469_v10, %s6444_s7  ;;  %v1429_v14 = vpop.f32.mrf.mxu0  ;;  %v1567_v21 = vmul.f32 %v1563_v18, %v1469_v10 }
 0x249   : > { %v1472_v15 = vpop.f32.mrf.mxu1 }
 0x24a   : > { %v1473_v16 = vadd.f32 %v1472_v15, %v1429_v14  ;;  %1591 = vrot.lane.b32.xlu1 %v1471_v13, %s6444_s7  ;;  %v1431_v6 = vpop.f32.mrf.mxu0  ;;  %v1589_v26 = vmul.f32 %v1563_v18, %v1471_v13 }
 0x24b   : > { %v1474_v7 = vpop.f32.mrf.mxu1 }
 0x24c   : > { %v1475_v17 = vadd.f32 %v1474_v7, %v1431_v6  ;;  %1571 = vrot.lane.b32.xlu0 %v1473_v16, %s6444_s7  ;;  %v1568_v30 = vmul.f32 %v1564_v23, %v1473_v16 }
 0x24e   : > { %1593 = vrot.lane.b32.xlu1 %v1475_v17, %s6444_s7  ;;  %v1590_v34 = vmul.f32 %v1564_v23, %v1475_v17 }
 0x2ba   : > { %v1570_v20 = vpop.permute.xlu0 %1569 }
 0x2bb   : > { %v1573_v22 = vmul.f32 %v1570_v20, %v1565_v19 }
 0x2bc   : > { %v1592_v24 = vpop.permute.xlu1 %1591 }
 0x2bd   : > { %v1575_v27 = vadd.f32 %v1573_v22, %v1567_v21  ;;  %v1595_v28 = vmul.f32 %v1592_v24, %v1565_v19 }
 0x2be   : > { %v1572_v29 = vpop.permute.xlu0 %1571 }
 0x2bf   : > { %v1577_v31 = vmul.f32 0.088388346, %v1575_v27  ;;  %v1597_v32 = vadd.f32 %v1595_v28, %v1589_v26  ;;  %v1574_v33 = vmul.f32 %v1572_v29, %v1566_v25 }
 0x2c0   : > { %v1594_v35 = vpop.permute.xlu1 %1593 }
 0x2c1   : > { %v5045_v36 = vpack.c.bf16 %v1577_v31, %v1577_v31  ;;  %v1599_v37 = vmul.f32 0.088388346, %v1597_v32  ;;  %v1576_v38 = vadd.f32 %v1574_v33, %v1568_v30  ;;  %v1596_v39 = vmul.f32 %v1594_v35, %v1566_v25 }
 0x2c3   : > { %1587 = vst [vmem:[#allocation2] sm:$0xf] %v5045_v36  ;;  %v5047_v40 = vpack.c.bf16 %v1599_v37, %v1599_v37  ;;  %v1578_v41 = vmul.f32 0.088388346, %v1576_v38  ;;  %v1598_v42 = vadd.f32 %v1596_v39, %v1590_v34 }
 0x2c4   : > { %v1511_v43 = vpop.f32.mrf.mxu0 }
 0x2c5   : > { %1609 = vst [vmem:[#allocation2 + $0x4] sm:$0xf] %v5047_v40  ;;  %v5046_v44 = vpack.c.bf16 %v1578_v41, %v1578_v41  ;;  %v1600_v45 = vmul.f32 0.088388346, %v1598_v42  ;;  %v1554_v46 = vpop.f32.mrf.mxu1 }
 0x2c6   : > { %v1555_v47 = vadd.f32 %v1554_v46, %v1511_v43  ;;  %v1513_v48 = vpop.f32.mrf.mxu0 }
 0x2c7   : > { %1588 = vst [vmem:[#allocation2 + $0x10] sm:$0xf] %v5046_v44  ;;  %v5048_v49 = vpack.c.bf16 %v1600_v45, %v1600_v45  ;;  %v1556_v50 = vpop.f32.mrf.mxu1 }
 0x2c8   : > { %1613 = vrot.lane.b32.xlu0 %v1555_v47, %s6444_s7  ;;  %v1515_v51 = vpop.f32.mrf.mxu0  ;;  %v1557_v53 = vadd.f32 %v1556_v50, %v1513_v48  ;;  %v1611_v59 = vmul.f32 %v1563_v18, %v1555_v47 }
 0x2c9   : > { %1610 = vst [vmem:[#allocation2 + $0x14] sm:$0xf] %v5048_v49  ;;  %v1558_v52 = vpop.f32.mrf.mxu1 }
 0x2ca   : > { %v1559_v54 = vadd.f32 %v1558_v52, %v1515_v51  ;;  %v1517_v55 = vpop.f32.mrf.mxu0  ;;  %v1633_v62 = vmul.f32 %v1563_v18, %v1557_v53 }
 0x2cb   : > { %v1560_v56 = vpop.f32.mrf.mxu1 }
 0x2cc   : > { %1635 = vrot.lane.b32.xlu0 %v1557_v53, %s6444_s7  ;;  %1615 = vrot.lane.b32.xlu1 %v1559_v54, %s6444_s7  ;;  %v1561_v57 = vadd.f32 %v1560_v56, %v1517_v55  ;;  %v1612_v1 = vmul.f32 %v1564_v23, %v1559_v54 }
 0x2ce   : > { %v1634_v11 = vmul.f32 %v1564_v23, %v1561_v57 }
 0x2d0   : > { %1637 = vrot.lane.b32.xlu1 %v1561_v57, %s6444_s7 }
 0x33a   : > { %v1614_v58 = vpop.permute.xlu0 %1613 }
 0x33b   : > { %v1617_v60 = vmul.f32 %v1614_v58, %v1565_v19 }
 0x33d   : > { %v1619_v61 = vadd.f32 %v1617_v60, %v1611_v59 }
 0x33e   : > { %v1636_v63 = vpop.permute.xlu0 %1635  ;;  %v1616_v0 = vpop.permute.xlu1 %1615 }
 0x33f   : > { %v1621_v2 = vmul.f32 0.088388346, %v1619_v61  ;;  %v1639_v3 = vmul.f32 %v1636_v63, %v1565_v19  ;;  %v1618_v4 = vmul.f32 %v1616_v0, %v1566_v25 }
 0x341   : > { %v5049_v5 = vpack.c.bf16 %v1621_v2, %v1621_v2  ;;  %v1641_v8 = vadd.f32 %v1639_v3, %v1633_v62  ;;  %v1620_v9 = vadd.f32 %v1618_v4, %v1612_v1 }
 0x342   : > { %v1638_v10 = vpop.permute.xlu1 %1637 }
 0x343   : > { %1631 = vst [vmem:[#allocation2 + $0x8] sm:$0xf] %v5049_v5  ;;  %v1643_v12 = vmul.f32 0.088388346, %v1641_v8  ;;  %v1622_v13 = vmul.f32 0.088388346, %v1620_v9  ;;  %v1640_v14 = vmul.f32 %v1638_v10, %v1566_v25 }
 0x345   : > { %v5051_v15 = vpack.c.bf16 %v1643_v12, %v1643_v12  ;;  %v5050_v16 = vpack.c.bf16 %v1622_v13, %v1622_v13  ;;  %v1642_v6 = vadd.f32 %v1640_v14, %v1634_v11 }
 0x347   : > { %1653 = vst [vmem:[#allocation2 + $0xc] sm:$0xf] %v5051_v15  ;;  %1632 = vst [vmem:[#allocation2 + $0x18] sm:$0xf] %v5050_v16  ;;  %v1644_v7 = vmul.f32 0.088388346, %v1642_v6 }
 0x349   : > { %v5052_v17 = vpack.c.bf16 %v1644_v7, %v1644_v7 }
 0x34b   : > { %1654 = vst [vmem:[#allocation2 + $0x1c] sm:$0xf] %v5052_v17 }
 0x34c PF: > { %s1655_s3 = sadd.s32 15, %s4619_s0 }
 0x34d   : > { %p4762_p4 = scmp.gt.s32.totalorder %s4620_s18, %s1655_s3 }
 0x34e   : > { %s6447_s11 = smov (!%p4762_p4), 64  }
 0x34f   : > { %1659 = sbr.rel (%p4762_p4) target bundleno = 2021 (0x7e5), region = 92 }
 0x354   : > { %v5559_v18 = vld [vmem:[#allocation11 + $0x4e4] ss:$16 sps:$4 sm:$0xff]   ;;  %v5561_v19 = vld [vmem:[#allocation11 + $0x4ec] ss:$16 sps:$4 sm:$0xff]   ;;  %v5563_v20 = vld [vmem:[#allocation11 + $0x4e0] ss:$16 sps:$4 sm:$0xff]  }
 0x355   : > { %2452 = vmatprep.subr.bf16.mxu0 %v5559_v18  ;;  %v5564_v21 = vld [vmem:[#allocation11 + $0x4e8] ss:$16 sps:$4 sm:$0xff]   ;;  %2495 = vmatprep.subr.bf16.mxu1 %v5561_v19  ;;  %v5565_v22 = vld [vmem:[#allocation11 + $0x4c4] ss:$16 sps:$4 sm:$0xff]   ;;  %v5567_v23 = vld [vmem:[#allocation11 + $0x4cc] ss:$16 sps:$4 sm:$0xff]  }
 0x356   : > { %2453 = vmatpush1.bf16.xpose.msra.mxu0 %v5563_v20  ;;  %2496 = vmatpush1.bf16.xpose.msra.mxu1 %v5564_v21  ;;  %v5569_v24 = vld [vmem:[#allocation11 + $0x4c0] ss:$16 sps:$4 sm:$0xff]   ;;  %v5570_v25 = vld [vmem:[#allocation11 + $0x4c8] ss:$16 sps:$4 sm:$0xff]   ;;  %v5571_v26 = vld [vmem:[#allocation11 + $0x4a4] ss:$16 sps:$4 sm:$0xff]  }
 0x357   : > { %2454 = vmatprep.subr.bf16.mxu0 %v5565_v22  ;;  %2497 = vmatprep.subr.bf16.mxu1 %v5567_v23  ;;  %v5573_v27 = vld [vmem:[#allocation11 + $0x4ac] ss:$16 sps:$4 sm:$0xff]   ;;  %v5575_v28 = vld [vmem:[#allocation11 + $0x4a0] ss:$16 sps:$4 sm:$0xff]   ;;  %v5576_v29 = vld [vmem:[#allocation11 + $0x4a8] ss:$16 sps:$4 sm:$0xff]  }
 0x358   : > { %v5577_v30 = vld [vmem:[#allocation11 + $0x484] ss:$16 sps:$4 sm:$0xff]   ;;  %v5579_v31 = vld [vmem:[#allocation11 + $0x48c] ss:$16 sps:$4 sm:$0xff]   ;;  %v5581_v32 = vld [vmem:[#allocation11 + $0x480] ss:$16 sps:$4 sm:$0xff]  }
 0x359   : > { %v5582_v33 = vld [vmem:[#allocation11 + $0x488] ss:$16 sps:$4 sm:$0xff]   ;;  %v5583_v34 = vld [vmem:[#allocation11 + $0x464] ss:$16 sps:$4 sm:$0xff]   ;;  %v5585_v35 = vld [vmem:[#allocation11 + $0x46c] ss:$16 sps:$4 sm:$0xff]  }
 0x35a   : > { %v5587_v36 = vld [vmem:[#allocation11 + $0x460] ss:$16 sps:$4 sm:$0xff]   ;;  %v5588_v37 = vld [vmem:[#allocation11 + $0x468] ss:$16 sps:$4 sm:$0xff]   ;;  %v5589_v38 = vld [vmem:[#allocation11 + $0x444] ss:$16 sps:$4 sm:$0xff]  }
 0x35b   : > { %v5591_v39 = vld [vmem:[#allocation11 + $0x44c] ss:$16 sps:$4 sm:$0xff]   ;;  %v5593_v40 = vld [vmem:[#allocation11 + $0x440] ss:$16 sps:$4 sm:$0xff]   ;;  %v5594_v41 = vld [vmem:[#allocation11 + $0x448] ss:$16 sps:$4 sm:$0xff]  }
 0x35c   : > { %v5595_v42 = vld [vmem:[#allocation11 + $0x424] ss:$16 sps:$4 sm:$0xff]   ;;  %v5597_v43 = vld [vmem:[#allocation11 + $0x42c] ss:$16 sps:$4 sm:$0xff]   ;;  %v5599_v46 = vld [vmem:[#allocation11 + $0x420] ss:$16 sps:$4 sm:$0xff]  }
 0x35d   : > { %v7003_v44 = vld [vmem:[%s6916_s8 + $0x4] ss:$16 sps:$4 sm:$0xff]   ;;  %v7006_v45 = vld [vmem:[%s6916_s8 + $0xc] ss:$16 sps:$4 sm:$0xff]   ;;  %v5600_v47 = vld [vmem:[#allocation11 + $0x428] ss:$16 sps:$4 sm:$0xff]  }
 0x35e   : > { %2455 = vmatpush1.bf16.xpose.msra.mxu0 %v5569_v24  ;;  %2498 = vmatpush1.bf16.xpose.msra.mxu1 %v5570_v25  ;;  %v5601_v48 = vld [vmem:[#allocation11 + $0x404] ss:$16 sps:$4 sm:$0xff]   ;;  %v5603_v49 = vld [vmem:[#allocation11 + $0x40c] ss:$16 sps:$4 sm:$0xff]   ;;  %v5605_v50 = vld [vmem:[#allocation11 + $0x400] ss:$16 sps:$4 sm:$0xff]  }
 0x35f   : > { %2456 = vmatprep.subr.bf16.mxu0 %v5571_v26  ;;  %2499 = vmatprep.subr.bf16.mxu1 %v5573_v27  ;;  %v5606_v51 = vld [vmem:[#allocation11 + $0x408] ss:$16 sps:$4 sm:$0xff]   ;;  %v5607_v52 = vld [vmem:[#allocation11 + $0x5e4] ss:$16 sps:$4 sm:$0xff]   ;;  %v5609_v53 = vld [vmem:[#allocation11 + $0x5ec] ss:$16 sps:$4 sm:$0xff]  }
 0x360   : > { %2484 = vmatprep.mubr.bf16.mxu0 %v7003_v44  ;;  %2527 = vmatprep.mubr.bf16.mxu1 %v7006_v45  ;;  %v5611_v54 = vld [vmem:[#allocation11 + $0x5e0] ss:$16 sps:$4 sm:$0xff]   ;;  %v5612_v55 = vld [vmem:[#allocation11 + $0x5e8] ss:$16 sps:$4 sm:$0xff]   ;;  %v5613_v56 = vld [vmem:[#allocation11 + $0x5c4] ss:$16 sps:$4 sm:$0xff]  }
 0x361   : > { %v5615_v57 = vld [vmem:[#allocation11 + $0x5cc] ss:$16 sps:$4 sm:$0xff]   ;;  %v5617_v58 = vld [vmem:[#allocation11 + $0x5c0] ss:$16 sps:$4 sm:$0xff]   ;;  %v5618_v59 = vld [vmem:[#allocation11 + $0x5c8] ss:$16 sps:$4 sm:$0xff]  }
 0x362   : > { %v5619_v60 = vld [vmem:[#allocation11 + $0x5a4] ss:$16 sps:$4 sm:$0xff]   ;;  %v5621_v61 = vld [vmem:[#allocation11 + $0x5ac] ss:$16 sps:$4 sm:$0xff]   ;;  %v5623_v62 = vld [vmem:[#allocation11 + $0x5a0] ss:$16 sps:$4 sm:$0xff]  }
 0x363   : > { %v5624_v63 = vld [vmem:[#allocation11 + $0x5a8] ss:$16 sps:$4 sm:$0xff]   ;;  %v5625_v0 = vld [vmem:[#allocation11 + $0x584] ss:$16 sps:$4 sm:$0xff]   ;;  %v5627_v1 = vld [vmem:[#allocation11 + $0x58c] ss:$16 sps:$4 sm:$0xff]  }
 0x364   : > { %v5629_v2 = vld [vmem:[#allocation11 + $0x580] ss:$16 sps:$4 sm:$0xff]   ;;  %v5630_v3 = vld [vmem:[#allocation11 + $0x588] ss:$16 sps:$4 sm:$0xff]   ;;  %v5631_v4 = vld [vmem:[#allocation11 + $0x564] ss:$16 sps:$4 sm:$0xff]  }
 0x365   : > { %v5633_v5 = vld [vmem:[#allocation11 + $0x56c] ss:$16 sps:$4 sm:$0xff]   ;;  %v5635_v8 = vld [vmem:[#allocation11 + $0x560] ss:$16 sps:$4 sm:$0xff]   ;;  %v5636_v9 = vld [vmem:[#allocation11 + $0x568] ss:$16 sps:$4 sm:$0xff]  }
 0x366   : > { %2457 = vmatpush1.bf16.xpose.msra.mxu0 %v5575_v28  ;;  %2500 = vmatpush1.bf16.xpose.msra.mxu1 %v5576_v29  ;;  %v5637_v10 = vld [vmem:[#allocation11 + $0x544] ss:$16 sps:$4 sm:$0xff]   ;;  %v5639_v11 = vld [vmem:[#allocation11 + $0x54c] ss:$16 sps:$4 sm:$0xff]   ;;  %v5641_v12 = vld [vmem:[#allocation11 + $0x540] ss:$16 sps:$4 sm:$0xff]  }
 0x367   : > { %2458 = vmatprep.subr.bf16.mxu0 %v5577_v30  ;;  %2501 = vmatprep.subr.bf16.mxu1 %v5579_v31  ;;  %v5642_v13 = vld [vmem:[#allocation11 + $0x548] ss:$16 sps:$4 sm:$0xff]   ;;  %v5643_v14 = vld [vmem:[#allocation11 + $0x524] ss:$16 sps:$4 sm:$0xff]   ;;  %v5645_v15 = vld [vmem:[#allocation11 + $0x52c] ss:$16 sps:$4 sm:$0xff]  }
 0x368   : > { %v5647_v16 = vld [vmem:[#allocation11 + $0x520] ss:$16 sps:$4 sm:$0xff]   ;;  %v5648_v6 = vld [vmem:[#allocation11 + $0x528] ss:$16 sps:$4 sm:$0xff]   ;;  %v5649_v7 = vld [vmem:[#allocation11 + $0x504] ss:$16 sps:$4 sm:$0xff]  }
 0x369   : > { %v5651_v17 = vld [vmem:[#allocation11 + $0x50c] ss:$16 sps:$4 sm:$0xff]   ;;  %v5653_v18 = vld [vmem:[#allocation11 + $0x500] ss:$16 sps:$4 sm:$0xff]   ;;  %v5654_v19 = vld [vmem:[#allocation11 + $0x508] ss:$16 sps:$4 sm:$0xff]  }
 0x36a   : > { %v5663_v20 = vld [vmem:[#allocation11 + $0x6e4] ss:$16 sps:$4 sm:$0xff]   ;;  %v5666_v21 = vld [vmem:[#allocation11 + $0x6ec] ss:$16 sps:$4 sm:$0xff]   ;;  %v7011_v22 = vld [vmem:[%s6916_s8] ss:$16 sps:$4 sm:$0xff]  }
 0x36b   : > { %v7014_v23 = vld [vmem:[%s6916_s8 + $0x8] ss:$16 sps:$4 sm:$0xff]   ;;  %v5661_v24 = vld [vmem:[#allocation11 + $0x6e0] ss:$16 sps:$4 sm:$0xff]   ;;  %v5669_v26 = vld [vmem:[#allocation11 + $0x6c4] ss:$16 sps:$4 sm:$0xff]  }
 0x36c   : > { %v5664_v25 = vld [vmem:[#allocation11 + $0x6e8] ss:$16 sps:$4 sm:$0xff]   ;;  %v5672_v27 = vld [vmem:[#allocation11 + $0x6cc] ss:$16 sps:$4 sm:$0xff]   ;;  %v5667_v28 = vld [vmem:[#allocation11 + $0x6c0] ss:$16 sps:$4 sm:$0xff]  }
 0x36d   : > { %v5670_v29 = vld [vmem:[#allocation11 + $0x6c8] ss:$16 sps:$4 sm:$0xff]   ;;  %v5675_v30 = vld [vmem:[#allocation11 + $0x6a4] ss:$16 sps:$4 sm:$0xff]   ;;  %v5678_v31 = vld [vmem:[#allocation11 + $0x6ac] ss:$16 sps:$4 sm:$0xff]  }
 0x36e   : > { %2459 = vmatpush1.bf16.xpose.msra.mxu0 %v5581_v32  ;;  %2502 = vmatpush1.bf16.xpose.msra.mxu1 %v5582_v33  ;;  %v5673_v32 = vld [vmem:[#allocation11 + $0x6a0] ss:$16 sps:$4 sm:$0xff]   ;;  %v5676_v33 = vld [vmem:[#allocation11 + $0x6a8] ss:$16 sps:$4 sm:$0xff]   ;;  %vm6446_vm1 = vmmov 0   ;;  %vm2719_vm3 = vcmask 130048  }
 0x36f   : > { %2460 = vmatprep.subr.bf16.mxu0 %v5583_v34  ;;  %2503 = vmatprep.subr.bf16.mxu1 %v5585_v35  ;;  %v5681_v34 = vld [vmem:[#allocation11 + $0x684] ss:$16 sps:$4 sm:$0xff]   ;;  %v5684_v35 = vld [vmem:[#allocation11 + $0x68c] ss:$16 sps:$4 sm:$0xff]   ;;  %vm2760_vm5 = vcmask 7168   ;;  %vm2923_vm6 = vcmask 15368  }
 0x370   : > { %vm3086_vm7 = vcmask 23568   ;;  %vm3249_vm8 = vcmask 31768  }
 0x376   : > { %2461 = vmatpush1.bf16.xpose.msra.mxu0 %v5587_v36  ;;  %2504 = vmatpush1.bf16.xpose.msra.mxu1 %v5588_v37  ;;  %v5679_v36 = vld [vmem:[#allocation11 + $0x680] ss:$16 sps:$4 sm:$0xff]   ;;  %v5682_v37 = vld [vmem:[#allocation11 + $0x688] ss:$16 sps:$4 sm:$0xff]  }
 0x377   : > { %2462 = vmatprep.subr.bf16.mxu0 %v5589_v38  ;;  %2505 = vmatprep.subr.bf16.mxu1 %v5591_v39  ;;  %v5687_v38 = vld [vmem:[#allocation11 + $0x664] ss:$16 sps:$4 sm:$0xff]   ;;  %v5690_v39 = vld [vmem:[#allocation11 + $0x66c] ss:$16 sps:$4 sm:$0xff]  }
 0x37e   : > { %2463 = vmatpush1.bf16.xpose.msra.mxu0 %v5593_v40  ;;  %2506 = vmatpush1.bf16.xpose.msra.mxu1 %v5594_v41  ;;  %v5685_v40 = vld [vmem:[#allocation11 + $0x660] ss:$16 sps:$4 sm:$0xff]   ;;  %v5688_v41 = vld [vmem:[#allocation11 + $0x668] ss:$16 sps:$4 sm:$0xff]  }
 0x37f   : > { %2464 = vmatprep.subr.bf16.mxu0 %v5595_v42  ;;  %2507 = vmatprep.subr.bf16.mxu1 %v5597_v43  ;;  %v5693_v42 = vld [vmem:[#allocation11 + $0x644] ss:$16 sps:$4 sm:$0xff]   ;;  %v5696_v43 = vld [vmem:[#allocation11 + $0x64c] ss:$16 sps:$4 sm:$0xff]  }
 0x386   : > { %2465 = vmatpush1.bf16.xpose.msra.mxu0 %v5599_v46  ;;  %2508 = vmatpush1.bf16.xpose.msra.mxu1 %v5600_v47  ;;  %v5699_v46 = vld [vmem:[#allocation11 + $0x624] ss:$16 sps:$4 sm:$0xff]   ;;  %v5702_v47 = vld [vmem:[#allocation11 + $0x62c] ss:$16 sps:$4 sm:$0xff]  }
 0x387   : > { %2466 = vmatprep.subr.bf16.mxu0 %v5601_v48  ;;  %2509 = vmatprep.subr.bf16.mxu1 %v5603_v49  ;;  %v5697_v48 = vld [vmem:[#allocation11 + $0x620] ss:$16 sps:$4 sm:$0xff]   ;;  %v5700_v49 = vld [vmem:[#allocation11 + $0x628] ss:$16 sps:$4 sm:$0xff]  }
 0x38e   : > { %2467 = vmatpush1.bf16.xpose.msra.mxu0 %v5605_v50  ;;  %2510 = vmatpush1.bf16.xpose.msra.mxu1 %v5606_v51  ;;  %v5705_v50 = vld [vmem:[#allocation11 + $0x604] ss:$16 sps:$4 sm:$0xff]   ;;  %v5708_v51 = vld [vmem:[#allocation11 + $0x60c] ss:$16 sps:$4 sm:$0xff]  }
 0x38f   : > { %2468 = vmatprep.subr.bf16.mxu0 %v5607_v52  ;;  %2511 = vmatprep.subr.bf16.mxu1 %v5609_v53  ;;  %v5703_v52 = vld [vmem:[#allocation11 + $0x600] ss:$16 sps:$4 sm:$0xff]   ;;  %v5706_v53 = vld [vmem:[#allocation11 + $0x608] ss:$16 sps:$4 sm:$0xff]  }
 0x396   : > { %2469 = vmatpush2.bf16.xpose.msra.mxu0 %v5611_v54  ;;  %2512 = vmatpush2.bf16.xpose.msra.mxu1 %v5612_v55  ;;  %v5711_v54 = vld [vmem:[#allocation11 + $0x7e4] ss:$16 sps:$4 sm:$0xff]   ;;  %v5714_v55 = vld [vmem:[#allocation11 + $0x7ec] ss:$16 sps:$4 sm:$0xff]  }
 0x397   : > { %2470 = vmatprep.subr.bf16.mxu0 %v5613_v56  ;;  %2513 = vmatprep.subr.bf16.mxu1 %v5615_v57  ;;  %v5709_v56 = vld [vmem:[#allocation11 + $0x7e0] ss:$16 sps:$4 sm:$0xff]   ;;  %v5712_v57 = vld [vmem:[#allocation11 + $0x7e8] ss:$16 sps:$4 sm:$0xff]  }
 0x39e   : > { %2471 = vmatpush2.bf16.xpose.msra.mxu0 %v5617_v58  ;;  %2514 = vmatpush2.bf16.xpose.msra.mxu1 %v5618_v59  ;;  %v5717_v58 = vld [vmem:[#allocation11 + $0x7c4] ss:$16 sps:$4 sm:$0xff]   ;;  %v5720_v59 = vld [vmem:[#allocation11 + $0x7cc] ss:$16 sps:$4 sm:$0xff]  }
 0x39f   : > { %2472 = vmatprep.subr.bf16.mxu0 %v5619_v60  ;;  %2515 = vmatprep.subr.bf16.mxu1 %v5621_v61  ;;  %v5715_v60 = vld [vmem:[#allocation11 + $0x7c0] ss:$16 sps:$4 sm:$0xff]   ;;  %v5718_v61 = vld [vmem:[#allocation11 + $0x7c8] ss:$16 sps:$4 sm:$0xff]  }
 0x3a6   : > { %2473 = vmatpush2.bf16.xpose.msra.mxu0 %v5623_v62  ;;  %2516 = vmatpush2.bf16.xpose.msra.mxu1 %v5624_v63  ;;  %v5723_v62 = vld [vmem:[#allocation11 + $0x7a4] ss:$16 sps:$4 sm:$0xff]   ;;  %v5726_v63 = vld [vmem:[#allocation11 + $0x7ac] ss:$16 sps:$4 sm:$0xff]  }
 0x3a7   : > { %2474 = vmatprep.subr.bf16.mxu0 %v5625_v0  ;;  %2517 = vmatprep.subr.bf16.mxu1 %v5627_v1  ;;  %v5721_v0 = vld [vmem:[#allocation11 + $0x7a0] ss:$16 sps:$4 sm:$0xff]   ;;  %v5724_v1 = vld [vmem:[#allocation11 + $0x7a8] ss:$16 sps:$4 sm:$0xff]  }
 0x3ae   : > { %2475 = vmatpush2.bf16.xpose.msra.mxu0 %v5629_v2  ;;  %2518 = vmatpush2.bf16.xpose.msra.mxu1 %v5630_v3  ;;  %v5729_v2 = vld [vmem:[#allocation11 + $0x784] ss:$16 sps:$4 sm:$0xff]   ;;  %v5732_v3 = vld [vmem:[#allocation11 + $0x78c] ss:$16 sps:$4 sm:$0xff]  }
 0x3af   : > { %2476 = vmatprep.subr.bf16.mxu0 %v5631_v4  ;;  %2519 = vmatprep.subr.bf16.mxu1 %v5633_v5  ;;  %v5727_v4 = vld [vmem:[#allocation11 + $0x780] ss:$16 sps:$4 sm:$0xff]   ;;  %v5730_v5 = vld [vmem:[#allocation11 + $0x788] ss:$16 sps:$4 sm:$0xff]  }
 0x3b6   : > { %2477 = vmatpush2.bf16.xpose.msra.mxu0 %v5635_v8  ;;  %2520 = vmatpush2.bf16.xpose.msra.mxu1 %v5636_v9  ;;  %v5735_v8 = vld [vmem:[#allocation11 + $0x764] ss:$16 sps:$4 sm:$0xff]   ;;  %v5738_v9 = vld [vmem:[#allocation11 + $0x76c] ss:$16 sps:$4 sm:$0xff]  }
 0x3b7   : > { %2478 = vmatprep.subr.bf16.mxu0 %v5637_v10  ;;  %2521 = vmatprep.subr.bf16.mxu1 %v5639_v11  ;;  %v5733_v10 = vld [vmem:[#allocation11 + $0x760] ss:$16 sps:$4 sm:$0xff]   ;;  %v5736_v11 = vld [vmem:[#allocation11 + $0x768] ss:$16 sps:$4 sm:$0xff]  }
 0x3be   : > { %2479 = vmatpush2.bf16.xpose.msra.mxu0 %v5641_v12  ;;  %2522 = vmatpush2.bf16.xpose.msra.mxu1 %v5642_v13  ;;  %v5741_v12 = vld [vmem:[#allocation11 + $0x744] ss:$16 sps:$4 sm:$0xff]   ;;  %v5744_v13 = vld [vmem:[#allocation11 + $0x74c] ss:$16 sps:$4 sm:$0xff]  }
 0x3bf   : > { %2480 = vmatprep.subr.bf16.mxu0 %v5643_v14  ;;  %2523 = vmatprep.subr.bf16.mxu1 %v5645_v15  ;;  %v5739_v14 = vld [vmem:[#allocation11 + $0x740] ss:$16 sps:$4 sm:$0xff]   ;;  %v5742_v15 = vld [vmem:[#allocation11 + $0x748] ss:$16 sps:$4 sm:$0xff]  }
 0x3c6   : > { %2481 = vmatpush2.bf16.xpose.msra.mxu0 %v5647_v16  ;;  %2524 = vmatpush2.bf16.xpose.msra.mxu1 %v5648_v6  ;;  %v5747_v16 = vld [vmem:[#allocation11 + $0x724] ss:$16 sps:$4 sm:$0xff]   ;;  %v5750_v6 = vld [vmem:[#allocation11 + $0x72c] ss:$16 sps:$4 sm:$0xff]  }
 0x3c7   : > { %2482 = vmatprep.subr.bf16.mxu0 %v5649_v7  ;;  %2525 = vmatprep.subr.bf16.mxu1 %v5651_v17  ;;  %v5745_v7 = vld [vmem:[#allocation11 + $0x720] ss:$16 sps:$4 sm:$0xff]   ;;  %v5748_v17 = vld [vmem:[#allocation11 + $0x728] ss:$16 sps:$4 sm:$0xff]  }
 0x3ce   : > { %2483 = vmatpush2.bf16.xpose.msra.mxu0 %v5653_v18  ;;  %2526 = vmatpush2.bf16.xpose.msra.mxu1 %v5654_v19  ;;  %v5753_v18 = vld [vmem:[#allocation11 + $0x704] ss:$16 sps:$4 sm:$0xff]   ;;  %v5756_v19 = vld [vmem:[#allocation11 + $0x70c] ss:$16 sps:$4 sm:$0xff]  }
 0x3cf   : > { %2538 = vmatprep.subr.bf16.mxu0 %v5663_v20  ;;  %2581 = vmatprep.subr.bf16.mxu1 %v5666_v21  ;;  %v5751_v20 = vld [vmem:[#allocation11 + $0x700] ss:$16 sps:$4 sm:$0xff]   ;;  %v5754_v21 = vld [vmem:[#allocation11 + $0x708] ss:$16 sps:$4 sm:$0xff]  }
 0x3d5   : > { %2485 = vmatmul.mubr.bf16.vlgmr.msra.gmra.mxu0 %v7011_v22  ;;  %2528 = vmatmul.mubr.bf16.vlgmr.msra.gmra.mxu1 %v7014_v23 }
 0x3d6   : > { %2539 = vmatpush1.bf16.xpose.msra.mxu0 %v5661_v24  ;;  %2582 = vmatpush1.bf16.xpose.msra.mxu1 %v5664_v25  ;;  %v6445_v24 = vmov 0.0  }
 0x3d7   : > { %2570 = vmatprep.mubr.bf16.mxu0 %v7003_v44  ;;  %2613 = vmatprep.mubr.bf16.mxu1 %v7006_v45  ;;  %v5691_v44 = vld [vmem:[#allocation11 + $0x640] ss:$16 sps:$4 sm:$0xff]   ;;  %v5694_v45 = vld [vmem:[#allocation11 + $0x648] ss:$16 sps:$4 sm:$0xff]  }
 0x3d8   : > { %2540 = vmatprep.subr.bf16.mxu0 %v5669_v26  ;;  %2583 = vmatprep.subr.bf16.mxu1 %v5672_v27 }
 0x3de   : > { %2541 = vmatpush1.bf16.xpose.msra.mxu0 %v5667_v28  ;;  %2584 = vmatpush1.bf16.xpose.msra.mxu1 %v5670_v29 }
 0x3df   : > { %2542 = vmatprep.subr.bf16.mxu0 %v5675_v30  ;;  %2585 = vmatprep.subr.bf16.mxu1 %v5678_v31 }
 0x3e6   : > { %2543 = vmatpush1.bf16.xpose.msra.mxu0 %v5673_v32  ;;  %2586 = vmatpush1.bf16.xpose.msra.mxu1 %v5676_v33 }
 0x3e7   : > { %2544 = vmatprep.subr.bf16.mxu0 %v5681_v34  ;;  %2587 = vmatprep.subr.bf16.mxu1 %v5684_v35  ;;  %v2626_v35 = vld [vmem:[%s514_s22] sm:$0xff] }
 0x3ee   : > { %2545 = vmatpush1.bf16.xpose.msra.mxu0 %v5679_v36  ;;  %2588 = vmatpush1.bf16.xpose.msra.mxu1 %v5682_v37  ;;  %v2624_v37 = vld [vmem:[%s505_s15] sm:$0xff] }
 0x3ef   : > { %2546 = vmatprep.subr.bf16.mxu0 %v5687_v38  ;;  %2589 = vmatprep.subr.bf16.mxu1 %v5690_v39  ;;  %v2625_v38 = vld [vmem:[%s505_s15 + $0x8] sm:$0xff] }
 0x3f6   : > { %2547 = vmatpush1.bf16.xpose.msra.mxu0 %v5685_v40  ;;  %2590 = vmatpush1.bf16.xpose.msra.mxu1 %v5688_v41  ;;  %v2627_v40 = vld [vmem:[%s514_s22 + $0x8] sm:$0xff] }
 0x3f7   : > { %2548 = vmatprep.subr.bf16.mxu0 %v5693_v42  ;;  %2591 = vmatprep.subr.bf16.mxu1 %v5696_v43 }
 0x3fe   : > { %2549 = vmatpush1.bf16.xpose.msra.mxu0 %v5691_v44  ;;  %2592 = vmatpush1.bf16.xpose.msra.mxu1 %v5694_v45 }
 0x3ff   : > { %2550 = vmatprep.subr.bf16.mxu0 %v5699_v46  ;;  %2593 = vmatprep.subr.bf16.mxu1 %v5702_v47 }
 0x406   : > { %2551 = vmatpush1.bf16.xpose.msra.mxu0 %v5697_v48  ;;  %2594 = vmatpush1.bf16.xpose.msra.mxu1 %v5700_v49 }
 0x407   : > { %2552 = vmatprep.subr.bf16.mxu0 %v5705_v50  ;;  %2595 = vmatprep.subr.bf16.mxu1 %v5708_v51 }
 0x40e   : > { %2553 = vmatpush1.bf16.xpose.msra.mxu0 %v5703_v52  ;;  %2596 = vmatpush1.bf16.xpose.msra.mxu1 %v5706_v53 }
 0x40f   : > { %2554 = vmatprep.subr.bf16.mxu0 %v5711_v54  ;;  %2597 = vmatprep.subr.bf16.mxu1 %v5714_v55 }
 0x416   : > { %2555 = vmatpush2.bf16.xpose.msra.mxu0 %v5709_v56  ;;  %2598 = vmatpush2.bf16.xpose.msra.mxu1 %v5712_v57  ;;  %v5757_v57 = vld [vmem:[#allocation2] ss:$16 sps:$4 sm:$0xff]  }
 0x417   : > { %2556 = vmatprep.subr.bf16.mxu0 %v5717_v58  ;;  %2599 = vmatprep.subr.bf16.mxu1 %v5720_v59  ;;  %v5758_v58 = vld [vmem:[#allocation2 + $0x4] ss:$16 sps:$4 sm:$0xff]   ;;  %v5759_v59 = vld [vmem:[#allocation2 + $0x8] ss:$16 sps:$4 sm:$0xff]  }
 0x41e   : > { %2557 = vmatpush2.bf16.xpose.msra.mxu0 %v5715_v60  ;;  %2600 = vmatpush2.bf16.xpose.msra.mxu1 %v5718_v61  ;;  %v5760_v60 = vld [vmem:[#allocation2 + $0xc] ss:$16 sps:$4 sm:$0xff]  }
 0x41f   : > { %2558 = vmatprep.subr.bf16.mxu0 %v5723_v62  ;;  %2601 = vmatprep.subr.bf16.mxu1 %v5726_v63 }
 0x426   : > { %2559 = vmatpush2.bf16.xpose.msra.mxu0 %v5721_v0  ;;  %2602 = vmatpush2.bf16.xpose.msra.mxu1 %v5724_v1 }
 0x427   : > { %2560 = vmatprep.subr.bf16.mxu0 %v5729_v2  ;;  %2603 = vmatprep.subr.bf16.mxu1 %v5732_v3 }
 0x42e   : > { %2561 = vmatpush2.bf16.xpose.msra.mxu0 %v5727_v4  ;;  %2604 = vmatpush2.bf16.xpose.msra.mxu1 %v5730_v5 }
 0x42f   : > { %2562 = vmatprep.subr.bf16.mxu0 %v5735_v8  ;;  %2605 = vmatprep.subr.bf16.mxu1 %v5738_v9  ;;  %v2652_v9 = vlaneseq }
 0x436   : > { %2563 = vmatpush2.bf16.xpose.msra.mxu0 %v5733_v10  ;;  %2606 = vmatpush2.bf16.xpose.msra.mxu1 %v5736_v11  ;;  %v2653_v10 = vshrl.u32 %v2652_v9, 7  ;;  %v2659_v11 = vand.u32 127, %v2652_v9 }
 0x437   : > { %2564 = vmatprep.subr.bf16.mxu0 %v5741_v12  ;;  %2607 = vmatprep.subr.bf16.mxu1 %v5744_v13  ;;  %v2655_v12 = vstv %s4619_s0  ;;  %v2660_v13 = vstv %s4620_s18 }
 0x43e   : > { %2565 = vmatpush2.bf16.xpose.msra.mxu0 %v5739_v14  ;;  %2608 = vmatpush2.bf16.xpose.msra.mxu1 %v5742_v15  ;;  %v2656_v14 = vadd.s32 %v2655_v12, %v2653_v10  ;;  %v2661_v15 = vadd.s32 %v2660_v13, %v2659_v11 }
 0x43f   : > { %2566 = vmatprep.subr.bf16.mxu0 %v5747_v16  ;;  %2609 = vmatprep.subr.bf16.mxu1 %v5750_v6  ;;  %v2654_v16 = vadd.s32 8, %v2653_v10 }
 0x440   : > { %vm2662_vm2 = vcmp.ge.s32.totalorder %v2656_v14, %v2661_v15 }
 0x446   : > { %2567 = vmatpush2.bf16.xpose.msra.mxu0 %v5745_v7  ;;  %2610 = vmatpush2.bf16.xpose.msra.mxu1 %v5748_v17  ;;  %v2657_v7 = vadd.s32 %v2655_v12, %v2654_v16  ;;  %v6450_v12 = vmov 2  }
 0x447   : > { %2568 = vmatprep.subr.bf16.mxu0 %v5753_v18  ;;  %2611 = vmatprep.subr.bf16.mxu1 %v5756_v19 }
 0x448   : > { %vm2663_vm4 = vcmp.ge.s32.totalorder %v2657_v7, %v2661_v15 }
 0x44e   : > { %2569 = vmatpush2.bf16.xpose.msra.mxu0 %v5751_v20  ;;  %2612 = vmatpush2.bf16.xpose.msra.mxu1 %v5754_v21 }
 0x44f   : > { %5070 = vmatprep.subr.bf16.mxu0 %v6445_v24  ;;  %5076 = vmatprep.subr.bf16.mxu1 %v6445_v24 }
 0x455   : > { %2571 = vmatmul.mubr.bf16.vlgmr.msra.gmra.mxu0 %v7011_v22  ;;  %2614 = vmatmul.mubr.bf16.vlgmr.msra.gmra.mxu1 %v7014_v23 }
 0x456   : > { %5072 = vmatprep.mubr.msk.bf16.mxu0 %vm6446_vm1, %v6445_v24  ;;  %5078 = vmatprep.mubr.msk.bf16.mxu1 %vm6446_vm1, %v6445_v24 }
 0x495   : > { %v2486_v25 = vpop.f32.mrf.mxu0  ;;  %v2529_v26 = vpop.f32.mrf.mxu1 }
 0x496   : > { %v2530_v27 = vadd.f32 %v2529_v26, %v2486_v25 }
 0x497   : > { %v2488_v28 = vpop.f32.mrf.mxu0  ;;  %v2531_v22 = vpop.f32.mrf.mxu1 }
 0x498   : > { %v2532_v23 = vadd.f32 %v2531_v22, %v2488_v28  ;;  %2630 = vrot.lane.b32.xlu0 %v2530_v27, %s6447_s11  ;;  %v2628_v43 = vmul.f32 %v2624_v37, %v2530_v27 }
 0x499   : > { %v2490_v29 = vpop.f32.mrf.mxu0  ;;  %v2533_v30 = vpop.f32.mrf.mxu1 }
 0x49a   : > { %v2534_v31 = vadd.f32 %v2533_v30, %v2490_v29  ;;  %2642 = vrot.lane.b32.xlu1 %v2532_v23, %s6447_s11  ;;  %v2640_v47 = vmul.f32 %v2624_v37, %v2532_v23 }
 0x49b   : > { %v2492_v32 = vpop.f32.mrf.mxu0  ;;  %v2535_v33 = vpop.f32.mrf.mxu1 }
 0x49c   : > { %v2536_v34 = vadd.f32 %v2535_v33, %v2492_v32  ;;  %2632 = vrot.lane.b32.xlu0 %v2534_v31, %s6447_s11  ;;  %v2629_v44 = vmul.f32 %v2625_v38, %v2534_v31 }
 0x49e   : > { %2644 = vrot.lane.b32.xlu1 %v2536_v34, %s6447_s11  ;;  %v2641_v49 = vmul.f32 %v2625_v38, %v2536_v34  ;;  %v6448_v34 = vmov 0  }
 0x49f   : > { %5548 = vset.pattern.permute.xlu1 %v6448_v34  ;;  %5549 = vset.pattern.permute.xlu0 %v6448_v34 }
 0x50a   : > { %v2631_v36 = vpop.permute.xlu0 %2630 }
 0x50b   : > { %v2634_v41 = vmul.f32 %v2631_v36, %v2626_v35 }
 0x50c   : > { %v2643_v39 = vpop.permute.xlu1 %2642 }
 0x50d   : > { %v2646_v45 = vmul.f32 %v2643_v39, %v2626_v35  ;;  %v2636_v50 = vadd.f32 %v2634_v41, %v2628_v43 }
 0x50e   : > { %v2633_v42 = vpop.permute.xlu0 %2632 }
 0x50f   : > { %v2635_v46 = vmul.f32 %v2633_v42, %v2627_v40  ;;  %v2648_v53 = vadd.f32 %v2646_v45, %v2640_v47 }
 0x510   : > { %v2645_v48 = vpop.permute.xlu1 %2644 }
 0x511   : > { %v2637_v51 = vadd.f32 %v2635_v46, %v2629_v44  ;;  %v2647_v52 = vmul.f32 %v2645_v48, %v2627_v40 }
 0x513   : > { %v2638_v54 = vpack.c.bf16 %v2637_v51, %v2636_v50  ;;  %v2649_v55 = vadd.f32 %v2647_v52, %v2641_v49  ;;  %v2715_v51 = vld [vmem:[#allocation3] sm:$0xff] }
 0x515   : > { %v2650_v56 = vpack.c.bf16 %v2649_v55, %v2648_v53  ;;  %5071 = vmatpush3.bf16.xpose.msra.mxu0 %v2638_v54  ;;  %v2572_v61 = vpop.f32.mrf.mxu0  ;;  %v2615_v62 = vpop.f32.mrf.mxu1 }
 0x516   : > { %5082 = vmatprep.subr.bf16.mxu0 %v6445_v24  ;;  %v2616_v1 = vadd.f32 %v2615_v62, %v2572_v61 }
 0x517   : > { %v2574_v63 = vpop.f32.mrf.mxu0  ;;  %v2617_v0 = vpop.f32.mrf.mxu1 }
 0x518   : > { %v7045_v2 = vadd.f32 %v2617_v0, %v2574_v63 }
 0x519   : > { %v2576_v3 = vpop.f32.mrf.mxu0  ;;  %v2619_v4 = vpop.f32.mrf.mxu1 }
 0x51a   : > { %v2620_v5 = vadd.f32 %v2619_v4, %v2576_v3 }
 0x51b   : > { %v7055_v6 = vpop.f32.mrf.mxu0 }
 0x51c   : > { %5073 = vmatmul.mubr.bf16.vlgmr.msra.gmra.mxu0 %v5757_v57  ;;  %v7047_v8 = vpack.c.bf16 %v2620_v5, %v2616_v1 }
 0x51d   : > { %5083 = vmatpush3.bf16.xpose.msra.mxu0 %v2638_v54  ;;  %5084 = vmatprep.mubr.msk.bf16.mxu0 %vm6446_vm1, %v6445_v24  ;;  %v2716_v54 = vld [vmem:[#allocation3 + $0x8] sm:$0xff] }
 0x51e   : > { %5094 = vmatprep.subr.bf16.mxu0 %v6445_v24  ;;  %5077 = vmatpush3.bf16.msra.mxu1 %v7047_v8 }
 0x51f   : > { %5088 = vmatprep.subr.bf16.mxu1 %v6445_v24 }
 0x524   : > { %5085 = vmatmul.mubr.bf16.vlgmr.msra.gmra.mxu0 %v5758_v58  ;;  %v6449_v58 = vmov 1  }
 0x525   : > { %5095 = vmatpush3.bf16.xpose.msra.mxu0 %v2650_v56  ;;  %5096 = vmatprep.mubr.msk.bf16.mxu0 %vm6446_vm1, %v6445_v24 }
 0x526   : > { %5106 = vmatprep.subr.bf16.mxu0 %v6445_v24 }
 0x52c   : > { %5097 = vmatmul.mubr.bf16.vlgmr.msra.gmra.mxu0 %v5759_v59 }
 0x52d   : > { %5107 = vmatpush3.bf16.xpose.msra.mxu0 %v2650_v56  ;;  %5108 = vmatprep.mubr.msk.bf16.mxu0 %vm6446_vm1, %v6445_v24 }
 0x534   : > { %5109 = vmatmul.mubr.bf16.vlgmr.msra.gmra.mxu0 %v5760_v60 }
 0x5dc   : > { %v2706_v17 = vpop.f32.mrf.mxu0 }
 0x5dd   : > { %v7058_v18 = vsel %vm2662_vm2, %v2706_v17, -2.3819763e+38 }
 0x5de   : > { %v5074_v19 = vpop.f32.mrf.mxu0  ;;  %v2720_v20 = vsel %vm2719_vm3, %v7058_v18, -inf }
 0x5df   : > { %2721 = vmax.xlane.f32.xlu0 %v2720_v20 }
 0x5e0   : > { %v2709_v21 = vpop.f32.mrf.mxu0 }
 0x5e1   : > { %v7063_v25 = vsel %vm2663_vm4, %v2709_v21, -2.3819763e+38 }
 0x5e2   : > { %v5075_v26 = vpop.f32.mrf.mxu0  ;;  %v2723_v27 = vsel %vm2719_vm3, %v7063_v25, -inf }
 0x5e3   : > { %2724 = vmax.xlane.f32.xlu1 %v2723_v27 }
 0x5e4   : > { %v2870_v28 = vpop.f32.mrf.mxu0 }
 0x5e5   : > { %v7068_v22 = vsel %vm2662_vm2, %v2870_v28, -2.3819763e+38  ;;  %v6451_v28 = vmov 3  }
 0x5e6   : > { %v5086_v23 = vpop.f32.mrf.mxu0  ;;  %v2883_v29 = vsel %vm2719_vm3, %v7068_v22, -inf }
 0x5e7   : > { %2884 = vmax.xlane.f32.xlu0 %v2883_v29 }
 0x5e8   : > { %v2873_v30 = vpop.f32.mrf.mxu0 }
 0x5e9   : > { %v7073_v31 = vsel %vm2663_vm4, %v2873_v30, -2.3819763e+38 }
 0x5ea   : > { %v5087_v32 = vpop.f32.mrf.mxu0  ;;  %v2886_v33 = vsel %vm2719_vm3, %v7073_v31, -inf }
 0x5eb   : > { %2887 = vmax.xlane.f32.xlu0 %v2886_v33 }
 0x5ec   : > { %v3033_v35 = vpop.f32.mrf.mxu0 }
 0x5ed   : > { %v7080_v36 = vsel %vm2662_vm2, %v3033_v35, -2.3819763e+38 }
 0x5ee   : > { %v5098_v37 = vpop.f32.mrf.mxu0  ;;  %v3046_v38 = vsel %vm2719_vm3, %v7080_v36, -inf }
 0x5ef   : > { %3047 = vmax.xlane.f32.xlu1 %v3046_v38 }
 0x5f0   : > { %v3036_v39 = vpop.f32.mrf.mxu0 }
 0x5f1   : > { %v7085_v40 = vsel %vm2663_vm4, %v3036_v39, -2.3819763e+38 }
 0x5f2   : > { %v5099_v41 = vpop.f32.mrf.mxu0  ;;  %v3049_v42 = vsel %vm2719_vm3, %v7085_v40, -inf }
 0x5f3   : > { %3050 = vmax.xlane.f32.xlu0 %v3049_v42 }
 0x5f4   : > { %v3196_v43 = vpop.f32.mrf.mxu0 }
 0x5f5   : > { %v7090_v44 = vsel %vm2662_vm2, %v3196_v43, -2.3819763e+38 }
 0x5f6   : > { %v5110_v45 = vpop.f32.mrf.mxu0  ;;  %v3209_v46 = vsel %vm2719_vm3, %v7090_v44, -inf }
 0x5f7   : > { %3210 = vmax.xlane.f32.xlu1 %v3209_v46 }
 0x5f8   : > { %v3199_v47 = vpop.f32.mrf.mxu0 }
 0x5f9   : > { %v7095_v48 = vsel %vm2663_vm4, %v3199_v47, -2.3819763e+38 }
 0x5fa   : > { %v5111_v49 = vpop.f32.mrf.mxu0  ;;  %v3212_v50 = vsel %vm2719_vm3, %v7095_v48, -inf }
 0x5fb   : > { %3213 = vmax.xlane.f32.xlu0 %v3212_v50 }
 0x668   : > { %v2722_v52 = vpop.xlane.xlu0 %2721 }
 0x669   : > { %v2726_v53 = vmax.f32 %v2715_v51, %v2722_v52 }
 0x66b   : > { %2826 = vst.msk [vmem:[#allocation3] sm:$0xff] %vm2760_vm5, %v2726_v53  ;;  %2736 = vperm.xlu1 %5548, %v2726_v53   ;;  %v2728_v9 = vsub.f32 %v2715_v51, %v2726_v53 }
 0x66c   : > { %v2725_v55 = vpop.xlane.xlu1 %2724 }
 0x66d   : > { %v2727_v56 = vmax.f32 %v2716_v54, %v2725_v55  ;;  %v2730_v14 = vmul.f32 1.442695, %v2728_v9 }
 0x66f   : > { %v2729_v57 = vsub.f32 %v2716_v54, %v2727_v56  ;;  %2827 = vst.msk [vmem:[#allocation3 + $0x8] sm:$0xff] %vm2760_vm5, %v2727_v56  ;;  %2741 = vperm.xlu0 %5549, %v2727_v56   ;;  %5550 = vset.pattern.permute.xlu1 %v6449_v58 }
 0x670   : > { %v2885_v59 = vpop.xlane.xlu0 %2884 }
 0x671   : > { %v2732_v60 = vmul.f32 1.442695, %v2729_v57 }
 0x672   : > { %v2879_v61 = vld [vmem:[#allocation3] sm:$0xff] }
 0x673   : > { %5761 = vpow2.f32 %v2732_v60  ;;  %v2889_v62 = vmax.f32 %v2879_v61, %v2885_v59 }
 0x674   : > { %v2888_v63 = vpop.xlane.xlu0 %2887 }
 0x675   : > { %2989 = vst.msk [vmem:[#allocation3] sm:$0xff] %vm2923_vm6, %v2889_v62  ;;  %2899 = vperm.xlu1 %5550, %v2889_v62   ;;  %v2891_v7 = vsub.f32 %v2879_v61, %v2889_v62 }
 0x676   : > { %v2880_v0 = vld [vmem:[#allocation3 + $0x8] sm:$0xff] }
 0x677   : > { %v2890_v1 = vmax.f32 %v2880_v0, %v2888_v63  ;;  %v2893_v20 = vmul.f32 1.442695, %v2891_v7 }
 0x678   : > { %v3048_v4 = vpop.xlane.xlu1 %3047 }
 0x679   : > { %v2892_v3 = vsub.f32 %v2880_v0, %v2890_v1  ;;  %2990 = vst.msk [vmem:[#allocation3 + $0x8] sm:$0xff] %vm2923_vm6, %v2890_v1  ;;  %2904 = vperm.xlu1 %5550, %v2890_v1  }
 0x67b   : > { %v2895_v5 = vmul.f32 1.442695, %v2892_v3 }
 0x67c   : > { %v3042_v10 = vld [vmem:[#allocation3] sm:$0xff]  ;;  %v3051_v16 = vpop.xlane.xlu0 %3050 }
 0x67d   : > { %5763 = vpow2.f32 %v2895_v5  ;;  %v3052_v11 = vmax.f32 %v3042_v10, %v3048_v4  ;;  %5551 = vset.pattern.permute.xlu1 %v6450_v12 }
 0x67e   : > { %5765 = vpow2.f32 %v2730_v14 }
 0x67f   : > { %3152 = vst.msk [vmem:[#allocation3] sm:$0xff] %vm3086_vm7, %v3052_v11  ;;  %3062 = vperm.xlu1 %5551, %v3052_v11   ;;  %v3054_v21 = vsub.f32 %v3042_v10, %v3052_v11  ;;  %5767 = vpow2.f32 %v2893_v20 }
 0x680   : > { %v7105_v13 = vpop.eup %5761  ;;  %v3043_v15 = vld [vmem:[#allocation3 + $0x8] sm:$0xff]  ;;  %v3211_v19 = vpop.xlane.xlu1 %3210 }
 0x681   : > { %v3053_v17 = vmax.f32 %v3043_v15, %v3051_v16  ;;  %2772 = vperm.xlu0 %5549, %v7105_v13   ;;  %v3056_v30 = vmul.f32 1.442695, %v3054_v21 }
 0x683   : > { %3153 = vst.msk [vmem:[#allocation3 + $0x8] sm:$0xff] %vm3086_vm7, %v3053_v17  ;;  %3067 = vperm.xlu1 %5551, %v3053_v17   ;;  %v3055_v32 = vsub.f32 %v3043_v15, %v3053_v17  ;;  %5769 = vpow2.f32 %v3056_v30 }
 0x684   : > { %v3214_v35 = vpop.xlane.xlu0 %3213 }
 0x685   : > { %5555 = vset.pattern.permute.xlu0 %v6449_v58  ;;  %v3058_v39 = vmul.f32 1.442695, %v3055_v32 }
 0x686   : > { %v7110_v26 = vld [vmem:[#allocation3] sm:$0xff] }
 0x687   : > { %v7113_v27 = vmax.f32 %v7110_v26, %v3211_v19  ;;  %5552 = vset.pattern.permute.xlu1 %v6451_v28  ;;  %5771 = vpow2.f32 %v3058_v39 }
 0x689   : > { %v3217_v23 = vsub.f32 %v7110_v26, %v7113_v27  ;;  %3315 = vst.msk [vmem:[#allocation3] sm:$0xff] %vm3249_vm8, %v7113_v27  ;;  %3225 = vperm.xlu1 %5552, %v7113_v27  }
 0x68a   : > { %v7120_v29 = vpop.eup %5763  ;;  %v7122_v33 = vld [vmem:[#allocation3 + $0x8] sm:$0xff] }
 0x68b   : > { %v7125_v37 = vmax.f32 %v7122_v33, %v3214_v35  ;;  %2935 = vperm.xlu0 %5555, %v7120_v29   ;;  %v7133_v41 = vpop.eup %5765 }
 0x68c   : > { %v7137_v42 = vpop.eup %5767 }
 0x68d   : > { %v3218_v38 = vsub.f32 %v7122_v33, %v7125_v37  ;;  %3316 = vst.msk [vmem:[#allocation3 + $0x8] sm:$0xff] %vm3249_vm8, %v7125_v37  ;;  %3230 = vperm.xlu1 %5552, %v7125_v37  }
 0x68f   : > { %5557 = vset.pattern.permute.xlu0 %v6451_v28  ;;  %v3221_v19 = vmul.f32 1.442695, %v3218_v38 }
 0x690   : > { %v7141_v43 = vpop.eup %5769 }
 0x691   : > { %5553 = vset.pattern.permute.xlu1 %v6448_v34 }
 0x692   : > { %2767 = vperm.xlu1 %5553, %v7133_v41  }
 0x694   : > { %v7144_v45 = vpop.eup %5771 }
 0x696   : > { %5554 = vset.pattern.permute.xlu1 %v6449_v58 }
 0x697   : > { %2930 = vperm.xlu1 %5554, %v7137_v42  }
 0x69b   : > { %5556 = vset.pattern.permute.xlu1 %v6450_v12 }
 0x69c   : > { %3093 = vperm.xlu1 %5556, %v7141_v43  }
 0x6a0   : > { %3098 = vperm.xlu1 %5556, %v7144_v45  }
 0x6a4   : > { %5558 = vset.pattern.permute.xlu1 %v6451_v28 }
 0x6e6   : > { %v2737_v34 = vpop.permute.xlu1 %2736 }
 0x6e7   : > { %v2744_v46 = vsub.f32 %v7058_v18, %v2737_v34 }
 0x6e9   : > { %v2746_v47 = vmul.f32 1.442695, %v2744_v46  ;;  %v2717_v46 = vld [vmem:[#allocation4] sm:$0xff] }
 0x6ea   : > { %v2742_v49 = vpop.permute.xlu0 %2741 }
 0x6eb   : > { %5773 = vpow2.f32 %v2746_v47  ;;  %v2745_v50 = vsub.f32 %v7063_v25, %v2742_v49  ;;  %v2750_v47 = vmul.f32 %v7133_v41, %v2717_v46  ;;  %v3252_v46 = vld [vmem:[#allocation5 + $0x10] sm:$0xff] }
 0x6ed   : > { %v2748_v51 = vmul.f32 1.442695, %v2745_v50 }
 0x6ef   : > { %5775 = vpow2.f32 %v2748_v51  ;;  %v2718_v51 = vld [vmem:[#allocation4 + $0x8] sm:$0xff] }
 0x6f0   : > { %v2900_v52 = vpop.permute.xlu1 %2899  ;;  %v2751_v27 = vmul.f32 %v7105_v13, %v2718_v51  ;;  %v3253_v51 = vld [vmem:[#allocation5 + $0x38] sm:$0xff] }
 0x6f1   : > { %v2907_v53 = vsub.f32 %v7068_v22, %v2900_v52 }
 0x6f3   : > { %v2909_v54 = vmul.f32 1.442695, %v2907_v53 }
 0x6f4   : > { %v2905_v55 = vpop.permute.xlu1 %2904 }
 0x6f5   : > { %5777 = vpow2.f32 %v2909_v54  ;;  %v2908_v56 = vsub.f32 %v7073_v31, %v2905_v55  ;;  %v2621_v31 = vpop.f32.mrf.mxu1 }
 0x6f6   : > { %v2622_v4 = vadd.f32 %v2621_v31, %v7055_v6 }
 0x6f7   : > { %v2911_v57 = vmul.f32 1.442695, %v2908_v56 }
 0x6f8   : > { %v5774_v58 = vpop.eup %5773  ;;  %v2651_v12 = vpack.c.bf16 %v2622_v4, %v7045_v2  ;;  %v2763_v4 = vld [vmem:[#allocation5 + $0x30] sm:$0xff] }
 0x6f9   : > { %5779 = vpow2.f32 %v2911_v57  ;;  %v2752_v18 = vsel %vm2719_vm3, %v5774_v58, 0.0 }
 0x6fa   : > { %v3063_v59 = vpop.permute.xlu1 %3062  ;;  %2753 = vadd.xlane.f32.xlu1 %v2752_v18 }
 0x6fb   : > { %v3070_v60 = vsub.f32 %v7080_v36, %v3063_v59 }
 0x6fc   : > { %v5776_v25 = vpop.eup %5775  ;;  %v2773_v39 = vpop.permute.xlu0 %2772 }
 0x6fd   : > { %v3072_v61 = vmul.f32 1.442695, %v3070_v60  ;;  %v2755_v62 = vsel %vm2719_vm3, %v5776_v25, 0.0  ;;  %v2777_v63 = vpack.c.bf16 %v5776_v25, %v5774_v58 }
 0x6fe   : > { %v3068_v22 = vpop.permute.xlu1 %3067  ;;  %2756 = vadd.xlane.f32.xlu0 %v2755_v62 }
 0x6ff   : > { %5781 = vpow2.f32 %v3072_v61  ;;  %v3071_v0 = vsub.f32 %v7085_v40, %v3068_v22  ;;  %5079 = vmatmul.mubr.msk.bf16.vlgmr.msra.gmra.mxu1 %vm2719_vm3, %v2777_v63 }
 0x700   : > { %5089 = vmatpush3.bf16.msra.mxu1 %v7047_v8  ;;  %5090 = vmatprep.mubr.msk.bf16.mxu1 %vm6446_vm1, %v6445_v24 }
 0x701   : > { %v3074_v1 = vmul.f32 1.442695, %v3071_v0  ;;  %5100 = vmatprep.subr.bf16.mxu1 %v6445_v24 }
 0x702   : > { %v5778_v36 = vpop.eup %5777 }
 0x703   : > { %5783 = vpow2.f32 %v3074_v1  ;;  %v2915_v3 = vsel %vm2719_vm3, %v5778_v36, 0.0 }
 0x704   : > { %v3226_v5 = vpop.permute.xlu1 %3225  ;;  %2916 = vadd.xlane.f32.xlu1 %v2915_v3 }
 0x705   : > { %v3233_v40 = vsub.f32 %v7090_v44, %v3226_v5 }
 0x706   : > { %v5780_v9 = vpop.eup %5779  ;;  %v2936_v49 = vpop.permute.xlu0 %2935 }
 0x707   : > { %v3235_v10 = vmul.f32 1.442695, %v3233_v40  ;;  %v2918_v8 = vsel %vm2719_vm3, %v5780_v9, 0.0  ;;  %v2940_v11 = vpack.c.bf16 %v5780_v9, %v5778_v36  ;;  %v2764_v40 = vld [vmem:[#allocation5 + $0x8] sm:$0xff] }
 0x708   : > { %v3231_v14 = vpop.permute.xlu1 %3230  ;;  %2919 = vadd.xlane.f32.xlu0 %v2918_v8  ;;  %v2776_v8 = vmul.f32 %v2773_v39, %v2764_v40 }
 0x709   : > { %5785 = vpow2.f32 %v3235_v10  ;;  %v3234_v15 = vsub.f32 %v7095_v48, %v3231_v14  ;;  %5091 = vmatmul.mubr.msk.bf16.vlgmr.msra.gmra.mxu1 %vm2719_vm3, %v2940_v11  ;;  %v2926_v14 = vld [vmem:[#allocation5] sm:$0xff] }
 0x70a   : > { %5101 = vmatpush3.bf16.msra.mxu1 %v2651_v12  ;;  %5102 = vmatprep.mubr.msk.bf16.mxu1 %vm6446_vm1, %v6445_v24 }
 0x70b   : > { %v3237_v6 = vmul.f32 1.442695, %v3234_v15  ;;  %5112 = vmatprep.subr.bf16.mxu1 %v6445_v24 }
 0x70c   : > { %v5782_v44 = vpop.eup %5781 }
 0x70d   : > { %5787 = vpow2.f32 %v3237_v6  ;;  %v3078_v16 = vsel %vm2719_vm3, %v5782_v44, 0.0  ;;  %v2768_v35 = vpop.permute.xlu1 %2767 }
 0x70e   : > { %3079 = vadd.xlane.f32.xlu1 %v3078_v16  ;;  %5789 = vpow2.f32 %v3221_v19  ;;  %v2775_v5 = vmul.f32 %v2768_v35, %v2763_v4 }
 0x710   : > { %v5784_v2 = vpop.eup %5783 }
 0x711   : > { %v3081_v7 = vsel %vm2719_vm3, %v5784_v2, 0.0  ;;  %v3103_v17 = vpack.c.bf16 %v5784_v2, %v5782_v44  ;;  %v2927_v44 = vld [vmem:[#allocation5 + $0x20] sm:$0xff] }
 0x712   : > { %3082 = vadd.xlane.f32.xlu0 %v3081_v7  ;;  %v2931_v37 = vpop.permute.xlu1 %2930 }
 0x713   : > { %5103 = vmatmul.mubr.msk.bf16.vlgmr.msra.gmra.mxu1 %vm2719_vm3, %v3103_v17  ;;  %v2938_v6 = vmul.f32 %v2931_v37, %v2926_v14  ;;  %v2939_v17 = vmul.f32 %v2936_v49, %v2927_v44 }
 0x714   : > { %5113 = vmatpush3.bf16.msra.mxu1 %v2651_v12  ;;  %5114 = vmatprep.mubr.msk.bf16.mxu1 %vm6446_vm1, %v6445_v24  ;;  %v3219_v24 = vmul.f32 1.442695, %v3217_v23 }
 0x716   : > { %v5786_v48 = vpop.eup %5785  ;;  %5791 = vpow2.f32 %v3219_v24 }
 0x717   : > { %v3241_v20 = vsel %vm2719_vm3, %v5786_v48, 0.0  ;;  %v7184_v38 = vpop.permute.xlu1 %3093 }
 0x718   : > { %3242 = vadd.xlane.f32.xlu1 %v3241_v20  ;;  %v3089_v20 = vld [vmem:[#allocation5 + $0x18] sm:$0xff] }
 0x71a   : > { %v5788_v21 = vpop.eup %5787 }
 0x71b   : > { %v3244_v28 = vsel %vm2719_vm3, %v5788_v21, 0.0  ;;  %v3266_v30 = vpack.c.bf16 %v5788_v21, %v5786_v48  ;;  %v5790_v32 = vpop.eup %5789  ;;  %v7186_v34 = vpop.permute.xlu1 %3098 }
 0x71c   : > { %3245 = vadd.xlane.f32.xlu0 %v3244_v28  ;;  %v3101_v28 = vmul.f32 %v7184_v38, %v3089_v20 }
 0x71d   : > { %5115 = vmatmul.mubr.msk.bf16.vlgmr.msra.gmra.mxu1 %vm2719_vm3, %v3266_v30  ;;  %v3090_v30 = vld [vmem:[#allocation5 + $0x28] sm:$0xff] }
 0x71e   : > { %v3102_v35 = vmul.f32 %v7186_v34, %v3090_v30 }
 0x723   : > { %v5792_v33 = vpop.eup %5791 }
 0x729   : > { %3261 = vperm.xlu1 %5558, %v5790_v32  }
 0x732   : > { %3256 = vperm.xlu0 %5557, %v5792_v33  }
 0x783   : > { %v2754_v50 = vpop.xlane.xlu1 %2753 }
 0x784   : > { %v2758_v26 = vadd.f32 %v2754_v50, %v2750_v47 }
 0x786   : > { %2761 = vst.msk [vmem:[#allocation4] sm:$0xff] %vm2760_vm5, %v2758_v26 }
 0x787   : > { %v2757_v23 = vpop.xlane.xlu0 %2756 }
 0x788   : > { %v2759_v52 = vadd.f32 %v2757_v23, %v2751_v27 }
 0x78a   : > { %2762 = vst.msk [vmem:[#allocation4 + $0x8] sm:$0xff] %vm2760_vm5, %v2759_v52 }
 0x78d   : > { %v2881_v53 = vld [vmem:[#allocation4] sm:$0xff]  ;;  %v2917_v55 = vpop.xlane.xlu1 %2916 }
 0x78e   : > { %v2913_v54 = vmul.f32 %v7137_v42, %v2881_v53 }
 0x790   : > { %v2921_v56 = vadd.f32 %v2917_v55, %v2913_v54 }
 0x791   : > { %v2882_v57 = vld [vmem:[#allocation4 + $0x8] sm:$0xff]  ;;  %v2920_v58 = vpop.xlane.xlu0 %2919 }
 0x792   : > { %2924 = vst.msk [vmem:[#allocation4] sm:$0xff] %vm2923_vm6, %v2921_v56  ;;  %v2914_v41 = vmul.f32 %v7120_v29, %v2882_v57 }
 0x794   : > { %v2922_v18 = vadd.f32 %v2920_v58, %v2914_v41 }
 0x796   : > { %2925 = vst.msk [vmem:[#allocation4 + $0x8] sm:$0xff] %vm2923_vm6, %v2922_v18 }
 0x797   : > { %v3080_v60 = vpop.xlane.xlu1 %3079 }
 0x799   : > { %v3044_v59 = vld [vmem:[#allocation4] sm:$0xff] }
 0x79a   : > { %v3076_v13 = vmul.f32 %v7141_v43, %v3044_v59 }
 0x79b   : > { %v3083_v62 = vpop.xlane.xlu0 %3082 }
 0x79c   : > { %v3084_v25 = vadd.f32 %v3080_v60, %v3076_v13 }
 0x79d   : > { %v3045_v61 = vld [vmem:[#allocation4 + $0x8] sm:$0xff] }
 0x79e   : > { %3087 = vst.msk [vmem:[#allocation4] sm:$0xff] %vm3086_vm7, %v3084_v25  ;;  %v3077_v42 = vmul.f32 %v7144_v45, %v3045_v61 }
 0x7a0   : > { %v3085_v63 = vadd.f32 %v3083_v62, %v3077_v42 }
 0x7a1   : > { %v3243_v0 = vpop.xlane.xlu1 %3242 }
 0x7a2   : > { %3088 = vst.msk [vmem:[#allocation4 + $0x8] sm:$0xff] %vm3086_vm7, %v3085_v63 }
 0x7a5   : > { %v3207_v22 = vld [vmem:[#allocation4] sm:$0xff]  ;;  %v3246_v43 = vpop.xlane.xlu0 %3245  ;;  %v3262_v26 = vpop.permute.xlu1 %3261 }
 0x7a6   : > { %v3239_v29 = vmul.f32 %v5792_v33, %v3207_v22  ;;  %v3265_v38 = vmul.f32 %v3262_v26, %v3253_v51 }
 0x7a8   : > { %v3247_v31 = vadd.f32 %v3243_v0, %v3239_v29 }
 0x7a9   : > { %v3208_v1 = vld [vmem:[#allocation4 + $0x8] sm:$0xff] }
 0x7aa   : > { %3250 = vst.msk [vmem:[#allocation4] sm:$0xff] %vm3249_vm8, %v3247_v31  ;;  %v3240_v36 = vmul.f32 %v5790_v32, %v3208_v1 }
 0x7ac   : > { %v3248_v3 = vadd.f32 %v3246_v43, %v3240_v36 }
 0x7ad   : > { %v3257_v47 = vpop.permute.xlu0 %3256 }
 0x7ae   : > { %3251 = vst.msk [vmem:[#allocation4 + $0x8] sm:$0xff] %vm3249_vm8, %v3248_v3  ;;  %v3264_v50 = vmul.f32 %v3257_v47, %v3252_v46 }
 0x7bf   : > { %v2815_v45 = vpop.f32.mrf.mxu1 }
 0x7c0   : > { %v2822_v9 = vadd.f32 %v2815_v45, %v2775_v5 }
 0x7c1   : > { %v5080_v10 = vpop.f32.mrf.mxu1 }
 0x7c2   : > { %2824 = vst [vmem:[#allocation5 + $0x30] sm:$0xff] %v2822_v9 }
 0x7c3   : > { %v2818_v11 = vpop.f32.mrf.mxu1 }
 0x7c4   : > { %v2823_v12 = vadd.f32 %v2818_v11, %v2776_v8 }
 0x7c5   : > { %v5081_v15 = vpop.f32.mrf.mxu1 }
 0x7c6   : > { %2825 = vst [vmem:[#allocation5 + $0x8] sm:$0xff] %v2823_v12 }
 0x7c9   : > { %v2978_v16 = vpop.f32.mrf.mxu1 }
 0x7ca   : > { %v2985_v2 = vadd.f32 %v2978_v16, %v2938_v6 }
 0x7cb   : > { %v5092_v7 = vpop.f32.mrf.mxu1 }
 0x7cc   : > { %2987 = vst [vmem:[#allocation5] sm:$0xff] %v2985_v2 }
 0x7cd   : > { %v2981_v48 = vpop.f32.mrf.mxu1 }
 0x7ce   : > { %v2986_v19 = vadd.f32 %v2981_v48, %v2939_v17 }
 0x7cf   : > { %v5093_v21 = vpop.f32.mrf.mxu1 }
 0x7d0   : > { %2988 = vst [vmem:[#allocation5 + $0x20] sm:$0xff] %v2986_v19 }
 0x7d3   : > { %v3141_v24 = vpop.f32.mrf.mxu1 }
 0x7d4   : > { %v3148_v32 = vadd.f32 %v3141_v24, %v3101_v28 }
 0x7d5   : > { %v5104_v33 = vpop.f32.mrf.mxu1 }
 0x7d6   : > { %3150 = vst [vmem:[#allocation5 + $0x18] sm:$0xff] %v3148_v32 }
 0x7d7   : > { %v3144_v37 = vpop.f32.mrf.mxu1 }
 0x7d8   : > { %v3149_v39 = vadd.f32 %v3144_v37, %v3102_v35 }
 0x7d9   : > { %v5105_v49 = vpop.f32.mrf.mxu1 }
 0x7da   : > { %3151 = vst [vmem:[#allocation5 + $0x28] sm:$0xff] %v3149_v39 }
 0x7dd   : > { %v3304_v27 = vpop.f32.mrf.mxu1 }
 0x7de   : > { %v3311_v23 = vadd.f32 %v3304_v27, %v3264_v50 }
 0x7df   : > { %v5116_v52 = vpop.f32.mrf.mxu1 }
 0x7e0   : > { %3313 = vst [vmem:[#allocation5 + $0x10] sm:$0xff] %v3311_v23 }
 0x7e1   : > { %v3307_v53 = vpop.f32.mrf.mxu1 }
 0x7e2   : > { %v3312_v54 = vadd.f32 %v3307_v53, %v3265_v38 }
 0x7e3   : > { %v5117_v55 = vpop.f32.mrf.mxu1 }
 0x7e4   : > { %3314 = vst [vmem:[#allocation5 + $0x38] sm:$0xff] %v3312_v54 }
 0x7e5 PF: > { %s7451_s8 = sld [smem:[#allocation35_spill]] }
 0x7eb   : > { %p4903_p5 = scmp.ne.s32.totalorder %s7451_s8, 1 }
 0x7ed   : > { %3320 = sbr.rel (%p4903_p5) target bundleno = 2521 (0x9d9), region = 96 }
 0x7f2   : > { %v3321_v34 = vld [vmem:[#allocation4] sm:$0xff]  ;;  %v3322_v56 = vld [vmem:[#allocation4 + $0x8] sm:$0xff]  ;;  %v6452_v57 = vmov 3   ;;  %v6453_v41 = vmov 1   ;;  %v6454_v43 = vmov 0   ;;  %v6455_v45 = vmov 2  }
 0x7f3   : > { %5794 = vset.pattern.permute.xlu1 %v6452_v57  ;;  %5793 = vset.pattern.permute.xlu0 %v6453_v41  ;;  %5992 = vrcp.f32 %v3321_v34  ;;  %v5800_v58 = vld [vmem:[#allocation12 + $0xe4] ss:$16 sps:$4 sm:$0xff]   ;;  %v5802_v18 = vld [vmem:[#allocation12 + $0xe0] ss:$16 sps:$4 sm:$0xff]   ;;  %v5803_v59 = vld [vmem:[#allocation12 + $0xec] ss:$16 sps:$4 sm:$0xff]  }
 0x7f4   : > { %5994 = vrcp.f32 %v3322_v56  ;;  %4163 = vmatprep.subr.bf16.mxu0 %v5800_v58  ;;  %v5805_v13 = vld [vmem:[#allocation12 + $0xe8] ss:$16 sps:$4 sm:$0xff]   ;;  %v5806_v60 = vld [vmem:[#allocation12 + $0xc4] ss:$16 sps:$4 sm:$0xff]   ;;  %4206 = vmatprep.subr.bf16.mxu1 %v5803_v59  ;;  %v5809_v25 = vld [vmem:[#allocation12 + $0xcc] ss:$16 sps:$4 sm:$0xff]  }
 0x7f5   : > { %4164 = vmatpush1.bf16.xpose.msra.mxu0 %v5802_v18  ;;  %4207 = vmatpush1.bf16.xpose.msra.mxu1 %v5805_v13  ;;  %v5808_v61 = vld [vmem:[#allocation12 + $0xc0] ss:$16 sps:$4 sm:$0xff]   ;;  %v5812_v42 = vld [vmem:[#allocation12 + $0xa4] ss:$16 sps:$4 sm:$0xff]   ;;  %v5811_v62 = vld [vmem:[#allocation12 + $0xc8] ss:$16 sps:$4 sm:$0xff]  }
 0x7f6   : > { %4165 = vmatprep.subr.bf16.mxu0 %v5806_v60  ;;  %4208 = vmatprep.subr.bf16.mxu1 %v5809_v25  ;;  %v5815_v63 = vld [vmem:[#allocation12 + $0xac] ss:$16 sps:$4 sm:$0xff]   ;;  %v5814_v0 = vld [vmem:[#allocation12 + $0xa0] ss:$16 sps:$4 sm:$0xff]   ;;  %v5818_v31 = vld [vmem:[#allocation12 + $0x84] ss:$16 sps:$4 sm:$0xff]  }
 0x7f7   : > { %v5817_v1 = vld [vmem:[#allocation12 + $0xa8] ss:$16 sps:$4 sm:$0xff]   ;;  %v5821_v36 = vld [vmem:[#allocation12 + $0x8c] ss:$16 sps:$4 sm:$0xff]   ;;  %v5820_v3 = vld [vmem:[#allocation12 + $0x80] ss:$16 sps:$4 sm:$0xff]  }
 0x7f8   : > { %v5823_v4 = vld [vmem:[#allocation12 + $0x88] ss:$16 sps:$4 sm:$0xff]   ;;  %v5824_v5 = vld [vmem:[#allocation12 + $0x64] ss:$16 sps:$4 sm:$0xff]   ;;  %v5827_v40 = vld [vmem:[#allocation12 + $0x6c] ss:$16 sps:$4 sm:$0xff]  }
 0x7f9   : > { %v5826_v9 = vld [vmem:[#allocation12 + $0x60] ss:$16 sps:$4 sm:$0xff]   ;;  %v5829_v10 = vld [vmem:[#allocation12 + $0x68] ss:$16 sps:$4 sm:$0xff]   ;;  %v5830_v8 = vld [vmem:[#allocation12 + $0x44] ss:$16 sps:$4 sm:$0xff]  }
 0x7fa   : > { %v5833_v11 = vld [vmem:[#allocation12 + $0x4c] ss:$16 sps:$4 sm:$0xff]   ;;  %v5832_v12 = vld [vmem:[#allocation12 + $0x40] ss:$16 sps:$4 sm:$0xff]   ;;  %v5835_v14 = vld [vmem:[#allocation12 + $0x48] ss:$16 sps:$4 sm:$0xff]  }
 0x7fb   : > { %v5836_v15 = vld [vmem:[#allocation12 + $0x24] ss:$16 sps:$4 sm:$0xff]   ;;  %v5839_v6 = vld [vmem:[#allocation12 + $0x2c] ss:$16 sps:$4 sm:$0xff]   ;;  %v5838_v44 = vld [vmem:[#allocation12 + $0x20] ss:$16 sps:$4 sm:$0xff]  }
 0x7fc   : > { %v5841_v16 = vld [vmem:[#allocation12 + $0x28] ss:$16 sps:$4 sm:$0xff]   ;;  %v5842_v2 = vld [vmem:[#allocation12 + $0x4] ss:$16 sps:$4 sm:$0xff]   ;;  %v5845_v7 = vld [vmem:[#allocation12 + $0xc] ss:$16 sps:$4 sm:$0xff]  }
 0x7fd   : > { %4166 = vmatpush1.bf16.xpose.msra.mxu0 %v5808_v61  ;;  %4209 = vmatpush1.bf16.xpose.msra.mxu1 %v5811_v62  ;;  %v5844_v17 = vld [vmem:[#allocation12] ss:$16 sps:$4 sm:$0xff]   ;;  %v5847_v48 = vld [vmem:[#allocation12 + $0x8] ss:$16 sps:$4 sm:$0xff]   ;;  %v5848_v19 = vld [vmem:[#allocation12 + $0x1e4] ss:$16 sps:$4 sm:$0xff]  }
 0x7fe   : > { %4167 = vmatprep.subr.bf16.mxu0 %v5812_v42  ;;  %4210 = vmatprep.subr.bf16.mxu1 %v5815_v63  ;;  %v5851_v20 = vld [vmem:[#allocation12 + $0x1ec] ss:$16 sps:$4 sm:$0xff]   ;;  %v5850_v21 = vld [vmem:[#allocation12 + $0x1e0] ss:$16 sps:$4 sm:$0xff]   ;;  %v5853_v28 = vld [vmem:[#allocation12 + $0x1e8] ss:$16 sps:$4 sm:$0xff]  }
 0x7ff   : > { %v5854_v30 = vld [vmem:[#allocation12 + $0x1c4] ss:$16 sps:$4 sm:$0xff]   ;;  %v5857_v24 = vld [vmem:[#allocation12 + $0x1cc] ss:$16 sps:$4 sm:$0xff]   ;;  %v5856_v32 = vld [vmem:[#allocation12 + $0x1c0] ss:$16 sps:$4 sm:$0xff]  }
 0x800   : > { %v5993_v22 = vpop.eup %5992  ;;  %v5859_v33 = vld [vmem:[#allocation12 + $0x1c8] ss:$16 sps:$4 sm:$0xff]   ;;  %v5860_v35 = vld [vmem:[#allocation12 + $0x1a4] ss:$16 sps:$4 sm:$0xff]   ;;  %v5863_v37 = vld [vmem:[#allocation12 + $0x1ac] ss:$16 sps:$4 sm:$0xff]  }
 0x801   : > { %3372 = vperm.xlu1 %5794, %v5993_v22   ;;  %3344 = vperm.xlu0 %5793, %v5993_v22   ;;  %v5995_v29 = vpop.eup %5994  ;;  %v5862_v39 = vld [vmem:[#allocation12 + $0x1a0] ss:$16 sps:$4 sm:$0xff]   ;;  %v5865_v46 = vld [vmem:[#allocation12 + $0x1a8] ss:$16 sps:$4 sm:$0xff]   ;;  %v5866_v47 = vld [vmem:[#allocation12 + $0x184] ss:$16 sps:$4 sm:$0xff]  }
 0x802   : > { %v5869_v49 = vld [vmem:[#allocation12 + $0x18c] ss:$16 sps:$4 sm:$0xff]   ;;  %v5868_v50 = vld [vmem:[#allocation12 + $0x180] ss:$16 sps:$4 sm:$0xff]   ;;  %v5871_v51 = vld [vmem:[#allocation12 + $0x188] ss:$16 sps:$4 sm:$0xff]  }
 0x803   : > { %v5872_v26 = vld [vmem:[#allocation12 + $0x164] ss:$16 sps:$4 sm:$0xff]   ;;  %v5875_v27 = vld [vmem:[#allocation12 + $0x16c] ss:$16 sps:$4 sm:$0xff]   ;;  %v5874_v23 = vld [vmem:[#allocation12 + $0x160] ss:$16 sps:$4 sm:$0xff]  }
 0x804   : > { %v5877_v52 = vld [vmem:[#allocation12 + $0x168] ss:$16 sps:$4 sm:$0xff]   ;;  %v5878_v38 = vld [vmem:[#allocation12 + $0x144] ss:$16 sps:$4 sm:$0xff]   ;;  %v5881_v53 = vld [vmem:[#allocation12 + $0x14c] ss:$16 sps:$4 sm:$0xff]  }
 0x805   : > { %3376 = vperm.xlu1 %5794, %v5995_v29   ;;  %3348 = vperm.xlu0 %5793, %v5995_v29   ;;  %v5880_v54 = vld [vmem:[#allocation12 + $0x140] ss:$16 sps:$4 sm:$0xff]   ;;  %v5883_v55 = vld [vmem:[#allocation12 + $0x148] ss:$16 sps:$4 sm:$0xff]   ;;  %v5884_v34 = vld [vmem:[#allocation12 + $0x124] ss:$16 sps:$4 sm:$0xff]  }
 0x806   : > { %4168 = vmatpush1.bf16.xpose.msra.mxu0 %v5814_v0  ;;  %4211 = vmatpush1.bf16.xpose.msra.mxu1 %v5817_v1  ;;  %v5887_v56 = vld [vmem:[#allocation12 + $0x12c] ss:$16 sps:$4 sm:$0xff]   ;;  %v5889_v41 = vld [vmem:[#allocation12 + $0x128] ss:$16 sps:$4 sm:$0xff]   ;;  %v5890_v58 = vld [vmem:[#allocation12 + $0x104] ss:$16 sps:$4 sm:$0xff]  }
 0x807   : > { %4169 = vmatprep.subr.bf16.mxu0 %v5818_v31  ;;  %4212 = vmatprep.subr.bf16.mxu1 %v5821_v36  ;;  %v5893_v18 = vld [vmem:[#allocation12 + $0x10c] ss:$16 sps:$4 sm:$0xff]   ;;  %v5892_v59 = vld [vmem:[#allocation12 + $0x100] ss:$16 sps:$4 sm:$0xff]   ;;  %v5895_v13 = vld [vmem:[#allocation12 + $0x108] ss:$16 sps:$4 sm:$0xff]  }
 0x808   : > { %v5898_v60 = vld [vmem:[#allocation12 + $0x2e4] ss:$16 sps:$4 sm:$0xff]   ;;  %v5901_v25 = vld [vmem:[#allocation12 + $0x2ec] ss:$16 sps:$4 sm:$0xff]  }
 0x809   : > { %5796 = vset.pattern.permute.xlu1 %v6454_v43  ;;  %5795 = vset.pattern.permute.xlu0 %v6454_v43  ;;  %v3369_v61 = vld [vmem:[#allocation5 + $0x10] sm:$0xff]  ;;  %v3341_v42 = vld [vmem:[#allocation5] sm:$0xff]  ;;  %v3370_v0 = vld [vmem:[#allocation5 + $0x38] sm:$0xff] }
 0x80a   : > { %3334 = vperm.xlu1 %5796, %v5995_v29   ;;  %3329 = vperm.xlu0 %5795, %v5993_v22   ;;  %v3342_v31 = vld [vmem:[#allocation5 + $0x20] sm:$0xff] }
 0x80e   : > { %5797 = vset.pattern.permute.xlu1 %v6455_v45  ;;  %5798 = vset.pattern.permute.xlu0 %v6455_v45 }
 0x80f   : > { %3358 = vperm.xlu1 %5797, %v5993_v22   ;;  %3362 = vperm.xlu0 %5798, %v5995_v29  }
 0x810   : > { %4170 = vmatpush1.bf16.xpose.msra.mxu0 %v5820_v3  ;;  %4213 = vmatpush1.bf16.xpose.msra.mxu1 %v5823_v4  ;;  %v3326_v4 = vld [vmem:[#allocation5 + $0x8] sm:$0xff] }
 0x811   : > { %4171 = vmatprep.subr.bf16.mxu0 %v5824_v5  ;;  %4214 = vmatprep.subr.bf16.mxu1 %v5827_v40  ;;  %v3325_v5 = vld [vmem:[#allocation5 + $0x30] sm:$0xff] }
 0x813   : > { %5799 = vset.pattern.permute.xlu0 %v6452_v57  ;;  %v5886_v57 = vld [vmem:[#allocation12 + $0x120] ss:$16 sps:$4 sm:$0xff]  }
 0x818   : > { %4172 = vmatpush1.bf16.xpose.msra.mxu0 %v5826_v9  ;;  %4215 = vmatpush1.bf16.xpose.msra.mxu1 %v5829_v10 }
 0x819   : > { %4173 = vmatprep.subr.bf16.mxu0 %v5830_v8  ;;  %4216 = vmatprep.subr.bf16.mxu1 %v5833_v11 }
 0x820   : > { %4174 = vmatpush1.bf16.xpose.msra.mxu0 %v5832_v12  ;;  %4217 = vmatpush1.bf16.xpose.msra.mxu1 %v5835_v14  ;;  %v5896_v12 = vld [vmem:[#allocation12 + $0x2e0] ss:$16 sps:$4 sm:$0xff]   ;;  %v3355_v14 = vld [vmem:[#allocation5 + $0x18] sm:$0xff] }
 0x821   : > { %4175 = vmatprep.subr.bf16.mxu0 %v5836_v15  ;;  %4218 = vmatprep.subr.bf16.mxu1 %v5839_v6  ;;  %v3356_v15 = vld [vmem:[#allocation5 + $0x28] sm:$0xff] }
 0x828   : > { %4176 = vmatpush1.bf16.xpose.msra.mxu0 %v5838_v44  ;;  %4219 = vmatpush1.bf16.xpose.msra.mxu1 %v5841_v16  ;;  %v5904_v44 = vld [vmem:[#allocation12 + $0x2c4] ss:$16 sps:$4 sm:$0xff]  }
 0x829   : > { %4177 = vmatprep.subr.bf16.mxu0 %v5842_v2  ;;  %4220 = vmatprep.subr.bf16.mxu1 %v5845_v7 }
 0x830   : > { %4178 = vmatpush1.bf16.xpose.msra.mxu0 %v5844_v17  ;;  %4221 = vmatpush1.bf16.xpose.msra.mxu1 %v5847_v48  ;;  %v5899_v48 = vld [vmem:[#allocation12 + $0x2e8] ss:$16 sps:$4 sm:$0xff]  }
 0x831   : > { %4179 = vmatprep.subr.bf16.mxu0 %v5848_v19  ;;  %4222 = vmatprep.subr.bf16.mxu1 %v5851_v20  ;;  %v5907_v20 = vld [vmem:[#allocation12 + $0x2cc] ss:$16 sps:$4 sm:$0xff]  }
 0x838   : > { %4180 = vmatpush2.bf16.xpose.msra.mxu0 %v5850_v21  ;;  %4223 = vmatpush2.bf16.xpose.msra.mxu1 %v5853_v28  ;;  %v5902_v21 = vld [vmem:[#allocation12 + $0x2c0] ss:$16 sps:$4 sm:$0xff]   ;;  %v5910_v28 = vld [vmem:[#allocation12 + $0x2a4] ss:$16 sps:$4 sm:$0xff]  }
 0x839   : > { %4181 = vmatprep.subr.bf16.mxu0 %v5854_v30  ;;  %4224 = vmatprep.subr.bf16.mxu1 %v5857_v24  ;;  %v5905_v30 = vld [vmem:[#allocation12 + $0x2c8] ss:$16 sps:$4 sm:$0xff]   ;;  %v5913_v24 = vld [vmem:[#allocation12 + $0x2ac] ss:$16 sps:$4 sm:$0xff]  }
 0x840   : > { %4182 = vmatpush2.bf16.xpose.msra.mxu0 %v5856_v32  ;;  %4225 = vmatpush2.bf16.xpose.msra.mxu1 %v5859_v33  ;;  %v5908_v32 = vld [vmem:[#allocation12 + $0x2a0] ss:$16 sps:$4 sm:$0xff]   ;;  %v5916_v33 = vld [vmem:[#allocation12 + $0x284] ss:$16 sps:$4 sm:$0xff]  }
 0x841   : > { %4183 = vmatprep.subr.bf16.mxu0 %v5860_v35  ;;  %4226 = vmatprep.subr.bf16.mxu1 %v5863_v37  ;;  %v5911_v35 = vld [vmem:[#allocation12 + $0x2a8] ss:$16 sps:$4 sm:$0xff]   ;;  %v5919_v37 = vld [vmem:[#allocation12 + $0x28c] ss:$16 sps:$4 sm:$0xff]  }
 0x848   : > { %4184 = vmatpush2.bf16.xpose.msra.mxu0 %v5862_v39  ;;  %4227 = vmatpush2.bf16.xpose.msra.mxu1 %v5865_v46  ;;  %v5914_v39 = vld [vmem:[#allocation12 + $0x280] ss:$16 sps:$4 sm:$0xff]   ;;  %v5922_v46 = vld [vmem:[#allocation12 + $0x264] ss:$16 sps:$4 sm:$0xff]  }
 0x849   : > { %4185 = vmatprep.subr.bf16.mxu0 %v5866_v47  ;;  %4228 = vmatprep.subr.bf16.mxu1 %v5869_v49  ;;  %v5917_v47 = vld [vmem:[#allocation12 + $0x288] ss:$16 sps:$4 sm:$0xff]   ;;  %v5925_v49 = vld [vmem:[#allocation12 + $0x26c] ss:$16 sps:$4 sm:$0xff]  }
 0x850   : > { %4186 = vmatpush2.bf16.xpose.msra.mxu0 %v5868_v50  ;;  %4229 = vmatpush2.bf16.xpose.msra.mxu1 %v5871_v51  ;;  %v5920_v50 = vld [vmem:[#allocation12 + $0x260] ss:$16 sps:$4 sm:$0xff]   ;;  %v5928_v51 = vld [vmem:[#allocation12 + $0x244] ss:$16 sps:$4 sm:$0xff]  }
 0x851   : > { %4187 = vmatprep.subr.bf16.mxu0 %v5872_v26  ;;  %4230 = vmatprep.subr.bf16.mxu1 %v5875_v27  ;;  %v5923_v26 = vld [vmem:[#allocation12 + $0x268] ss:$16 sps:$4 sm:$0xff]   ;;  %v5931_v27 = vld [vmem:[#allocation12 + $0x24c] ss:$16 sps:$4 sm:$0xff]  }
 0x858   : > { %4188 = vmatpush2.bf16.xpose.msra.mxu0 %v5874_v23  ;;  %4231 = vmatpush2.bf16.xpose.msra.mxu1 %v5877_v52  ;;  %v5926_v23 = vld [vmem:[#allocation12 + $0x240] ss:$16 sps:$4 sm:$0xff]   ;;  %v5934_v52 = vld [vmem:[#allocation12 + $0x224] ss:$16 sps:$4 sm:$0xff]  }
 0x859   : > { %4189 = vmatprep.subr.bf16.mxu0 %v5878_v38  ;;  %4232 = vmatprep.subr.bf16.mxu1 %v5881_v53  ;;  %v5929_v38 = vld [vmem:[#allocation12 + $0x248] ss:$16 sps:$4 sm:$0xff]   ;;  %v5937_v53 = vld [vmem:[#allocation12 + $0x22c] ss:$16 sps:$4 sm:$0xff]  }
 0x860   : > { %4190 = vmatpush2.bf16.xpose.msra.mxu0 %v5880_v54  ;;  %4233 = vmatpush2.bf16.xpose.msra.mxu1 %v5883_v55  ;;  %v5932_v54 = vld [vmem:[#allocation12 + $0x220] ss:$16 sps:$4 sm:$0xff]   ;;  %v5940_v55 = vld [vmem:[#allocation12 + $0x204] ss:$16 sps:$4 sm:$0xff]  }
 0x861   : > { %4191 = vmatprep.subr.bf16.mxu0 %v5884_v34  ;;  %4234 = vmatprep.subr.bf16.mxu1 %v5887_v56  ;;  %v5935_v34 = vld [vmem:[#allocation12 + $0x228] ss:$16 sps:$4 sm:$0xff]   ;;  %v5943_v56 = vld [vmem:[#allocation12 + $0x20c] ss:$16 sps:$4 sm:$0xff]  }
 0x868   : > { %4192 = vmatpush2.bf16.xpose.msra.mxu0 %v5886_v57  ;;  %4235 = vmatpush2.bf16.xpose.msra.mxu1 %v5889_v41  ;;  %v5938_v57 = vld [vmem:[#allocation12 + $0x200] ss:$16 sps:$4 sm:$0xff]   ;;  %v5946_v41 = vld [vmem:[#allocation12 + $0x3e4] ss:$16 sps:$4 sm:$0xff]  }
 0x869   : > { %4193 = vmatprep.subr.bf16.mxu0 %v5890_v58  ;;  %4236 = vmatprep.subr.bf16.mxu1 %v5893_v18  ;;  %v5941_v58 = vld [vmem:[#allocation12 + $0x208] ss:$16 sps:$4 sm:$0xff]   ;;  %v5949_v18 = vld [vmem:[#allocation12 + $0x3ec] ss:$16 sps:$4 sm:$0xff]  }
 0x870   : > { %4194 = vmatpush2.bf16.xpose.msra.mxu0 %v5892_v59  ;;  %4237 = vmatpush2.bf16.xpose.msra.mxu1 %v5895_v13  ;;  %v5944_v59 = vld [vmem:[#allocation12 + $0x3e0] ss:$16 sps:$4 sm:$0xff]   ;;  %v5952_v13 = vld [vmem:[#allocation12 + $0x3c4] ss:$16 sps:$4 sm:$0xff]  }
 0x871   : > { %4249 = vmatprep.subr.bf16.mxu0 %v5898_v60  ;;  %4292 = vmatprep.subr.bf16.mxu1 %v5901_v25  ;;  %v5947_v60 = vld [vmem:[#allocation12 + $0x3e8] ss:$16 sps:$4 sm:$0xff]   ;;  %v5955_v25 = vld [vmem:[#allocation12 + $0x3cc] ss:$16 sps:$4 sm:$0xff]  }
 0x87c   : > { %v3373_v62 = vpop.permute.xlu1 %3372  ;;  %v3345_v63 = vpop.permute.xlu0 %3344 }
 0x87d   : > { %v3379_v22 = vmul.f32 %v3373_v62, %v3369_v61  ;;  %v3351_v29 = vmul.f32 %v3345_v63, %v3341_v42  ;;  %v5950_v61 = vld [vmem:[#allocation12 + $0x3c0] ss:$16 sps:$4 sm:$0xff]   ;;  %v5958_v42 = vld [vmem:[#allocation12 + $0x3a4] ss:$16 sps:$4 sm:$0xff]   ;;  %v5953_v62 = vld [vmem:[#allocation12 + $0x3c8] ss:$16 sps:$4 sm:$0xff]  }
 0x87e   : > { %v5961_v63 = vld [vmem:[#allocation12 + $0x3ac] ss:$16 sps:$4 sm:$0xff]  }
 0x87f   : > { %3381 = vst [vmem:[#allocation5 + $0x10] sm:$0xff] %v3379_v22  ;;  %3353 = vst [vmem:[#allocation5] sm:$0xff] %v3351_v29 }
 0x880   : > { %v3377_v1 = vpop.permute.xlu1 %3376  ;;  %v3349_v36 = vpop.permute.xlu0 %3348 }
 0x881   : > { %v3380_v43 = vmul.f32 %v3377_v1, %v3370_v0  ;;  %v3352_v3 = vmul.f32 %v3349_v36, %v3342_v31  ;;  %v5959_v0 = vld [vmem:[#allocation12 + $0x3a8] ss:$16 sps:$4 sm:$0xff]   ;;  %v5967_v31 = vld [vmem:[#allocation12 + $0x38c] ss:$16 sps:$4 sm:$0xff]   ;;  %v5962_v1 = vld [vmem:[#allocation12 + $0x380] ss:$16 sps:$4 sm:$0xff]  }
 0x882   : > { %v5970_v36 = vld [vmem:[#allocation12 + $0x364] ss:$16 sps:$4 sm:$0xff]  }
 0x883   : > { %3382 = vst [vmem:[#allocation5 + $0x38] sm:$0xff] %v3380_v43  ;;  %3354 = vst [vmem:[#allocation5 + $0x20] sm:$0xff] %v3352_v3  ;;  %v3392_v40 = vpack.c.bf16 %v3352_v3, %v3351_v29  ;;  %v3394_v45 = vpack.c.bf16 %v3380_v43, %v3379_v22  ;;  %v5956_v22 = vld [vmem:[#allocation12 + $0x3a0] ss:$16 sps:$4 sm:$0xff]   ;;  %v5964_v29 = vld [vmem:[#allocation12 + $0x384] ss:$16 sps:$4 sm:$0xff]  }
 0x884   : > { %v5965_v43 = vld [vmem:[#allocation12 + $0x388] ss:$16 sps:$4 sm:$0xff]   ;;  %v5973_v3 = vld [vmem:[#allocation12 + $0x36c] ss:$16 sps:$4 sm:$0xff]  }
 0x885   : > { %v3335_v9 = vpop.permute.xlu1 %3334  ;;  %v3330_v10 = vpop.permute.xlu0 %3329  ;;  %4195 = vmatprep.mubr.bf16.mxu0 %v3392_v40  ;;  %4238 = vmatprep.mubr.bf16.mxu1 %v3394_v45 }
 0x886   : > { %v3338_v8 = vmul.f32 %v3335_v9, %v3326_v4  ;;  %v3337_v11 = vmul.f32 %v3330_v10, %v3325_v5  ;;  %v5968_v4 = vld [vmem:[#allocation12 + $0x360] ss:$16 sps:$4 sm:$0xff]   ;;  %v5976_v5 = vld [vmem:[#allocation12 + $0x344] ss:$16 sps:$4 sm:$0xff]  }
 0x887   : > { %v5974_v9 = vld [vmem:[#allocation12 + $0x340] ss:$16 sps:$4 sm:$0xff]   ;;  %v5982_v10 = vld [vmem:[#allocation12 + $0x324] ss:$16 sps:$4 sm:$0xff]  }
 0x888   : > { %3340 = vst [vmem:[#allocation5 + $0x8] sm:$0xff] %v3338_v8  ;;  %3339 = vst [vmem:[#allocation5 + $0x30] sm:$0xff] %v3337_v11  ;;  %v7205_v6 = vpack.c.bf16 %v3338_v8, %v3337_v11  ;;  %v5977_v8 = vld [vmem:[#allocation12 + $0x348] ss:$16 sps:$4 sm:$0xff]   ;;  %v5985_v11 = vld [vmem:[#allocation12 + $0x32c] ss:$16 sps:$4 sm:$0xff]  }
 0x88a   : > { %v3359_v16 = vpop.permute.xlu1 %3358  ;;  %v3363_v2 = vpop.permute.xlu0 %3362  ;;  %4196 = vmatmul.mubr.bf16.vlgmr.msra.gmra.mxu0 %v7205_v6 }
 0x88b   : > { %v3365_v7 = vmul.f32 %v3359_v16, %v3355_v14  ;;  %v3366_v17 = vmul.f32 %v3363_v2, %v3356_v15  ;;  %4250 = vmatpush1.bf16.xpose.msra.mxu0 %v5896_v12  ;;  %4281 = vmatprep.mubr.bf16.mxu0 %v3392_v40  ;;  %v5971_v40 = vld [vmem:[#allocation12 + $0x368] ss:$16 sps:$4 sm:$0xff]   ;;  %v5980_v12 = vld [vmem:[#allocation12 + $0x320] ss:$16 sps:$4 sm:$0xff]   ;;  %v5988_v14 = vld [vmem:[#allocation12 + $0x304] ss:$16 sps:$4 sm:$0xff]  }
 0x88c   : > { %4251 = vmatprep.subr.bf16.mxu0 %v5904_v44  ;;  %v5983_v15 = vld [vmem:[#allocation12 + $0x328] ss:$16 sps:$4 sm:$0xff]   ;;  %v5991_v44 = vld [vmem:[#allocation12 + $0x30c] ss:$16 sps:$4 sm:$0xff]   ;;  %v5986_v16 = vld [vmem:[#allocation12 + $0x300] ss:$16 sps:$4 sm:$0xff]  }
 0x88d   : > { %3367 = vst [vmem:[#allocation5 + $0x18] sm:$0xff] %v3365_v7  ;;  %3368 = vst [vmem:[#allocation5 + $0x28] sm:$0xff] %v3366_v17  ;;  %v7208_v19 = vpack.c.bf16 %v3366_v17, %v3365_v7  ;;  %v5989_v2 = vld [vmem:[#allocation12 + $0x308] ss:$16 sps:$4 sm:$0xff]  }
 0x88f   : > { %4239 = vmatmul.mubr.bf16.vlgmr.msra.gmra.mxu1 %v7208_v19 }
 0x890   : > { %4293 = vmatpush1.bf16.xpose.msra.mxu1 %v5899_v48  ;;  %4324 = vmatprep.mubr.bf16.mxu1 %v3394_v45  ;;  %v5979_v45 = vld [vmem:[#allocation12 + $0x34c] ss:$16 sps:$4 sm:$0xff]  }
 0x891   : > { %4294 = vmatprep.subr.bf16.mxu1 %v5907_v20 }
 0x893   : > { %4252 = vmatpush1.bf16.xpose.msra.mxu0 %v5902_v21 }
 0x894   : > { %4253 = vmatprep.subr.bf16.mxu0 %v5910_v28 }
 0x898   : > { %4295 = vmatpush1.bf16.xpose.msra.mxu1 %v5905_v30 }
 0x899   : > { %4296 = vmatprep.subr.bf16.mxu1 %v5913_v24 }
 0x89b   : > { %4254 = vmatpush1.bf16.xpose.msra.mxu0 %v5908_v32 }
 0x89c   : > { %4255 = vmatprep.subr.bf16.mxu0 %v5916_v33 }
 0x8a0   : > { %4297 = vmatpush1.bf16.xpose.msra.mxu1 %v5911_v35 }
 0x8a1   : > { %4298 = vmatprep.subr.bf16.mxu1 %v5919_v37 }
 0x8a3   : > { %4256 = vmatpush1.bf16.xpose.msra.mxu0 %v5914_v39 }
 0x8a4   : > { %4257 = vmatprep.subr.bf16.mxu0 %v5922_v46 }
 0x8a8   : > { %4299 = vmatpush1.bf16.xpose.msra.mxu1 %v5917_v47 }
 0x8a9   : > { %4300 = vmatprep.subr.bf16.mxu1 %v5925_v49 }
 0x8ab   : > { %4258 = vmatpush1.bf16.xpose.msra.mxu0 %v5920_v50 }
 0x8ac   : > { %4259 = vmatprep.subr.bf16.mxu0 %v5928_v51 }
 0x8b0   : > { %4301 = vmatpush1.bf16.xpose.msra.mxu1 %v5923_v26 }
 0x8b1   : > { %4302 = vmatprep.subr.bf16.mxu1 %v5931_v27 }
 0x8b3   : > { %4260 = vmatpush1.bf16.xpose.msra.mxu0 %v5926_v23 }
 0x8b4   : > { %4261 = vmatprep.subr.bf16.mxu0 %v5934_v52 }
 0x8b8   : > { %4303 = vmatpush1.bf16.xpose.msra.mxu1 %v5929_v38 }
 0x8b9   : > { %4304 = vmatprep.subr.bf16.mxu1 %v5937_v53 }
 0x8bb   : > { %4262 = vmatpush1.bf16.xpose.msra.mxu0 %v5932_v54 }
 0x8bc   : > { %4263 = vmatprep.subr.bf16.mxu0 %v5940_v55 }
 0x8c0   : > { %4305 = vmatpush1.bf16.xpose.msra.mxu1 %v5935_v34 }
 0x8c1   : > { %4306 = vmatprep.subr.bf16.mxu1 %v5943_v56 }
 0x8c3   : > { %4264 = vmatpush1.bf16.xpose.msra.mxu0 %v5938_v57 }
 0x8c4   : > { %4265 = vmatprep.subr.bf16.mxu0 %v5946_v41 }
 0x8c8   : > { %4307 = vmatpush1.bf16.xpose.msra.mxu1 %v5941_v58 }
 0x8c9   : > { %4308 = vmatprep.subr.bf16.mxu1 %v5949_v18 }
 0x8cb   : > { %4266 = vmatpush2.bf16.xpose.msra.mxu0 %v5944_v59 }
 0x8cc   : > { %4267 = vmatprep.subr.bf16.mxu0 %v5952_v13 }
 0x8d0   : > { %4309 = vmatpush2.bf16.xpose.msra.mxu1 %v5947_v60 }
 0x8d1   : > { %4310 = vmatprep.subr.bf16.mxu1 %v5955_v25 }
 0x8d3   : > { %4268 = vmatpush2.bf16.xpose.msra.mxu0 %v5950_v61 }
 0x8d4   : > { %4269 = vmatprep.subr.bf16.mxu0 %v5958_v42 }
 0x8d8   : > { %4311 = vmatpush2.bf16.xpose.msra.mxu1 %v5953_v62 }
 0x8d9   : > { %4312 = vmatprep.subr.bf16.mxu1 %v5961_v63 }
 0x8db   : > { %4270 = vmatpush2.bf16.xpose.msra.mxu0 %v5956_v22 }
 0x8dc   : > { %4271 = vmatprep.subr.bf16.mxu0 %v5964_v29 }
 0x8e0   : > { %4313 = vmatpush2.bf16.xpose.msra.mxu1 %v5959_v0 }
 0x8e1   : > { %4314 = vmatprep.subr.bf16.mxu1 %v5967_v31 }
 0x8e3   : > { %4272 = vmatpush2.bf16.xpose.msra.mxu0 %v5962_v1 }
 0x8e4   : > { %4273 = vmatprep.subr.bf16.mxu0 %v5970_v36 }
 0x8e8   : > { %4315 = vmatpush2.bf16.xpose.msra.mxu1 %v5965_v43 }
 0x8e9   : > { %4316 = vmatprep.subr.bf16.mxu1 %v5973_v3 }
 0x8eb   : > { %4274 = vmatpush2.bf16.xpose.msra.mxu0 %v5968_v4 }
 0x8ec   : > { %4275 = vmatprep.subr.bf16.mxu0 %v5976_v5 }
 0x8f0   : > { %4317 = vmatpush2.bf16.xpose.msra.mxu1 %v5971_v40 }
 0x8f1   : > { %4318 = vmatprep.subr.bf16.mxu1 %v5979_v45 }
 0x8f3   : > { %4276 = vmatpush2.bf16.xpose.msra.mxu0 %v5974_v9 }
 0x8f4   : > { %4277 = vmatprep.subr.bf16.mxu0 %v5982_v10 }
 0x8f8   : > { %4319 = vmatpush2.bf16.xpose.msra.mxu1 %v5977_v8 }
 0x8f9   : > { %4320 = vmatprep.subr.bf16.mxu1 %v5985_v11 }
 0x8fb   : > { %4278 = vmatpush2.bf16.xpose.msra.mxu0 %v5980_v12 }
 0x8fc   : > { %4279 = vmatprep.subr.bf16.mxu0 %v5988_v14 }
 0x900   : > { %4321 = vmatpush2.bf16.xpose.msra.mxu1 %v5983_v15 }
 0x901   : > { %4322 = vmatprep.subr.bf16.mxu1 %v5991_v44 }
 0x903   : > { %4280 = vmatpush2.bf16.xpose.msra.mxu0 %v5986_v16 }
 0x908   : > { %4323 = vmatpush2.bf16.xpose.msra.mxu1 %v5989_v2 }
 0x90a   : > { %4282 = vmatmul.mubr.bf16.vlgmr.msra.gmra.mxu0 %v7205_v6 }
 0x90f   : > { %4325 = vmatmul.mubr.bf16.vlgmr.msra.gmra.mxu1 %v7208_v19 }
 0x94a   : > { %v4197_v7 = vpop.f32.mrf.mxu0 }
 0x94c   : > { %v4199_v17 = vpop.f32.mrf.mxu0 }
 0x94e   : > { %v4201_v21 = vpop.f32.mrf.mxu0 }
 0x94f   : > { %v4240_v48 = vpop.f32.mrf.mxu1 }
 0x950   : > { %v4241_v20 = vadd.f32 %v4240_v48, %v4197_v7  ;;  %v4203_v33 = vpop.f32.mrf.mxu0 }
 0x951   : > { %v4242_v28 = vpop.f32.mrf.mxu1 }
 0x952   : > { %4335 = vst [vmem:[%s6959_s28] sm:$0xff] %v4241_v20  ;;  %v4243_v30 = vadd.f32 %v4242_v28, %v4199_v17 }
 0x953   : > { %v4244_v24 = vpop.f32.mrf.mxu1 }
 0x954   : > { %4336 = vst [vmem:[%s6959_s28 + $0x8] sm:$0xff] %v4243_v30  ;;  %v4245_v32 = vadd.f32 %v4244_v24, %v4201_v21 }
 0x955   : > { %v4246_v35 = vpop.f32.mrf.mxu1 }
 0x956   : > { %4339 = vst [vmem:[%s6959_s28 + $0x20] sm:$0xff] %v4245_v32  ;;  %v4247_v6 = vadd.f32 %v4246_v35, %v4203_v33 }
 0x958   : > { %4340 = vst [vmem:[%s6959_s28 + $0x28] sm:$0xff] %v4247_v6 }
 0x9ca   : > { %v4283_v19 = vpop.f32.mrf.mxu0 }
 0x9cc   : > { %v4285_v37 = vpop.f32.mrf.mxu0 }
 0x9ce   : > { %v4287_v47 = vpop.f32.mrf.mxu0 }
 0x9cf   : > { %v4326_v39 = vpop.f32.mrf.mxu1 }
 0x9d0   : > { %v4327_v46 = vadd.f32 %v4326_v39, %v4283_v19  ;;  %v4289_v27 = vpop.f32.mrf.mxu0 }
 0x9d1   : > { %v4328_v49 = vpop.f32.mrf.mxu1 }
 0x9d2   : > { %4337 = vst [vmem:[%s6959_s28 + $0x10] sm:$0xff] %v4327_v46  ;;  %v4329_v50 = vadd.f32 %v4328_v49, %v4285_v37 }
 0x9d3   : > { %v4330_v51 = vpop.f32.mrf.mxu1 }
 0x9d4   : > { %4338 = vst [vmem:[%s6959_s28 + $0x18] sm:$0xff] %v4329_v50  ;;  %v4331_v26 = vadd.f32 %v4330_v51, %v4287_v47 }
 0x9d5   : > { %v4332_v23 = vpop.f32.mrf.mxu1 }
 0x9d6   : > { %4341 = vst [vmem:[%s6959_s28 + $0x30] sm:$0xff] %v4331_v26  ;;  %v4333_v52 = vadd.f32 %v4332_v23, %v4289_v27 }
 0x9d8   : > { %4342 = vst [vmem:[%s6959_s28 + $0x38] sm:$0xff] %v4333_v52 }
 0x9d9 PF: > { %s7452_s14 = sld [smem:[#allocation36_spill]]  ;;  %s4360_s26 = sshll.u32 %s6959_s28, 4  ;;  %s7224_s26 = int_to_ptr.vmem [resolvable:$true] %s4360_s26 }
 0x9da   : > { %s7453_s1 = sld [smem:[#allocation37_spill]]  ;;  %s4344_s0 = scalar_lea.sflag [#allocation8], %s6906_s29 }
 0x9db   : > { %s7454_s5 = sld [smem:[#allocation45_spill]]  ;;  %s6216_s18 = scalar_lea.vmem %s7224_s26, 1024 }
 0x9dc   : > { %s7455_s4 = sld [smem:[#allocation58_spill]]  ;;  %p6217_p2 = scmp.ne.s32.totalorder %s7224_s26, %s6216_s18 }
 0x9dd   : > { %s6456_s7 = smov [#allocation18]  }
 0x9de   : > { %s6220_s28 = sshll.u32 %s6456_s7, 4  ;;  %s6221_s28 = int_to_ptr.vmem [resolvable:$false] %s6220_s28 }
 0x9df   : > { %s5053_s19 = sshll.u32 %s7452_s14, 3  ;;  %s6222_s17 = scalar_lea.vmem %s6221_s28, 2048 }
 0x9e0   : > { %s5035_s24 = sshll.u32 %s7453_s1, 4  ;;  %p6223_p13 = scmp.lt.s32.totalorder %s7224_s26, %s6221_s28 }
 0x9e1   : > { %s4357_s13 = sadd.s32 %s5053_s19, %s5035_s24  ;;  %p7456_p7 = scmp.ne.s32.totalorder %s7454_s5, 0 }
 0x9e2   : > { %s5036_s15 = sshll.u32 %s4357_s13, 7  ;;  %p6224_p8 = scmp.lt.s32.totalorder %s6222_s17, %s6216_s18 }
 0x9e3   : > { %s7229_s16 = scalar_lea.hbm %s7455_s4, %s5036_s15  ;;  %p6218_p0 = pnand %p6217_p2, %p7456_p7 }
 0x9e4   : > { %p6225_p3 = por %p6224_p8, %p6223_p13 }
 0x9e5   : > { %p6219_p12 = pneg %p6218_p0 }
 0x9e7   : > { %p6226_p1 = pnand %p6225_p3, %p6219_p12 }
 0x9e9   : > { %6229 = shalt.err (!%p6226_p1)
}
 0x9ea   : > { %s6230_s3 = scalar_lea.hbm %s7229_s16, 1024  ;;  %s6234_s2 = scalar_lea.hbm %s7455_s4, 4096 }
 0x9eb   : > { %p6231_p10 = scmp.ne.s32.totalorder %s7229_s16, %s6230_s3  ;;  %p6235_p9 = scmp.lt.s32.totalorder %s7229_s16, %s7455_s4 }
 0x9ec   : > { %p6236_p4 = scmp.lt.s32.totalorder %s6234_s2, %s6230_s3 }
 0x9ed   : > { %p6232_p11 = pnand %p6231_p10, %p7456_p7 }
 0x9ee   : > { %p6237_p5 = por %p6236_p4, %p6235_p9 }
 0x9ef   : > { %p6233_p6 = pneg %p6232_p11 }
 0x9f1   : > { %p6238_p2 = pnand %p6237_p5, %p6233_p6 }
 0x9f3   : > { %6241 = shalt.err (!%p6238_p2)
}
 0x9f4   : > { %s6457_s14 = smov 512   ;;  %s6458_s1 = smov 32  }
 0x9f5   : > { %5138 = dma.vmem_to_hbm [thread:$0]  (%p7456_p7), %s7224_s26, 1024, %s7229_s16, %s4344_s0, %s6457_s14, %s6457_s14, %s6458_s1  }
 0x9f6 PF: > { %s7457_s19 = sld [smem:[#allocation32_spill]]  ;;  %p5175_p0 = scmp.ge.s32.totalorder %s6428_s23, 2 }
 0x9f7   : > { %s7458_s24 = sld [smem:[#allocation46_spill]] }
 0x9fc   : > { %s4375_s13 = sand.u32 1, %s7457_s19  }
 0x9fd   : > { %p7459_p12 = scmp.ne.s32.totalorder %s7458_s24, 0  ;;  %s4376_s15 = scalar_lea.sflag [#allocation8], %s4375_s13 }
 0x9ff   : > { %p5167_p13 = pnand %p5175_p0, %p7459_p12 }
 0xa01   : > { %p5168_p8 = pneg %p5167_p13 }
 0xa03   : > { %6351 = dma.done.wait (%p5168_p8), %s4376_s15, 1024  }
 0xa04   : > { %6353 = vsyncadd (%p5168_p8), %s4376_s15, 4294966272  ;;  %s28_s23 = sadd.s32 1, %s6428_s23   ;;  %s7461_s27 = sld [smem:[#allocation29_spill]] }
 0xa05   : > { %p7259_p3 = scmp.ge.s32.totalorder %s28_s23, 10   ;;  %s7462_s28 = sld [smem:[#allocation30_spill]] }
 0xa06   : > { %s7463_s5 = sld [smem:[#allocation49_spill]]  ;;  %s7473_s29 = smov %s6853_s25 }
 0xa07   : > { %s7464_s26 = sld [smem:[#allocation31_spill]]  ;;  %s7474_s30 = smov %s6372_s9 }
 0xa08   : > { %s7465_s13 = sld [smem:[#allocation48_spill]]  ;;  %s7476_s9 = smov %s6376_s10 }
 0xa09   : > { %s7466_s14 = sld [smem:[#allocation33_spill]]  ;;  %s7478_s11 = smov %s6384_s12 }
 0xa0a   : > { %s7467_s15 = sld [smem:[#allocation34_spill]]  ;;  %s7480_s17 = smov %s6416_s20 }
 0xa0b   : > { %s7468_s16 = sld [smem:[#allocation47_spill]]  ;;  %s7481_s18 = smov %s6420_s21 }
 0xa0c   : > { %s7469_s19 = sld [smem:[#allocation38_spill]]  ;;  %s7477_s10 = smov %s7463_s5 }
 0xa0d   : > { %s7470_s0 = sld [smem:[#allocation41_spill]]  ;;  %s7479_s12 = smov %s7464_s26 }
 0xa0e   : > { %s7471_s7 = sld [smem:[#allocation43_spill]] }
 0xa0f   : > { %s7472_s3 = sld [smem:[#allocation44_spill]] }
 0xa11   :  { %27 = sbr.rel (!%p7259_p3) target bundleno = 26 (0x1a), region = 174 }
 0xa13   : > { %s7482_s20 = smov %s7470_s0 }
 0xa14   : > { %s7483_s21 = smov %s7471_s7 }
 0xa15   : > { %s7484_s22 = smov %s7472_s3 }
 0xa16   :  { %4381 = vsyncpa [#allocation7], 1 }
 0xa17   :  { %4383 = vsyncpa [#allocation7 + $0x1], 1 }
 0xa18   :  { %4384 = vsyncpa [#allocation10], 1 }
 0xa19   :  { %4386 = vsyncpa [#allocation10 + $0x1], 1 }
 0xa1a   :  { %4387 = vsyncpa [#allocation13], 1 }
 0xa1b   :  { %4388 = vsyncpa [#allocation8], 1 }
 0xa1c   :  { %4390 = vsyncpa [#allocation8 + $0x1], 1 }

</bundles_post_ra>
